<compile_context>
chip_gen: v7x
topology: tpu7x:2x2x1
jax: 0.10.0
libtpu: 0.0.40
codegen_flags: <defaults>
</compile_context>

<pallas_src>
import jax
import jax.numpy as jnp
from jax.experimental import pallas as pl
from jax.experimental.pallas import tpu as pltpu

D = 128          # input_dimension == output_dimension (required by the final .view)
H = 8            # num_heads
HD = D // H      # head_dim
FF = 4 * D       # MLP hidden (4 * hidden_dimension, hidden_dimension == input_dimension)
LN_EPS = 1e-5


def _erf(x):
    # Abramowitz & Stegun 7.1.26 (max abs err ~1.5e-7): exp -> EUP, reciprocal -> EUP.
    a1, a2, a3, a4, a5 = 0.254829592, -0.284496736, 1.421413741, -1.453152027, 1.061405429
    p = 0.3275911
    ax = jnp.abs(x)
    t = pl.reciprocal(1.0 + p * ax, approx=True)
    poly = ((((a5 * t + a4) * t + a3) * t + a2) * t + a1) * t
    y = 1.0 - poly * jnp.exp(-ax * ax)
    return jnp.where(x >= 0, y, -y)


def _gelu_exact(x):
    # matches torch F.gelu / nn.GELU (erf form)
    return 0.5 * x * (1.0 + _erf(x * 0.7071067811865476))


def _layernorm(x, g, b):
    mu = jnp.mean(x, axis=-1, keepdims=True)
    xc = x - mu
    var = jnp.mean(xc * xc, axis=-1, keepdims=True)
    return xc * jax.lax.rsqrt(var + LN_EPS) * g + b


def attention_block_kernel(f_ref, mask_ref,
                           ln1_g_ref, ln1_b_ref,
                           wqkv_ref, bqkv_ref,
                           wo_ref, bo_ref,
                           ln2_g_ref, ln2_b_ref,
                           w1_ref, b1_ref, w2_ref, b2_ref,
                           out_ref):
    bb, n, d = f_ref.shape                               # (batch-block, seq, D), static
    x = f_ref[...].reshape(bb * n, d)                    # (R, D) f32, free reshape
    head_mask = mask_ref[...]                            # (H, 1, D) f32 per-head column mask

    xf = _layernorm(x, ln1_g_ref[...], ln1_b_ref[...])

    # Fused QKV projection: one lane-dense (R, D) @ (D, 3D) bf16 matmul, f32 accumulate.
    qkv = jnp.dot(xf.astype(jnp.bfloat16), wqkv_ref[...],
                  preferred_element_type=jnp.float32) + bqkv_ref[...]
    q, k, v = qkv[:, :D], qkv[:, D:2 * D], qkv[:, 2 * D:]   # 128-lane-aligned slices

    scale = 1.0 / (HD ** 0.5)
    outs = []
    # TODO(synk): for long sequences, tile K/V with an online-softmax (flash) accumulation
    # instead of materializing the (H, N, N) score block per sequence.
    for b in range(bb):                                  # static, small per-step loop
        rows = slice(b * n, (b + 1) * n)                 # sublane-aligned row slice
        qb, kb, vb = q[rows], k[rows], v[rows]           # (N, D) f32 each
        # Head-masked stacks keep all matmul operands lane-dense (width D) and let both
        # attention matmuls run as single batched dot_generals over the head axis.
        qm = (qb[None, :, :] * head_mask * scale).astype(jnp.bfloat16)   # (H, N, D)
        km = jnp.broadcast_to(kb.astype(jnp.bfloat16), (H, n, D))        # (H, N, D)
        vm = (vb[None, :, :] * head_mask).astype(jnp.bfloat16)           # (H, N, D)

        s = jnp.einsum('hqd,hkd->hqk', qm, km,
                       preferred_element_type=jnp.float32)               # (H, N, N)
        s = s - jnp.max(s, axis=-1, keepdims=True)                       # stable softmax
        p = jnp.exp(s)
        p = p * pl.reciprocal(jnp.sum(p, axis=-1, keepdims=True), approx=True)

        o = jnp.einsum('hqk,hkd->hqd', p.astype(jnp.bfloat16), vm,
                       preferred_element_type=jnp.float32)               # (H, N, D)
        # vm only has head-h columns nonzero, so summing heads yields the concatenated
        # multi-head output directly (no lane concatenate needed).
        outs.append(jnp.sum(o, axis=0))                                  # (N, D)

    attn_cat = outs[0] if bb == 1 else jnp.concatenate(outs, axis=0)     # (R, D)

    attn = jnp.dot(attn_cat.astype(jnp.bfloat16), wo_ref[...],
                   preferred_element_type=jnp.float32) + bo_ref[...]
    out1 = x + _gelu_exact(attn)                         # f + gelu(attn), f32

    h2 = _layernorm(out1, ln2_g_ref[...], ln2_b_ref[...])
    m = _gelu_exact(jnp.dot(h2.astype(jnp.bfloat16), w1_ref[...],
                            preferred_element_type=jnp.float32) + b1_ref[...])
    # dropout(p=0.1) is identity in eval mode
    out2 = out1 + jnp.dot(m.astype(jnp.bfloat16), w2_ref[...],
                          preferred_element_type=jnp.float32) + b2_ref[...]

    out_ref[...] = out2.reshape(bb, n, D)                # output_dimension == D, view is a no-op


def standard_attention_forward(f, params):
    (ln1_g, ln1_b, wq, bq, wk, bk, wv, bv, wo, bo,
     ln2_g, ln2_b, w1, b1, w2, b2) = params
    B, N, d = f.shape
    assert d == D, "wrong input dimension"

    # Fused QKV weight/bias; weights stored & streamed as bf16 (halves weight DMA bytes).
    wqkv = jnp.concatenate([wq, wk, wv], axis=1).astype(jnp.bfloat16)    # (D, 3D)
    bqkv = jnp.concatenate([bq, bk, bv], axis=1)                         # (1, 3D) f32
    wo_b = wo.astype(jnp.bfloat16)
    w1_b = w1.astype(jnp.bfloat16)
    w2_b = w2.astype(jnp.bfloat16)

    # Per-head column mask: mask[h, 0, c] = 1 iff feature column c belongs to head h.
    head_mask = (jnp.arange(D)[None, :] // HD == jnp.arange(H)[:, None]
                 ).astype(jnp.float32)[:, None, :]                       # (H, 1, D)

    # Batch-block size: target ~256 rows of work per grid step (amortizes per-step
    # overhead and fills the MXU M dimension); must divide B.
    target = max(1, 256 // N)
    bb = 1
    for cand in range(min(B, target), 0, -1):
        if B % cand == 0:
            bb = cand
            break
    grid = (B // bb,)

    args = (f, head_mask, ln1_g, ln1_b, wqkv, bqkv, wo_b, bo,
            ln2_g, ln2_b, w1_b, b1, w2_b, b2)

    def const_spec(a):
        nd = a.ndim
        return pl.BlockSpec(a.shape, lambda i, _nd=nd: (0,) * _nd)

    in_specs = [pl.BlockSpec((bb, N, D), lambda i: (i, 0, 0))]
    in_specs += [const_spec(a) for a in args[1:]]

    return pl.pallas_call(
        attention_block_kernel,
        out_shape=jax.ShapeDtypeStruct((B, N, D), jnp.float32),
        grid_spec=pltpu.PrefetchScalarGridSpec(
            num_scalar_prefetch=0,
            grid=grid,
            in_specs=in_specs,
            out_specs=pl.BlockSpec((bb, N, D), lambda i: (i, 0, 0)),
        ),
        compiler_params=pltpu.CompilerParams(
            dimension_semantics=("parallel",),
            vmem_limit_bytes=32 * 1024 * 1024,
        ),
    )(*args)


def init_params(key):
    """Deterministic init (PyTorch-Linear-style uniform bounds). Returns params in f32."""
    ks = jax.random.split(key, 6)

    def linear(k, fan_in, fan_out):
        kw, kb = jax.random.split(k)
        bound = 1.0 / (fan_in ** 0.5)
        w = jax.random.uniform(kw, (fan_in, fan_out), jnp.float32, -bound, bound)
        b = jax.random.uniform(kb, (1, fan_out), jnp.float32, -bound, bound)
        return w, b

    ln1_g = jnp.ones((1, D), jnp.float32)
    ln1_b = jnp.zeros((1, D), jnp.float32)
    wq, bq = linear(ks[0], D, D)
    wk, bk = linear(ks[1], D, D)
    wv, bv = linear(ks[2], D, D)
    wo, bo = linear(ks[3], D, D)
    ln2_g = jnp.ones((1, D), jnp.float32)
    ln2_b = jnp.zeros((1, D), jnp.float32)
    w1, b1 = linear(ks[4], D, FF)
    w2, b2 = linear(ks[5], FF, D)
    return (ln1_g, ln1_b, wq, bq, wk, bk, wv, bv, wo, bo,
            ln2_g, ln2_b, w1, b1, w2, b2)


def reference(f, params):
    """Pure-JAX f32 reference of the PyTorch forward (eval mode)."""
    (ln1_g, ln1_b, wq, bq, wk, bk, wv, bv, wo, bo,
     ln2_g, ln2_b, w1, b1, w2, b2) = params
    B, N, _ = f.shape

    def ln(x, g, b):
        mu = x.mean(-1, keepdims=True)
        var = ((x - mu) ** 2).mean(-1, keepdims=True)
        return (x - mu) / jnp.sqrt(var + LN_EPS) * g + b

    xf = ln(f, ln1_g, ln1_b)
    q = (xf @ wq + bq).reshape(B, N, H, HD).transpose(0, 2, 1, 3)
    k = (xf @ wk + bk).reshape(B, N, H, HD).transpose(0, 2, 1, 3)
    v = (xf @ wv + bv).reshape(B, N, H, HD).transpose(0, 2, 1, 3)
    s = jnp.einsum('bhqd,bhkd->bhqk', q, k) / (HD ** 0.5)
    p = jax.nn.softmax(s, axis=-1)
    o = jnp.einsum('bhqk,bhkd->bhqd', p, v).transpose(0, 2, 1, 3).reshape(B, N, D)
    attn = o @ wo + bo
    out1 = f + jax.nn.gelu(attn, approximate=False)
    m = jax.nn.gelu(ln(out1, ln2_g, ln2_b) @ w1 + b1, approximate=False)
    out2 = out1 + m @ w2 + b2
    return out2


if __name__ == "__main__":
    key = jax.random.PRNGKey(0)
    kx, kp = jax.random.split(key)
    B, N = 2, 16
    f = jax.random.normal(kx, (B, N, D), jnp.float32)
    params = init_params(kp)

    out = jax.block_until_ready(standard_attention_forward(f, params))
    ref = reference(f, params)
    assert out.shape == (B, N, D)
    max_err = float(jnp.max(jnp.abs(out - ref)))
    # bf16 matmuls vs an all-f32 reference: relaxed tolerance (per performance review).
    assert max_err < 5e-2, f"mismatch vs reference: {max_err}"
    print("KERNEL_OK")
</pallas_src>

<mosaic_0001>
module attributes {stable_mosaic.version = 11 : i64} {
  func.func @attention_block_kernel(%arg0: i32, %arg1: memref<2x16x128xf32, #tpu.memory_space<vmem>>, %arg2: memref<8x1x128xf32, #tpu.memory_space<vmem>>, %arg3: memref<1x128xf32, #tpu.memory_space<vmem>>, %arg4: memref<1x128xf32, #tpu.memory_space<vmem>>, %arg5: memref<128x384xbf16, #tpu.memory_space<vmem>>, %arg6: memref<1x384xf32, #tpu.memory_space<vmem>>, %arg7: memref<128x128xbf16, #tpu.memory_space<vmem>>, %arg8: memref<1x128xf32, #tpu.memory_space<vmem>>, %arg9: memref<1x128xf32, #tpu.memory_space<vmem>>, %arg10: memref<1x128xf32, #tpu.memory_space<vmem>>, %arg11: memref<128x512xbf16, #tpu.memory_space<vmem>>, %arg12: memref<1x512xf32, #tpu.memory_space<vmem>>, %arg13: memref<512x128xbf16, #tpu.memory_space<vmem>>, %arg14: memref<1x128xf32, #tpu.memory_space<vmem>>, %arg15: memref<2x16x128xf32, #tpu.memory_space<vmem>>) attributes {dimension_semantics = [#tpu.dimension_semantics<parallel>], iteration_bounds = array<i64: 1>, scalar_prefetch = 0 : i64, scratch_operands = 0 : i64, tpu.core_type = #tpu.core_type<tc>, window_params = [{transform_indices = @transform_0, window_bounds = array<i64: 2, 16, 128>}, {pipeline_mode = #tpu.pipeline_mode<synchronous>, transform_indices = @transform_1, window_bounds = array<i64: 8, 1, 128>}, {pipeline_mode = #tpu.pipeline_mode<synchronous>, transform_indices = @transform_2, window_bounds = array<i64: 1, 128>}, {pipeline_mode = #tpu.pipeline_mode<synchronous>, transform_indices = @transform_3, window_bounds = array<i64: 1, 128>}, {pipeline_mode = #tpu.pipeline_mode<synchronous>, transform_indices = @transform_4, window_bounds = array<i64: 128, 384>}, {pipeline_mode = #tpu.pipeline_mode<synchronous>, transform_indices = @transform_5, window_bounds = array<i64: 1, 384>}, {pipeline_mode = #tpu.pipeline_mode<synchronous>, transform_indices = @transform_6, window_bounds = array<i64: 128, 128>}, {pipeline_mode = #tpu.pipeline_mode<synchronous>, transform_indices = @transform_7, window_bounds = array<i64: 1, 128>}, {pipeline_mode = #tpu.pipeline_mode<synchronous>, transform_indices = @transform_8, window_bounds = array<i64: 1, 128>}, {pipeline_mode = #tpu.pipeline_mode<synchronous>, transform_indices = @transform_9, window_bounds = array<i64: 1, 128>}, {pipeline_mode = #tpu.pipeline_mode<synchronous>, transform_indices = @transform_10, window_bounds = array<i64: 128, 512>}, {pipeline_mode = #tpu.pipeline_mode<synchronous>, transform_indices = @transform_11, window_bounds = array<i64: 1, 512>}, {pipeline_mode = #tpu.pipeline_mode<synchronous>, transform_indices = @transform_12, window_bounds = array<i64: 512, 128>}, {pipeline_mode = #tpu.pipeline_mode<synchronous>, transform_indices = @transform_13, window_bounds = array<i64: 1, 128>}, {transform_indices = @transform_14, window_bounds = array<i64: 2, 16, 128>}]} {
    %c0 = arith.constant 0 : index
    %c0_0 = arith.constant 0 : index
    %c0_1 = arith.constant 0 : index
    %0 = vector.load %arg1[%c0, %c0_0, %c0_1] : memref<2x16x128xf32, #tpu.memory_space<vmem>>, vector<2x16x128xf32>
    %1 = vector.shape_cast %0 : vector<2x16x128xf32> to vector<32x128xf32>
    %c0_2 = arith.constant 0 : index
    %c0_3 = arith.constant 0 : index
    %c0_4 = arith.constant 0 : index
    %2 = vector.load %arg2[%c0_2, %c0_3, %c0_4] : memref<8x1x128xf32, #tpu.memory_space<vmem>>, vector<8x1x128xf32>
    %c0_5 = arith.constant 0 : index
    %c0_6 = arith.constant 0 : index
    %3 = vector.load %arg3[%c0_5, %c0_6] : memref<1x128xf32, #tpu.memory_space<vmem>>, vector<1x128xf32>
    %c0_7 = arith.constant 0 : index
    %c0_8 = arith.constant 0 : index
    %4 = vector.load %arg4[%c0_7, %c0_8] : memref<1x128xf32, #tpu.memory_space<vmem>>, vector<1x128xf32>
    %cst = arith.constant dense<0.000000e+00> : vector<32xf32>
    %5 = vector.multi_reduction <add>, %1, %cst [1] : vector<32x128xf32> to vector<32xf32>
    %6 = vector.shape_cast %5 : vector<32xf32> to vector<32x1xf32>
    %cst_9 = arith.constant 1.280000e+02 : f32
    %7 = vector.broadcast %cst_9 : f32 to vector<32x1xf32>
    %8 = arith.divf %6, %7 : vector<32x1xf32>
    %9 = vector.broadcast %8 : vector<32x1xf32> to vector<32x128xf32>
    %10 = arith.subf %1, %9 : vector<32x128xf32>
    %11 = arith.mulf %10, %10 : vector<32x128xf32>
    %cst_10 = arith.constant dense<0.000000e+00> : vector<32xf32>
    %12 = vector.multi_reduction <add>, %11, %cst_10 [1] : vector<32x128xf32> to vector<32xf32>
    %13 = vector.shape_cast %12 : vector<32xf32> to vector<32x1xf32>
    %cst_11 = arith.constant 1.280000e+02 : f32
    %14 = vector.broadcast %cst_11 : f32 to vector<32x1xf32>
    %15 = arith.divf %13, %14 : vector<32x1xf32>
    %cst_12 = arith.constant 9.99999974E-6 : f32
    %16 = vector.broadcast %cst_12 : f32 to vector<32x1xf32>
    %17 = arith.addf %15, %16 : vector<32x1xf32>
    %18 = math.rsqrt %17 : vector<32x1xf32>
    %19 = vector.broadcast %18 : vector<32x1xf32> to vector<32x128xf32>
    %20 = arith.mulf %10, %19 : vector<32x128xf32>
    %21 = vector.broadcast %3 : vector<1x128xf32> to vector<32x128xf32>
    %22 = arith.mulf %20, %21 : vector<32x128xf32>
    %23 = vector.broadcast %4 : vector<1x128xf32> to vector<32x128xf32>
    %24 = arith.addf %22, %23 : vector<32x128xf32>
    %25 = arith.truncf %24 : vector<32x128xf32> to vector<32x128xbf16>
    %c0_13 = arith.constant 0 : index
    %c0_14 = arith.constant 0 : index
    %26 = vector.load %arg5[%c0_13, %c0_14] : memref<128x384xbf16, #tpu.memory_space<vmem>>, vector<128x384xbf16>
    %cst_15 = arith.constant dense<0.000000e+00> : vector<32x384xf32>
    %27 = tpu.matmul %25, %26, %cst_15 {dimension_numbers = #tpu.dot_dimension_numbers<[1], [0], [0], [1], [0, 0, 1, 1], [], []>} : vector<32x128xbf16>, vector<128x384xbf16>, vector<32x384xf32> -> vector<32x384xf32>
    %c0_16 = arith.constant 0 : index
    %c0_17 = arith.constant 0 : index
    %28 = vector.load %arg6[%c0_16, %c0_17] : memref<1x384xf32, #tpu.memory_space<vmem>>, vector<1x384xf32>
    %29 = vector.broadcast %28 : vector<1x384xf32> to vector<32x384xf32>
    %30 = arith.addf %27, %29 : vector<32x384xf32>
    %31 = vector.extract_strided_slice %30 {offsets = [0, 0], sizes = [32, 128], strides = [1, 1]} : vector<32x384xf32> to vector<32x128xf32>
    %32 = vector.extract_strided_slice %30 {offsets = [0, 128], sizes = [32, 128], strides = [1, 1]} : vector<32x384xf32> to vector<32x128xf32>
    %33 = vector.extract_strided_slice %30 {offsets = [0, 256], sizes = [32, 128], strides = [1, 1]} : vector<32x384xf32> to vector<32x128xf32>
    %34 = vector.extract_strided_slice %31 {offsets = [0, 0], sizes = [16, 128], strides = [1, 1]} : vector<32x128xf32> to vector<16x128xf32>
    %35 = vector.extract_strided_slice %32 {offsets = [0, 0], sizes = [16, 128], strides = [1, 1]} : vector<32x128xf32> to vector<16x128xf32>
    %36 = vector.extract_strided_slice %33 {offsets = [0, 0], sizes = [16, 128], strides = [1, 1]} : vector<32x128xf32> to vector<16x128xf32>
    %37 = vector.shape_cast %34 : vector<16x128xf32> to vector<1x16x128xf32>
    %38 = vector.broadcast %37 : vector<1x16x128xf32> to vector<8x16x128xf32>
    %39 = vector.broadcast %2 : vector<8x1x128xf32> to vector<8x16x128xf32>
    %40 = arith.mulf %38, %39 : vector<8x16x128xf32>
    %cst_18 = arith.constant 2.500000e-01 : f32
    %41 = vector.broadcast %cst_18 : f32 to vector<8x16x128xf32>
    %42 = arith.mulf %40, %41 : vector<8x16x128xf32>
    %43 = arith.truncf %42 : vector<8x16x128xf32> to vector<8x16x128xbf16>
    %44 = arith.truncf %35 : vector<16x128xf32> to vector<16x128xbf16>
    %45 = vector.shape_cast %44 : vector<16x128xbf16> to vector<1x16x128xbf16>
    %46 = vector.broadcast %45 : vector<1x16x128xbf16> to vector<8x16x128xbf16>
    %47 = vector.shape_cast %36 : vector<16x128xf32> to vector<1x16x128xf32>
    %48 = vector.broadcast %47 : vector<1x16x128xf32> to vector<8x16x128xf32>
    %49 = vector.broadcast %2 : vector<8x1x128xf32> to vector<8x16x128xf32>
    %50 = arith.mulf %48, %49 : vector<8x16x128xf32>
    %51 = arith.truncf %50 : vector<8x16x128xf32> to vector<8x16x128xbf16>
    "tpu.trace_start"() <{level = 10 : i32, message = "hqd,hkd->hqk"}> : () -> ()
    %cst_19 = arith.constant dense<0.000000e+00> : vector<8x16x16xf32>
    %52 = tpu.matmul %43, %46, %cst_19 {dimension_numbers = #tpu.dot_dimension_numbers<[2], [2], [1], [1], [0, 0, 0, 1, 1, 1], [0], [0]>} : vector<8x16x128xbf16>, vector<8x16x128xbf16>, vector<8x16x16xf32> -> vector<8x16x16xf32>
    "tpu.trace_stop"() : () -> ()
    %cst_20 = arith.constant dense<0xFF800000> : vector<8x16xf32>
    %53 = vector.multi_reduction <maximumf>, %52, %cst_20 [2] : vector<8x16x16xf32> to vector<8x16xf32>
    %54 = vector.shape_cast %53 : vector<8x16xf32> to vector<8x16x1xf32>
    %55 = vector.broadcast %54 : vector<8x16x1xf32> to vector<8x16x16xf32>
    %56 = arith.subf %52, %55 : vector<8x16x16xf32>
    %57 = math.exp %56 : vector<8x16x16xf32>
    %cst_21 = arith.constant dense<0.000000e+00> : vector<8x16xf32>
    %58 = vector.multi_reduction <add>, %57, %cst_21 [2] : vector<8x16x16xf32> to vector<8x16xf32>
    %59 = vector.shape_cast %58 : vector<8x16xf32> to vector<8x16x1xf32>
    %60 = tpu.reciprocal %59 {approx = true} : vector<8x16x1xf32> -> vector<8x16x1xf32>
    %61 = vector.broadcast %60 : vector<8x16x1xf32> to vector<8x16x16xf32>
    %62 = arith.mulf %57, %61 : vector<8x16x16xf32>
    %63 = arith.truncf %62 : vector<8x16x16xf32> to vector<8x16x16xbf16>
    "tpu.trace_start"() <{level = 10 : i32, message = "hqk,hkd->hqd"}> : () -> ()
    %cst_22 = arith.constant dense<0.000000e+00> : vector<8x16x128xf32>
    %64 = tpu.matmul %63, %51, %cst_22 {dimension_numbers = #tpu.dot_dimension_numbers<[2], [1], [1], [2], [0, 0, 0, 1, 1, 2], [0], [0]>} : vector<8x16x16xbf16>, vector<8x16x128xbf16>, vector<8x16x128xf32> -> vector<8x16x128xf32>
    "tpu.trace_stop"() : () -> ()
    %cst_23 = arith.constant dense<0.000000e+00> : vector<16x128xf32>
    %65 = vector.multi_reduction <add>, %64, %cst_23 [0] : vector<8x16x128xf32> to vector<16x128xf32>
    %66 = vector.extract_strided_slice %31 {offsets = [16, 0], sizes = [16, 128], strides = [1, 1]} : vector<32x128xf32> to vector<16x128xf32>
    %67 = vector.extract_strided_slice %32 {offsets = [16, 0], sizes = [16, 128], strides = [1, 1]} : vector<32x128xf32> to vector<16x128xf32>
    %68 = vector.extract_strided_slice %33 {offsets = [16, 0], sizes = [16, 128], strides = [1, 1]} : vector<32x128xf32> to vector<16x128xf32>
    %69 = vector.shape_cast %66 : vector<16x128xf32> to vector<1x16x128xf32>
    %70 = vector.broadcast %69 : vector<1x16x128xf32> to vector<8x16x128xf32>
    %71 = vector.broadcast %2 : vector<8x1x128xf32> to vector<8x16x128xf32>
    %72 = arith.mulf %70, %71 : vector<8x16x128xf32>
    %cst_24 = arith.constant 2.500000e-01 : f32
    %73 = vector.broadcast %cst_24 : f32 to vector<8x16x128xf32>
    %74 = arith.mulf %72, %73 : vector<8x16x128xf32>
    %75 = arith.truncf %74 : vector<8x16x128xf32> to vector<8x16x128xbf16>
    %76 = arith.truncf %67 : vector<16x128xf32> to vector<16x128xbf16>
    %77 = vector.shape_cast %76 : vector<16x128xbf16> to vector<1x16x128xbf16>
    %78 = vector.broadcast %77 : vector<1x16x128xbf16> to vector<8x16x128xbf16>
    %79 = vector.shape_cast %68 : vector<16x128xf32> to vector<1x16x128xf32>
    %80 = vector.broadcast %79 : vector<1x16x128xf32> to vector<8x16x128xf32>
    %81 = vector.broadcast %2 : vector<8x1x128xf32> to vector<8x16x128xf32>
    %82 = arith.mulf %80, %81 : vector<8x16x128xf32>
    %83 = arith.truncf %82 : vector<8x16x128xf32> to vector<8x16x128xbf16>
    "tpu.trace_start"() <{level = 10 : i32, message = "hqd,hkd->hqk"}> : () -> ()
    %cst_25 = arith.constant dense<0.000000e+00> : vector<8x16x16xf32>
    %84 = tpu.matmul %75, %78, %cst_25 {dimension_numbers = #tpu.dot_dimension_numbers<[2], [2], [1], [1], [0, 0, 0, 1, 1, 1], [0], [0]>} : vector<8x16x128xbf16>, vector<8x16x128xbf16>, vector<8x16x16xf32> -> vector<8x16x16xf32>
    "tpu.trace_stop"() : () -> ()
    %cst_26 = arith.constant dense<0xFF800000> : vector<8x16xf32>
    %85 = vector.multi_reduction <maximumf>, %84, %cst_26 [2] : vector<8x16x16xf32> to vector<8x16xf32>
    %86 = vector.shape_cast %85 : vector<8x16xf32> to vector<8x16x1xf32>
    %87 = vector.broadcast %86 : vector<8x16x1xf32> to vector<8x16x16xf32>
    %88 = arith.subf %84, %87 : vector<8x16x16xf32>
    %89 = math.exp %88 : vector<8x16x16xf32>
    %cst_27 = arith.constant dense<0.000000e+00> : vector<8x16xf32>
    %90 = vector.multi_reduction <add>, %89, %cst_27 [2] : vector<8x16x16xf32> to vector<8x16xf32>
    %91 = vector.shape_cast %90 : vector<8x16xf32> to vector<8x16x1xf32>
    %92 = tpu.reciprocal %91 {approx = true} : vector<8x16x1xf32> -> vector<8x16x1xf32>
    %93 = vector.broadcast %92 : vector<8x16x1xf32> to vector<8x16x16xf32>
    %94 = arith.mulf %89, %93 : vector<8x16x16xf32>
    %95 = arith.truncf %94 : vector<8x16x16xf32> to vector<8x16x16xbf16>
    "tpu.trace_start"() <{level = 10 : i32, message = "hqk,hkd->hqd"}> : () -> ()
    %cst_28 = arith.constant dense<0.000000e+00> : vector<8x16x128xf32>
    %96 = tpu.matmul %95, %83, %cst_28 {dimension_numbers = #tpu.dot_dimension_numbers<[2], [1], [1], [2], [0, 0, 0, 1, 1, 2], [0], [0]>} : vector<8x16x16xbf16>, vector<8x16x128xbf16>, vector<8x16x128xf32> -> vector<8x16x128xf32>
    "tpu.trace_stop"() : () -> ()
    %cst_29 = arith.constant dense<0.000000e+00> : vector<16x128xf32>
    %97 = vector.multi_reduction <add>, %96, %cst_29 [0] : vector<8x16x128xf32> to vector<16x128xf32>
    %98 = tpu.concatenate %65, %97 in 0 : vector<16x128xf32>, vector<16x128xf32> -> vector<32x128xf32>
    %99 = arith.truncf %98 : vector<32x128xf32> to vector<32x128xbf16>
    %c0_30 = arith.constant 0 : index
    %c0_31 = arith.constant 0 : index
    %100 = vector.load %arg7[%c0_30, %c0_31] : memref<128x128xbf16, #tpu.memory_space<vmem>>, vector<128x128xbf16>
    %cst_32 = arith.constant dense<0.000000e+00> : vector<32x128xf32>
    %101 = tpu.matmul %99, %100, %cst_32 {dimension_numbers = #tpu.dot_dimension_numbers<[1], [0], [0], [1], [0, 0, 1, 1], [], []>} : vector<32x128xbf16>, vector<128x128xbf16>, vector<32x128xf32> -> vector<32x128xf32>
    %c0_33 = arith.constant 0 : index
    %c0_34 = arith.constant 0 : index
    %102 = vector.load %arg8[%c0_33, %c0_34] : memref<1x128xf32, #tpu.memory_space<vmem>>, vector<1x128xf32>
    %103 = vector.broadcast %102 : vector<1x128xf32> to vector<32x128xf32>
    %104 = arith.addf %101, %103 : vector<32x128xf32>
    %cst_35 = arith.constant 5.000000e-01 : f32
    %105 = vector.broadcast %cst_35 : f32 to vector<32x128xf32>
    %106 = arith.mulf %105, %104 : vector<32x128xf32>
    %cst_36 = arith.constant 0.707106769 : f32
    %107 = vector.broadcast %cst_36 : f32 to vector<32x128xf32>
    %108 = arith.mulf %104, %107 : vector<32x128xf32>
    %109 = math.absf %108 : vector<32x128xf32>
    %cst_37 = arith.constant 0.327591091 : f32
    %110 = vector.broadcast %cst_37 : f32 to vector<32x128xf32>
    %111 = arith.mulf %110, %109 : vector<32x128xf32>
    %cst_38 = arith.constant 1.000000e+00 : f32
    %112 = vector.broadcast %cst_38 : f32 to vector<32x128xf32>
    %113 = arith.addf %112, %111 : vector<32x128xf32>
    %114 = tpu.reciprocal %113 {approx = true} : vector<32x128xf32> -> vector<32x128xf32>
    %cst_39 = arith.constant 1.06140542 : f32
    %115 = vector.broadcast %cst_39 : f32 to vector<32x128xf32>
    %116 = arith.mulf %115, %114 : vector<32x128xf32>
    %cst_40 = arith.constant -1.45315206 : f32
    %117 = vector.broadcast %cst_40 : f32 to vector<32x128xf32>
    %118 = arith.addf %116, %117 : vector<32x128xf32>
    %119 = arith.mulf %118, %114 : vector<32x128xf32>
    %cst_41 = arith.constant 1.42141378 : f32
    %120 = vector.broadcast %cst_41 : f32 to vector<32x128xf32>
    %121 = arith.addf %119, %120 : vector<32x128xf32>
    %122 = arith.mulf %121, %114 : vector<32x128xf32>
    %cst_42 = arith.constant -0.284496725 : f32
    %123 = vector.broadcast %cst_42 : f32 to vector<32x128xf32>
    %124 = arith.addf %122, %123 : vector<32x128xf32>
    %125 = arith.mulf %124, %114 : vector<32x128xf32>
    %cst_43 = arith.constant 0.254829586 : f32
    %126 = vector.broadcast %cst_43 : f32 to vector<32x128xf32>
    %127 = arith.addf %125, %126 : vector<32x128xf32>
    %128 = arith.mulf %127, %114 : vector<32x128xf32>
    %cst_44 = arith.constant 0.000000e+00 : f32
    %129 = vector.broadcast %cst_44 : f32 to vector<32x128xf32>
    %130 = arith.subf %129, %109 : vector<32x128xf32>
    %131 = arith.mulf %130, %109 : vector<32x128xf32>
    %132 = math.exp %131 : vector<32x128xf32>
    %133 = arith.mulf %128, %132 : vector<32x128xf32>
    %cst_45 = arith.constant 1.000000e+00 : f32
    %134 = vector.broadcast %cst_45 : f32 to vector<32x128xf32>
    %135 = arith.subf %134, %133 : vector<32x128xf32>
    %cst_46 = arith.constant 0.000000e+00 : f32
    %136 = vector.broadcast %cst_46 : f32 to vector<32x128xf32>
    %137 = arith.cmpf oge, %108, %136 : vector<32x128xf32>
    %cst_47 = arith.constant 0.000000e+00 : f32
    %138 = vector.broadcast %cst_47 : f32 to vector<32x128xf32>
    %139 = arith.subf %138, %135 : vector<32x128xf32>
    %140 = arith.select %137, %135, %139 : vector<32x128xi1>, vector<32x128xf32>
    %cst_48 = arith.constant 1.000000e+00 : f32
    %141 = vector.broadcast %cst_48 : f32 to vector<32x128xf32>
    %142 = arith.addf %141, %140 : vector<32x128xf32>
    %143 = arith.mulf %106, %142 : vector<32x128xf32>
    %144 = arith.addf %1, %143 : vector<32x128xf32>
    %c0_49 = arith.constant 0 : index
    %c0_50 = arith.constant 0 : index
    %145 = vector.load %arg9[%c0_49, %c0_50] : memref<1x128xf32, #tpu.memory_space<vmem>>, vector<1x128xf32>
    %c0_51 = arith.constant 0 : index
    %c0_52 = arith.constant 0 : index
    %146 = vector.load %arg10[%c0_51, %c0_52] : memref<1x128xf32, #tpu.memory_space<vmem>>, vector<1x128xf32>
    %cst_53 = arith.constant dense<0.000000e+00> : vector<32xf32>
    %147 = vector.multi_reduction <add>, %144, %cst_53 [1] : vector<32x128xf32> to vector<32xf32>
    %148 = vector.shape_cast %147 : vector<32xf32> to vector<32x1xf32>
    %cst_54 = arith.constant 1.280000e+02 : f32
    %149 = vector.broadcast %cst_54 : f32 to vector<32x1xf32>
    %150 = arith.divf %148, %149 : vector<32x1xf32>
    %151 = vector.broadcast %150 : vector<32x1xf32> to vector<32x128xf32>
    %152 = arith.subf %144, %151 : vector<32x128xf32>
    %153 = arith.mulf %152, %152 : vector<32x128xf32>
    %cst_55 = arith.constant dense<0.000000e+00> : vector<32xf32>
    %154 = vector.multi_reduction <add>, %153, %cst_55 [1] : vector<32x128xf32> to vector<32xf32>
    %155 = vector.shape_cast %154 : vector<32xf32> to vector<32x1xf32>
    %cst_56 = arith.constant 1.280000e+02 : f32
    %156 = vector.broadcast %cst_56 : f32 to vector<32x1xf32>
    %157 = arith.divf %155, %156 : vector<32x1xf32>
    %cst_57 = arith.constant 9.99999974E-6 : f32
    %158 = vector.broadcast %cst_57 : f32 to vector<32x1xf32>
    %159 = arith.addf %157, %158 : vector<32x1xf32>
    %160 = math.rsqrt %159 : vector<32x1xf32>
    %161 = vector.broadcast %160 : vector<32x1xf32> to vector<32x128xf32>
    %162 = arith.mulf %152, %161 : vector<32x128xf32>
    %163 = vector.broadcast %145 : vector<1x128xf32> to vector<32x128xf32>
    %164 = arith.mulf %162, %163 : vector<32x128xf32>
    %165 = vector.broadcast %146 : vector<1x128xf32> to vector<32x128xf32>
    %166 = arith.addf %164, %165 : vector<32x128xf32>
    %167 = arith.truncf %166 : vector<32x128xf32> to vector<32x128xbf16>
    %c0_58 = arith.constant 0 : index
    %c0_59 = arith.constant 0 : index
    %168 = vector.load %arg11[%c0_58, %c0_59] : memref<128x512xbf16, #tpu.memory_space<vmem>>, vector<128x512xbf16>
    %cst_60 = arith.constant dense<0.000000e+00> : vector<32x512xf32>
    %169 = tpu.matmul %167, %168, %cst_60 {dimension_numbers = #tpu.dot_dimension_numbers<[1], [0], [0], [1], [0, 0, 1, 1], [], []>} : vector<32x128xbf16>, vector<128x512xbf16>, vector<32x512xf32> -> vector<32x512xf32>
    %c0_61 = arith.constant 0 : index
    %c0_62 = arith.constant 0 : index
    %170 = vector.load %arg12[%c0_61, %c0_62] : memref<1x512xf32, #tpu.memory_space<vmem>>, vector<1x512xf32>
    %171 = vector.broadcast %170 : vector<1x512xf32> to vector<32x512xf32>
    %172 = arith.addf %169, %171 : vector<32x512xf32>
    %cst_63 = arith.constant 5.000000e-01 : f32
    %173 = vector.broadcast %cst_63 : f32 to vector<32x512xf32>
    %174 = arith.mulf %173, %172 : vector<32x512xf32>
    %cst_64 = arith.constant 0.707106769 : f32
    %175 = vector.broadcast %cst_64 : f32 to vector<32x512xf32>
    %176 = arith.mulf %172, %175 : vector<32x512xf32>
    %177 = math.absf %176 : vector<32x512xf32>
    %cst_65 = arith.constant 0.327591091 : f32
    %178 = vector.broadcast %cst_65 : f32 to vector<32x512xf32>
    %179 = arith.mulf %178, %177 : vector<32x512xf32>
    %cst_66 = arith.constant 1.000000e+00 : f32
    %180 = vector.broadcast %cst_66 : f32 to vector<32x512xf32>
    %181 = arith.addf %180, %179 : vector<32x512xf32>
    %182 = tpu.reciprocal %181 {approx = true} : vector<32x512xf32> -> vector<32x512xf32>
    %cst_67 = arith.constant 1.06140542 : f32
    %183 = vector.broadcast %cst_67 : f32 to vector<32x512xf32>
    %184 = arith.mulf %183, %182 : vector<32x512xf32>
    %cst_68 = arith.constant -1.45315206 : f32
    %185 = vector.broadcast %cst_68 : f32 to vector<32x512xf32>
    %186 = arith.addf %184, %185 : vector<32x512xf32>
    %187 = arith.mulf %186, %182 : vector<32x512xf32>
    %cst_69 = arith.constant 1.42141378 : f32
    %188 = vector.broadcast %cst_69 : f32 to vector<32x512xf32>
    %189 = arith.addf %187, %188 : vector<32x512xf32>
    %190 = arith.mulf %189, %182 : vector<32x512xf32>
    %cst_70 = arith.constant -0.284496725 : f32
    %191 = vector.broadcast %cst_70 : f32 to vector<32x512xf32>
    %192 = arith.addf %190, %191 : vector<32x512xf32>
    %193 = arith.mulf %192, %182 : vector<32x512xf32>
    %cst_71 = arith.constant 0.254829586 : f32
    %194 = vector.broadcast %cst_71 : f32 to vector<32x512xf32>
    %195 = arith.addf %193, %194 : vector<32x512xf32>
    %196 = arith.mulf %195, %182 : vector<32x512xf32>
    %cst_72 = arith.constant 0.000000e+00 : f32
    %197 = vector.broadcast %cst_72 : f32 to vector<32x512xf32>
    %198 = arith.subf %197, %177 : vector<32x512xf32>
    %199 = arith.mulf %198, %177 : vector<32x512xf32>
    %200 = math.exp %199 : vector<32x512xf32>
    %201 = arith.mulf %196, %200 : vector<32x512xf32>
    %cst_73 = arith.constant 1.000000e+00 : f32
    %202 = vector.broadcast %cst_73 : f32 to vector<32x512xf32>
    %203 = arith.subf %202, %201 : vector<32x512xf32>
    %cst_74 = arith.constant 0.000000e+00 : f32
    %204 = vector.broadcast %cst_74 : f32 to vector<32x512xf32>
    %205 = arith.cmpf oge, %176, %204 : vector<32x512xf32>
    %cst_75 = arith.constant 0.000000e+00 : f32
    %206 = vector.broadcast %cst_75 : f32 to vector<32x512xf32>
    %207 = arith.subf %206, %203 : vector<32x512xf32>
    %208 = arith.select %205, %203, %207 : vector<32x512xi1>, vector<32x512xf32>
    %cst_76 = arith.constant 1.000000e+00 : f32
    %209 = vector.broadcast %cst_76 : f32 to vector<32x512xf32>
    %210 = arith.addf %209, %208 : vector<32x512xf32>
    %211 = arith.mulf %174, %210 : vector<32x512xf32>
    %212 = arith.truncf %211 : vector<32x512xf32> to vector<32x512xbf16>
    %c0_77 = arith.constant 0 : index
    %c0_78 = arith.constant 0 : index
    %213 = vector.load %arg13[%c0_77, %c0_78] : memref<512x128xbf16, #tpu.memory_space<vmem>>, vector<512x128xbf16>
    %cst_79 = arith.constant dense<0.000000e+00> : vector<32x128xf32>
    %214 = tpu.matmul %212, %213, %cst_79 {dimension_numbers = #tpu.dot_dimension_numbers<[1], [0], [0], [1], [0, 0, 1, 1], [], []>} : vector<32x512xbf16>, vector<512x128xbf16>, vector<32x128xf32> -> vector<32x128xf32>
    %215 = arith.addf %144, %214 : vector<32x128xf32>
    %c0_80 = arith.constant 0 : index
    %c0_81 = arith.constant 0 : index
    %216 = vector.load %arg14[%c0_80, %c0_81] : memref<1x128xf32, #tpu.memory_space<vmem>>, vector<1x128xf32>
    %217 = vector.broadcast %216 : vector<1x128xf32> to vector<32x128xf32>
    %218 = arith.addf %215, %217 : vector<32x128xf32>
    %219 = vector.shape_cast %218 : vector<32x128xf32> to vector<2x16x128xf32>
    %c0_82 = arith.constant 0 : index
    %c0_83 = arith.constant 0 : index
    %c0_84 = arith.constant 0 : index
    %220 = vector.load %arg15[%c0_82, %c0_83, %c0_84] : memref<2x16x128xf32, #tpu.memory_space<vmem>>, vector<2x16x128xf32>
    tpu.vector_store %arg15[%c0_82, %c0_83, %c0_84], %219 {strides = array<i32>} : memref<2x16x128xf32, #tpu.memory_space<vmem>>, vector<2x16x128xf32>,
    return
  }
  func.func @transform_0(%arg0: i32) -> (i32, i32, i32) {
    %c0_i32 = arith.constant 0 : i32
    %c0_i32_0 = arith.constant 0 : i32
    %c0_i32_1 = arith.constant 0 : i32
    return %arg0, %c0_i32, %c0_i32_0 : i32, i32, i32
  }
  func.func @transform_1(%arg0: i32) -> (i32, i32, i32) {
    %c0_i32 = arith.constant 0 : i32
    %c0_i32_0 = arith.constant 0 : i32
    %c0_i32_1 = arith.constant 0 : i32
    %c0_i32_2 = arith.constant 0 : i32
    return %c0_i32, %c0_i32_0, %c0_i32_1 : i32, i32, i32
  }
  func.func @transform_2(%arg0: i32) -> (i32, i32) {
    %c0_i32 = arith.constant 0 : i32
    %c0_i32_0 = arith.constant 0 : i32
    %c0_i32_1 = arith.constant 0 : i32
    return %c0_i32, %c0_i32_0 : i32, i32
  }
  func.func @transform_3(%arg0: i32) -> (i32, i32) {
    %c0_i32 = arith.constant 0 : i32
    %c0_i32_0 = arith.constant 0 : i32
    %c0_i32_1 = arith.constant 0 : i32
    return %c0_i32, %c0_i32_0 : i32, i32
  }
  func.func @transform_4(%arg0: i32) -> (i32, i32) {
    %c0_i32 = arith.constant 0 : i32
    %c0_i32_0 = arith.constant 0 : i32
    %c0_i32_1 = arith.constant 0 : i32
    return %c0_i32, %c0_i32_0 : i32, i32
  }
  func.func @transform_5(%arg0: i32) -> (i32, i32) {
    %c0_i32 = arith.constant 0 : i32
    %c0_i32_0 = arith.constant 0 : i32
    %c0_i32_1 = arith.constant 0 : i32
    return %c0_i32, %c0_i32_0 : i32, i32
  }
  func.func @transform_6(%arg0: i32) -> (i32, i32) {
    %c0_i32 = arith.constant 0 : i32
    %c0_i32_0 = arith.constant 0 : i32
    %c0_i32_1 = arith.constant 0 : i32
    return %c0_i32, %c0_i32_0 : i32, i32
  }
  func.func @transform_7(%arg0: i32) -> (i32, i32) {
    %c0_i32 = arith.constant 0 : i32
    %c0_i32_0 = arith.constant 0 : i32
    %c0_i32_1 = arith.constant 0 : i32
    return %c0_i32, %c0_i32_0 : i32, i32
  }
  func.func @transform_8(%arg0: i32) -> (i32, i32) {
    %c0_i32 = arith.constant 0 : i32
    %c0_i32_0 = arith.constant 0 : i32
    %c0_i32_1 = arith.constant 0 : i32
    return %c0_i32, %c0_i32_0 : i32, i32
  }
  func.func @transform_9(%arg0: i32) -> (i32, i32) {
    %c0_i32 = arith.constant 0 : i32
    %c0_i32_0 = arith.constant 0 : i32
    %c0_i32_1 = arith.constant 0 : i32
    return %c0_i32, %c0_i32_0 : i32, i32
  }
  func.func @transform_10(%arg0: i32) -> (i32, i32) {
    %c0_i32 = arith.constant 0 : i32
    %c0_i32_0 = arith.constant 0 : i32
    %c0_i32_1 = arith.constant 0 : i32
    return %c0_i32, %c0_i32_0 : i32, i32
  }
  func.func @transform_11(%arg0: i32) -> (i32, i32) {
    %c0_i32 = arith.constant 0 : i32
    %c0_i32_0 = arith.constant 0 : i32
    %c0_i32_1 = arith.constant 0 : i32
    return %c0_i32, %c0_i32_0 : i32, i32
  }
  func.func @transform_12(%arg0: i32) -> (i32, i32) {
    %c0_i32 = arith.constant 0 : i32
    %c0_i32_0 = arith.constant 0 : i32
    %c0_i32_1 = arith.constant 0 : i32
    return %c0_i32, %c0_i32_0 : i32, i32
  }
  func.func @transform_13(%arg0: i32) -> (i32, i32) {
    %c0_i32 = arith.constant 0 : i32
    %c0_i32_0 = arith.constant 0 : i32
    %c0_i32_1 = arith.constant 0 : i32
    return %c0_i32, %c0_i32_0 : i32, i32
  }
  func.func @transform_14(%arg0: i32) -> (i32, i32, i32) {
    %c0_i32 = arith.constant 0 : i32
    %c0_i32_0 = arith.constant 0 : i32
    %c0_i32_1 = arith.constant 0 : i32
    return %arg0, %c0_i32, %c0_i32_0 : i32, i32, i32
  }
}

</mosaic_0001>

<bundles_post_ra>
// kernel: tpu_custom_call.1
= control target key start
LH: loop header
LB: loop body
LE: loop exit
PB: predicated region body
PF: predicated region fallthrough
CT: control target
= control target key end

     0   :  { %19 = vsyncpa [#allocation3], 0  ;;  %s6456_s0 = inlined_call_operand.hbm [shape: f32[2,16,128], index: 0, kind: input, shape index: {}]   ;;  %s6457_s1 = inlined_call_operand.hbm [shape: f32[8,1,128], index: 1, kind: input, shape index: {}]   ;;  %s6458_s2 = inlined_call_operand.hbm [shape: f32[1,128], index: 2, kind: input, shape index: {}]   ;;  %s6459_s3 = inlined_call_operand.vmem [shape: f32[1,128], index: 3, kind: input, shape index: {}]   ;;  %s6460_s4 = inlined_call_operand.hbm [shape: bf16[128,384], index: 4, kind: input, shape index: {}]   ;;  %s6461_s5 = inlined_call_operand.vmem [shape: f32[1,384], index: 5, kind: input, shape index: {}]   ;;  %s6462_s6 = inlined_call_operand.hbm [shape: bf16[128,128], index: 6, kind: input, shape index: {}]   ;;  %s6463_s7 = inlined_call_operand.vmem [shape: f32[1,128], index: 7, kind: input, shape index: {}]   ;;  %s6464_s8 = inlined_call_operand.vmem [shape: f32[1,128], index: 8, kind: input, shape index: {}]   ;;  %s6465_s9 = inlined_call_operand.vmem [shape: f32[1,128], index: 9, kind: input, shape index: {}]   ;;  %s6466_s10 = inlined_call_operand.hbm [shape: bf16[128,512], index: 10, kind: input, shape index: {}]   ;;  %s6467_s11 = inlined_call_operand.vmem [shape: f32[1,512], index: 11, kind: input, shape index: {}]   ;;  %s6468_s12 = inlined_call_operand.hbm [shape: bf16[512,128], index: 12, kind: input, shape index: {}]   ;;  %s6469_s13 = inlined_call_operand.vmem [shape: f32[1,128], index: 13, kind: input, shape index: {}]   ;;  %s6470_s14 = inlined_call_operand.hbm [shape: f32[2,16,128], index: 14, kind: output, shape index: {}]  }
   0x1   :  { %20 = vsyncpa [#allocation6], 0 }
   0x2   :  { %21 = vsyncpa [#allocation9], 0 }
   0x3   :  { %22 = vsyncpa [#allocation12], 0 }
   0x4   :  { %23 = vsyncpa [#allocation4], 0  ;;  %s4980_s29 = smov [#allocation5]   ;;  %s4794_s17 = scalar_lea.hbm %s6457_s1, 128 }
   0x5   :  { %s41_s30 = sshll.u32 %s4980_s29, 4  ;;  %p4795_p0 = scmp.ne.s32.totalorder %s6457_s1, %s4794_s17  ;;  %s42_s30 = int_to_ptr.vmem [resolvable:$true] %s41_s30 }
   0x6   :  { %p4798_p1 = scmp.lt.u32.totalorder %s4794_s17, %s6457_s1 }
   0x8   :  { %p4800_p2 = pnand %p4798_p1, %p4795_p0 }
   0xa   :  { %4803 = shalt.err (!%p4800_p2)
}
   0xb   :  { %s4804_s22 = scalar_lea.vmem %s42_s30, 128  ;;  %p4809_p4 = scmp.lt.s32.totalorder %s42_s30, %s42_s30 }
   0xc   :  { %p4805_p3 = scmp.ne.s32.totalorder %s42_s30, %s4804_s22  ;;  %p4810_p5 = scmp.lt.s32.totalorder %s4804_s22, %s4804_s22 }
   0xe   :  { %p4811_p6 = por %p4810_p5, %p4809_p4 }
  0x10   :  { %p4812_p7 = pnand %p4811_p6, %p4805_p3 }
  0x12   :  { %4815 = shalt.err (!%p4812_p7)
}
  0x13   :  { %s4981_s23 = smov 16   ;;  %s4982_s24 = smov 1  }
  0x14   :  { %47 = dma.hbm_to_vmem [thread:$0]  %s6457_s1, 128, %s42_s30, [#allocation6], %s4981_s23, %s4981_s23, %s4982_s24  }
  0x15   :  { %s4983_s27 = smov [#allocation8]   ;;  %s4816_s16 = scalar_lea.hbm %s6460_s4, 3072 }
  0x16   :  { %s65_s28 = sshll.u32 %s4983_s27, 4  ;;  %p4817_p8 = scmp.ne.s32.totalorder %s6460_s4, %s4816_s16  ;;  %s66_s28 = int_to_ptr.vmem [resolvable:$true] %s65_s28 }
  0x17   :  { %p4820_p9 = scmp.lt.u32.totalorder %s4816_s16, %s6460_s4 }
  0x19   :  { %p4822_p10 = pnand %p4820_p9, %p4817_p8 }
  0x1b   :  { %4825 = shalt.err (!%p4822_p10)
}
  0x1c   :  { %s4826_s21 = scalar_lea.vmem %s66_s28, 3072  ;;  %p4831_p12 = scmp.lt.s32.totalorder %s66_s28, %s66_s28 }
  0x1d   :  { %p4827_p11 = scmp.ne.s32.totalorder %s66_s28, %s4826_s21  ;;  %p4832_p13 = scmp.lt.s32.totalorder %s4826_s21, %s4826_s21 }
  0x1f   :  { %p4833_p0 = por %p4832_p13, %p4831_p12 }
  0x21   :  { %p4834_p1 = pnand %p4833_p0, %p4827_p11 }
  0x23   :  { %4837 = shalt.err (!%p4834_p1)
}
  0x24   :  { %s4984_s1 = smov 192   ;;  %s4985_s30 = smov 12  }
  0x25   :  { %71 = dma.hbm_to_vmem [thread:$0]  %s6460_s4, 3072, %s66_s28, [#allocation9], %s4984_s1, %s4984_s1, %s4985_s30  }
  0x26   :  { %s4986_s25 = smov [#allocation11]   ;;  %s4987_s27 = smov [#allocation2]  }
  0x27   :  { %s97_s26 = sshll.u32 %s4986_s25, 4  ;;  %s29_s29 = sshll.u32 %s4987_s27, 4  ;;  %s98_s26 = int_to_ptr.vmem [resolvable:$true] %s97_s26  ;;  %s30_s29 = int_to_ptr.vmem [resolvable:$true] %s29_s29 }
  0x28   :  { %s4838_s17 = scalar_lea.hbm %s6466_s10, 4096 }
  0x29   :  { %p4839_p2 = scmp.ne.s32.totalorder %s6466_s10, %s4838_s17  ;;  %p4842_p3 = scmp.lt.u32.totalorder %s4838_s17, %s6466_s10 }
  0x2b   :  { %p4844_p4 = pnand %p4842_p3, %p4839_p2 }
  0x2d   :  { %4847 = shalt.err (!%p4844_p4)
}
  0x2e   :  { %s4848_s4 = scalar_lea.vmem %s98_s26, 4096  ;;  %p4853_p6 = scmp.lt.s32.totalorder %s98_s26, %s98_s26 }
  0x2f   :  { %p4849_p5 = scmp.ne.s32.totalorder %s98_s26, %s4848_s4  ;;  %p4854_p7 = scmp.lt.s32.totalorder %s4848_s4, %s4848_s4 }
  0x31   :  { %p4855_p8 = por %p4854_p7, %p4853_p6 }
  0x33   :  { %p4856_p9 = pnand %p4855_p8, %p4849_p5 }
  0x35   :  { %4859 = shalt.err (!%p4856_p9)
}
  0x36   :  { %s4988_s28 = smov 256   ;;  %s4860_s25 = scalar_lea.hbm %s6456_s0, 512 }
  0x37   :  { %103 = dma.hbm_to_vmem [thread:$0]  %s6466_s10, 4096, %s98_s26, [#allocation12], %s4988_s28, %s4988_s28, %s4981_s23  }
  0x38   :  { %p4861_p10 = scmp.ne.s32.totalorder %s6456_s0, %s4860_s25  ;;  %p4864_p11 = scmp.lt.u32.totalorder %s4860_s25, %s6456_s0 }
  0x3a   :  { %p4866_p12 = pnand %p4864_p11, %p4861_p10 }
  0x3c   :  { %4869 = shalt.err (!%p4866_p12)
}
  0x3d   :  { %s4870_s18 = scalar_lea.vmem %s30_s29, 512  ;;  %p4875_p0 = scmp.lt.s32.totalorder %s30_s29, %s30_s29 }
  0x3e   :  { %p4871_p13 = scmp.ne.s32.totalorder %s30_s29, %s4870_s18  ;;  %p4876_p1 = scmp.lt.s32.totalorder %s4870_s18, %s4870_s18 }
  0x40   :  { %p4877_p2 = por %p4876_p1, %p4875_p0 }
  0x42   :  { %p4878_p3 = pnand %p4877_p2, %p4871_p13 }
  0x44   :  { %4881 = shalt.err (!%p4878_p3)
}
  0x45   :  { %s4989_s10 = smov 128   ;;  %s4990_s23 = smov 8  }
  0x46   :  { %35 = dma.hbm_to_vmem [thread:$0]  %s6456_s0, 512, %s30_s29, [#allocation3], %s4989_s10, %s4989_s10, %s4990_s23  }
  0x47   :  { %s4991_s20 = smov [#allocation7]   ;;  %s4992_s4 = smov [#allocation10]  }
  0x48   :  { %s54_s21 = sshll.u32 %s4991_s20, 4  ;;  %s79_s28 = sshll.u32 %s4992_s4, 4  ;;  %s55_s21 = int_to_ptr.vmem [resolvable:$true] %s54_s21  ;;  %s80_s28 = int_to_ptr.vmem [resolvable:$true] %s79_s28 }
  0x49   :  { %s4882_s22 = scalar_lea.hbm %s6458_s2, 16 }
  0x4a   :  { %p4883_p4 = scmp.ne.s32.totalorder %s6458_s2, %s4882_s22  ;;  %p4886_p5 = scmp.lt.u32.totalorder %s4882_s22, %s6458_s2 }
  0x4c   :  { %p4888_p6 = pnand %p4886_p5, %p4883_p4 }
  0x4e   :  { %4891 = shalt.err (!%p4888_p6)
}
  0x4f   :  { %s4892_s0 = scalar_lea.vmem %s55_s21, 16  ;;  %s4896_s29 = scalar_lea.vmem %s55_s21, 32 }
  0x50   :  { %p4893_p7 = scmp.ne.s32.totalorder %s55_s21, %s4892_s0  ;;  %p4897_p8 = scmp.lt.s32.totalorder %s55_s21, %s55_s21 }
  0x51   :  { %p4898_p9 = scmp.lt.s32.totalorder %s4896_s29, %s4892_s0 }
  0x53   :  { %p4899_p10 = por %p4898_p9, %p4897_p8 }
  0x55   :  { %p4900_p11 = pnand %p4899_p10, %p4893_p7 }
  0x57   :  { %4903 = shalt.err (!%p4900_p11)
}
  0x58   :  { %57 = dma.hbm_to_vmem [thread:$0]  %s6458_s2, 16, %s55_s21, [#allocation6]  }
  0x59   :  { %s4904_s19 = scalar_lea.hbm %s6462_s6, 1024 }
  0x5a   :  { %p4905_p12 = scmp.ne.s32.totalorder %s6462_s6, %s4904_s19  ;;  %p4908_p13 = scmp.lt.u32.totalorder %s4904_s19, %s6462_s6 }
  0x5c   :  { %p4910_p0 = pnand %p4908_p13, %p4905_p12 }
  0x5e   :  { %4913 = shalt.err (!%p4910_p0)
}
  0x5f   :  { %s4914_s22 = scalar_lea.vmem %s80_s28, 1024  ;;  %p4919_p2 = scmp.lt.s32.totalorder %s80_s28, %s80_s28 }
  0x60   :  { %p4915_p1 = scmp.ne.s32.totalorder %s80_s28, %s4914_s22  ;;  %p4920_p3 = scmp.lt.s32.totalorder %s4914_s22, %s4914_s22 }
  0x62   :  { %p4921_p4 = por %p4920_p3, %p4919_p2 }
  0x64   :  { %p4922_p5 = pnand %p4921_p4, %p4915_p1 }
  0x66   :  { %4925 = shalt.err (!%p4922_p5)
}
  0x67   :  { %s4993_s2 = smov 64   ;;  %s4994_s21 = smov 4  }
  0x68   :  { %85 = dma.hbm_to_vmem [thread:$0]  %s6462_s6, 1024, %s80_s28, [#allocation9], %s4993_s2, %s4993_s2, %s4994_s21  }
  0x69   :  { %s4995_s27 = smov [#allocation13]   ;;  %s4926_s16 = scalar_lea.hbm %s6468_s12, 4096 }
  0x6a   :  { %s111_s15 = sshll.u32 %s4995_s27, 4  ;;  %p4927_p6 = scmp.ne.s32.totalorder %s6468_s12, %s4926_s16  ;;  %s112_s15 = int_to_ptr.vmem [resolvable:$true] %s111_s15 }
  0x6b   :  { %p4930_p7 = scmp.lt.u32.totalorder %s4926_s16, %s6468_s12 }
  0x6d   :  { %p4932_p8 = pnand %p4930_p7, %p4927_p6 }
  0x6f   :  { %4935 = shalt.err (!%p4932_p8)
}
  0x70   :  { %s4936_s20 = scalar_lea.vmem %s112_s15, 4096  ;;  %p4941_p10 = scmp.lt.s32.totalorder %s112_s15, %s112_s15 }
  0x71   :  { %p4937_p9 = scmp.ne.s32.totalorder %s112_s15, %s4936_s20  ;;  %p4942_p11 = scmp.lt.s32.totalorder %s4936_s20, %s4936_s20 }
  0x73   :  { %p4943_p12 = por %p4942_p11, %p4941_p10 }
  0x75   :  { %p4944_p13 = pnand %p4943_p12, %p4937_p9 }
  0x77   :  { %4947 = shalt.err (!%p4944_p13)
}
  0x78   :  { %117 = dma.hbm_to_vmem [thread:$0]  %s6468_s12, 4096, %s112_s15, [#allocation12], %s4993_s2, %s4993_s2, %s4994_s21  }
  0x79   :  { %4970 = dma.done.wait [#allocation3], 512  }
  0x7a   :  { %4971 = vsyncadd [#allocation3], 4294966784 }
  0x7b   :  { %4972 = dma.done.wait [#allocation6], 144  }
  0x7c   :  { %4973 = vsyncadd [#allocation6], 4294967152 }
  0x7d   :  { %4974 = dma.done.wait [#allocation9], 4096  }
  0x7e   :  { %4975 = vsyncadd [#allocation9], 4294963200 }
  0x7f   :  { %4976 = dma.done.wait [#allocation12], 8192  }
  0x80   :  { %4977 = vsyncadd [#allocation12], 4294959104  ;;  %v142_v0 = vld [vmem:[#allocation2] sm:$0xff]  ;;  %v143_v1 = vld [vmem:[#allocation2 + $0x8] sm:$0xff]  ;;  %v6474_v30 = vmov 0   ;;  %v6476_v62 = vmov 0.0  }
  0x81   :  { %156 = vadd.xlane.f32.xlu0 %v142_v0  ;;  %v144_v2 = vld [vmem:[#allocation2 + $0x10] sm:$0xff]  ;;  %v145_v17 = vld [vmem:[#allocation2 + $0x18] sm:$0xff]  ;;  %432 = vmatprep.mubr.bf16.mxu0 %v6474_v30  ;;  %v3872_v48 = vld [vmem:[#allocation7] ss:$0 sm:$0xff]  ;;  %vm4998_vm0 = vmmov 0   ;;  %vm943_vm1 = vcmask 130048  }
  0x82   :  { %v4446_v3 = vld [vmem:[#allocation8 + $0x4] ss:$12 sps:$4 sm:$0xff]   ;;  %v4448_v4 = vld [vmem:[#allocation8] ss:$12 sps:$4 sm:$0xff]   ;;  %v4449_v5 = vld [vmem:[#allocation8 + $0x1c] ss:$12 sps:$4 sm:$0xff]  }
  0x83   :  { %400 = vmatprep.subr.bf16.mxu0 %v4446_v3  ;;  %v4451_v19 = vld [vmem:[#allocation8 + $0x18] ss:$12 sps:$4 sm:$0xff]   ;;  %v4452_v20 = vld [vmem:[#allocation8 + $0x34] ss:$12 sps:$4 sm:$0xff]   ;;  %v4454_v21 = vld [vmem:[#allocation8 + $0x30] ss:$12 sps:$4 sm:$0xff]  }
  0x84   :  { %401 = vmatpush1.bf16.msra.mxu0 %v4448_v4  ;;  %v4455_v22 = vld [vmem:[#allocation8 + $0x4c] ss:$12 sps:$4 sm:$0xff]   ;;  %v4457_v23 = vld [vmem:[#allocation8 + $0x48] ss:$12 sps:$4 sm:$0xff]   ;;  %v4458_v24 = vld [vmem:[#allocation8 + $0x64] ss:$12 sps:$4 sm:$0xff]  }
  0x85   :  { %158 = vadd.xlane.f32.xlu0 %v143_v1  ;;  %402 = vmatprep.subr.bf16.mxu0 %v4449_v5  ;;  %v4460_v25 = vld [vmem:[#allocation8 + $0x60] ss:$12 sps:$4 sm:$0xff]   ;;  %v4461_v26 = vld [vmem:[#allocation8 + $0x7c] ss:$12 sps:$4 sm:$0xff]   ;;  %v4463_v27 = vld [vmem:[#allocation8 + $0x78] ss:$12 sps:$4 sm:$0xff]  }
  0x86   :  { %v4464_v28 = vld [vmem:[#allocation8 + $0x94] ss:$12 sps:$4 sm:$0xff]   ;;  %v4466_v29 = vld [vmem:[#allocation8 + $0x90] ss:$12 sps:$4 sm:$0xff]   ;;  %v4467_v31 = vld [vmem:[#allocation8 + $0xac] ss:$12 sps:$4 sm:$0xff]  }
  0x87   :  { %v4469_v32 = vld [vmem:[#allocation8 + $0xa8] ss:$12 sps:$4 sm:$0xff]   ;;  %v4471_v34 = vld [vmem:[#allocation8 + $0x20] ss:$12 sps:$4 sm:$0xff]   ;;  %v4472_v35 = vld [vmem:[#allocation8 + $0x38] ss:$12 sps:$4 sm:$0xff]  }
  0x88   :  { %403 = vmatpush1.bf16.msra.mxu0 %v4451_v19  ;;  %v4470_v33 = vld [vmem:[#allocation8 + $0x8] ss:$12 sps:$4 sm:$0xff]   ;;  %v4473_v57 = vld [vmem:[#allocation8 + $0x50] ss:$12 sps:$4 sm:$0xff]   ;;  %v4475_v59 = vld [vmem:[#allocation8 + $0x80] ss:$12 sps:$4 sm:$0xff]  }
  0x89   :  { %160 = vadd.xlane.f32.xlu0 %v144_v2  ;;  %404 = vmatprep.subr.bf16.mxu0 %v4452_v20  ;;  %v3873_v52 = vld [vmem:[%s6459_s3] ss:$0 sm:$0xff]  ;;  %v4476_v60 = vld [vmem:[#allocation8 + $0x98] ss:$12 sps:$4 sm:$0xff]   ;;  %v4477_v61 = vld [vmem:[#allocation8 + $0xb0] ss:$12 sps:$4 sm:$0xff]  }
  0x8a   :  { %4138 = vmatprep.subr.bf16.mxu1 %v4470_v33  ;;  %v4474_v58 = vld [vmem:[#allocation8 + $0x68] ss:$12 sps:$4 sm:$0xff]  }
  0x8b   :  { %4139 = vmatpush3.bf16.msra.mxu1 %v4470_v33 }
  0x8c   :  { %405 = vmatpush1.bf16.msra.mxu0 %v4454_v21  ;;  %4140 = vmatprep.subr.bf16.mxu1 %v4471_v34  ;;  %v5210_v21 = vld [vmem:[#allocation5] ss:$0 sm:$0xff] }
  0x8d   :  { %406 = vmatprep.subr.bf16.mxu0 %v4455_v22  ;;  %v5212_v22 = vld [vmem:[#allocation5 + $0x2] ss:$0 sm:$0xff] }
  0x8f   :  { %4141 = vmatpush3.bf16.msra.mxu1 %v4471_v34 }
  0x90   :  { %407 = vmatpush1.bf16.msra.mxu0 %v4457_v23  ;;  %4142 = vmatprep.subr.bf16.mxu1 %v4472_v35 }
  0x91   :  { %408 = vmatprep.subr.bf16.mxu0 %v4458_v24  ;;  %v5214_v24 = vld [vmem:[#allocation5 + $0x1] ss:$0 sm:$0xff] }
  0x93   :  { %4143 = vmatpush3.bf16.msra.mxu1 %v4472_v35 }
  0x94   :  { %409 = vmatpush1.bf16.msra.mxu0 %v4460_v25  ;;  %4144 = vmatprep.subr.bf16.mxu1 %v4473_v57  ;;  %v5216_v25 = vld [vmem:[#allocation5 + $0x4] ss:$0 sm:$0xff] }
  0x95   :  { %410 = vmatprep.subr.bf16.mxu0 %v4461_v26 }
  0x97   :  { %4145 = vmatpush3.bf16.msra.mxu1 %v4473_v57 }
  0x98   :  { %411 = vmatpush1.bf16.msra.mxu0 %v4463_v27  ;;  %4146 = vmatprep.subr.bf16.mxu1 %v4474_v58 }
  0x99   :  { %412 = vmatprep.subr.bf16.mxu0 %v4464_v28  ;;  %v5219_v28 = vld [vmem:[#allocation5 + $0x3] ss:$0 sm:$0xff] }
  0x9b   :  { %4147 = vmatpush3.bf16.msra.mxu1 %v4474_v58 }
  0x9c   :  { %413 = vmatpush1.bf16.msra.mxu0 %v4466_v29  ;;  %4148 = vmatprep.subr.bf16.mxu1 %v4475_v59  ;;  %v5221_v29 = vld [vmem:[#allocation5 + $0x6] ss:$0 sm:$0xff] }
  0x9d   :  { %414 = vmatprep.subr.bf16.mxu0 %v4467_v31 }
  0x9f   :  { %4149 = vmatpush3.bf16.msra.mxu1 %v4475_v59  ;;  %v5240_v59 = vld [vmem:[#allocation5 + $0x7] ss:$0 sm:$0xff] }
  0xa0   :  { %415 = vmatpush1.bf16.msra.mxu0 %v4469_v32  ;;  %4150 = vmatprep.subr.bf16.mxu1 %v4476_v60 }
  0xa1   :  { %4158 = vmatprep.subr.bf16.mxu0 %v6476_v62 }
  0xa3   :  { %4151 = vmatpush3.bf16.msra.mxu1 %v4476_v60 }
  0xa4   :  { %4152 = vmatprep.subr.bf16.mxu1 %v4477_v61 }
  0xa7   :  { %4153 = vmatpush3.bf16.msra.mxu1 %v4477_v61 }
  0xa8   :  { %4170 = vmatprep.subr.bf16.mxu1 %v6476_v62 }
 0x10e   :  { %v157_v6 = vpop.xlane.xlu0 %156 }
 0x10f   :  { %v165_v7 = vmul.f32 0.0078125, %v157_v6 }
 0x111   :  { %v5165_v8 = vsub.f32 %v142_v0, %v165_v7 }
 0x112   :  { %v159_v9 = vpop.xlane.xlu0 %158 }
 0x113   :  { %v166_v10 = vmul.f32 0.0078125, %v159_v9  ;;  %v173_v11 = vmul.f32 %v5165_v8, %v5165_v8 }
 0x115   :  { %v5169_v12 = vsub.f32 %v143_v1, %v166_v10  ;;  %177 = vadd.xlane.f32.xlu1 %v173_v11 }
 0x116   :  { %v161_v13 = vpop.xlane.xlu0 %160 }
 0x117   :  { %v174_v14 = vmul.f32 %v5169_v12, %v5169_v12  ;;  %v167_v15 = vmul.f32 0.0078125, %v161_v13 }
 0x119   :  { %179 = vadd.xlane.f32.xlu1 %v174_v14  ;;  %v5173_v16 = vsub.f32 %v144_v2, %v167_v15  ;;  %v257_v14 = vlaneseq }
 0x11b   :  { %v175_v18 = vmul.f32 %v5173_v16, %v5173_v16  ;;  %v5191_v15 = vshrl.u32 %v257_v14, 7 }
 0x11d   :  { %162 = vadd.xlane.f32.xlu1 %v145_v17  ;;  %181 = vadd.xlane.f32.xlu0 %v175_v18  ;;  %6497 = vst [vmem:[#allocation20_spill] sm:$0xff] %v5191_v15  ;;  %v6471_v18 = vsub.s32 1, %v5191_v15 }
 0x1a2   :  { %v178_v36 = vpop.xlane.xlu1 %177 }
 0x1a3   :  { %v185_v37 = vmul.f32 0.0078125, %v178_v36 }
 0x1a5   :  { %v189_v38 = vadd.f32 1e-05, %v185_v37 }
 0x1a6   :  { %v180_v39 = vpop.xlane.xlu1 %179 }
 0x1a7   :  { %4566 = vrsqrt.f32 %v189_v38  ;;  %v186_v40 = vmul.f32 0.0078125, %v180_v39 }
 0x1a9   :  { %v190_v41 = vadd.f32 1e-05, %v186_v40 }
 0x1aa   :  { %v163_v42 = vpop.xlane.xlu1 %162  ;;  %v182_v63 = vpop.xlane.xlu0 %181 }
 0x1ab   :  { %4568 = vrsqrt.f32 %v190_v41  ;;  %v168_v43 = vmul.f32 0.0078125, %v163_v42  ;;  %v187_v0 = vmul.f32 0.0078125, %v182_v63 }
 0x1ad   :  { %v172_v44 = vsub.f32 %v145_v17, %v168_v43  ;;  %v191_v1 = vadd.f32 1e-05, %v187_v0  ;;  %v5197_v17 = vld [vmem:[%s6461_s5] sm:$0x7] }
 0x1ae   :  { %v5208_v20 = vrot.slane %v5197_v17, %v6471_v18 }
 0x1af   :  { %v176_v45 = vmul.f32 %v172_v44, %v172_v44  ;;  %4570 = vrsqrt.f32 %v191_v1 }
 0x1b1   :  { %v4567_v46 = vpop.eup %4566  ;;  %183 = vadd.xlane.f32.xlu1 %v176_v45 }
 0x1b2   :  { %v197_v47 = vmul.f32 %v4567_v46, %v5165_v8 }
 0x1b4   :  { %v207_v51 = vmul.f32 %v3872_v48, %v197_v47 }
 0x1b5   :  { %v4569_v49 = vpop.eup %4568 }
 0x1b6   :  { %v198_v50 = vmul.f32 %v4569_v49, %v5169_v12  ;;  %v217_v54 = vadd.f32 %v3873_v52, %v207_v51 }
 0x1b8   :  { %v208_v53 = vmul.f32 %v3872_v48, %v198_v50 }
 0x1b9   :  { %v4571_v5 = vpop.eup %4570 }
 0x1ba   :  { %v218_v55 = vadd.f32 %v3873_v52, %v208_v53  ;;  %v199_v6 = vmul.f32 %v4571_v5, %v5173_v16  ;;  %v6473_v16 = vsub.s32 0, %v5191_v15 }
 0x1bc   :  { %v221_v56 = vpack.c.bf16 %v218_v55, %v217_v54  ;;  %v209_v9 = vmul.f32 %v3872_v48, %v199_v6  ;;  %v5203_v19 = vrot.slane %v5197_v17, %v6473_v16  ;;  %v5237_v54 = vld [vmem:[#allocation5 + $0x5] ss:$0 sm:$0xff] }
 0x1be   :  { %433 = vmatmul.mubr.bf16.vlgmr.msra.gmra.mrb[0].mxu0 %v221_v56  ;;  %4154 = vmatprep.mubr.bf16.mxu1 %v221_v56  ;;  %v219_v11 = vadd.f32 %v3873_v52, %v209_v9 }
 0x1bf   :  { %442 = vmatprep.mubr.bf16.mxu0 %v6474_v30 }
 0x23e   :  { %v184_v2 = vpop.xlane.xlu1 %183 }
 0x23f   :  { %v188_v3 = vmul.f32 0.0078125, %v184_v2 }
 0x241   :  { %v192_v4 = vadd.f32 1e-05, %v188_v3 }
 0x243   :  { %4572 = vrsqrt.f32 %v192_v4 }
 0x24d   :  { %v4573_v7 = vpop.eup %4572 }
 0x24e   :  { %v200_v8 = vmul.f32 %v4573_v7, %v172_v44 }
 0x250   :  { %v210_v10 = vmul.f32 %v3872_v48, %v200_v8 }
 0x252   :  { %v220_v12 = vadd.f32 %v3873_v52, %v210_v10 }
 0x254   :  { %v222_v13 = vpack.c.bf16 %v220_v12, %v219_v11 }
 0x256   :  { %443 = vmatmul.mubr.bf16.gmra.mrb[4].mxu0 %v222_v13  ;;  %4155 = vmatmul.mubr.bf16.vlgmr.msra.gmra.mrb[0].mxu1 %v222_v13 }
 0x257   :  { %4160 = vmatprep.mubr.msk.bf16.mxu0 %vm4998_vm0, %v6476_v62  ;;  %4172 = vmatprep.mubr.msk.bf16.mxu1 %vm4998_vm0, %v6476_v62 }
 0x291   :  { %v434_v23 = vpop.f32.mrb[0].mxu0 }
 0x292   :  { %v435_v26 = vadd.f32 %v434_v23, %v5203_v19  ;;  %v436_v27 = vpop.f32.mrb[1].mxu0 }
 0x293   :  { %v437_v31 = vadd.f32 %v436_v27, %v5208_v20  ;;  %v438_v32 = vpop.f32.mrb[2].mxu0 }
 0x294   :  { %v439_v33 = vadd.f32 %v438_v32, %v5203_v19  ;;  %v440_v34 = vpop.f32.mrb[3].mxu0  ;;  %v550_v35 = vmul.f32 %v5210_v21, %v435_v26  ;;  %v554_v36 = vmul.f32 %v5212_v22, %v435_v26  ;;  %v552_v37 = vmul.f32 %v5214_v24, %v435_v26 }
 0x295   :  { %v441_v38 = vadd.f32 %v440_v34, %v5208_v20  ;;  %v558_v39 = vmul.f32 %v5216_v25, %v435_v26  ;;  %v556_v40 = vmul.f32 %v5219_v28, %v435_v26  ;;  %v562_v41 = vmul.f32 %v5221_v29, %v435_v26 }
 0x296   :  { %v551_v42 = vmul.f32 %v5210_v21, %v439_v33  ;;  %v566_v43 = vmul.f32 0.25, %v550_v35  ;;  %v555_v44 = vmul.f32 %v5212_v22, %v439_v33  ;;  %v570_v45 = vmul.f32 0.25, %v554_v36 }
 0x297   :  { %v590_v46 = vpack.c.bf16 %v441_v38, %v437_v31  ;;  %v553_v47 = vmul.f32 %v5214_v24, %v439_v33  ;;  %v568_v48 = vmul.f32 0.25, %v552_v37  ;;  %v559_v49 = vmul.f32 %v5216_v25, %v439_v33 }
 0x298   :  { %v567_v50 = vmul.f32 0.25, %v551_v42  ;;  %v571_v51 = vmul.f32 0.25, %v555_v44  ;;  %v574_v52 = vmul.f32 0.25, %v558_v39  ;;  %v557_v53 = vmul.f32 %v5219_v28, %v439_v33 }
 0x299   :  { %4159 = vmatpush3.bf16.xpose.msra.mxu0 %v590_v46  ;;  %4171 = vmatpush3.bf16.xpose.msra.mxu1 %v590_v46  ;;  %v569_v55 = vmul.f32 0.25, %v553_v47  ;;  %v575_v56 = vmul.f32 0.25, %v559_v49  ;;  %v572_v57 = vmul.f32 0.25, %v556_v40  ;;  %v563_v58 = vmul.f32 %v5221_v29, %v439_v33 }
 0x29a   :  { %v582_v60 = vpack.c.bf16 %v567_v50, %v566_v43  ;;  %4164 = vmatprep.subr.bf16.mxu0 %v6476_v62  ;;  %v584_v61 = vpack.c.bf16 %v571_v51, %v570_v45  ;;  %4182 = vmatprep.subr.bf16.mxu1 %v6476_v62  ;;  %v573_v63 = vmul.f32 0.25, %v557_v53  ;;  %v578_v0 = vmul.f32 0.25, %v562_v41 }
 0x29b   :  { %v583_v1 = vpack.c.bf16 %v569_v55, %v568_v48  ;;  %v586_v2 = vpack.c.bf16 %v575_v56, %v574_v52  ;;  %v579_v3 = vmul.f32 0.25, %v563_v58  ;;  %v560_v4 = vmul.f32 %v5237_v54, %v435_v26 }
 0x29c   :  { %v585_v5 = vpack.c.bf16 %v573_v63, %v572_v57  ;;  %v561_v6 = vmul.f32 %v5237_v54, %v439_v33  ;;  %v564_v7 = vmul.f32 %v5240_v59, %v435_v26  ;;  %v565_v8 = vmul.f32 %v5240_v59, %v439_v33 }
 0x29d   :  { %v588_v9 = vpack.c.bf16 %v579_v3, %v578_v0  ;;  %v576_v10 = vmul.f32 0.25, %v560_v4  ;;  %v6472_v26 = vsub.s32 2, %v5191_v15 }
 0x29e   :  { %v577_v11 = vmul.f32 0.25, %v561_v6  ;;  %v580_v12 = vmul.f32 0.25, %v564_v7  ;;  %v581_v13 = vmul.f32 0.25, %v565_v8 }
 0x29f   :  { %v268_v27 = vrot.slane %v5197_v17, %v6472_v26 }
 0x2a0   :  { %4161 = vmatmul.mubr.bf16.vlgmr.msra.gmra.mrb[8].mxu0 %v582_v60  ;;  %4173 = vmatmul.mubr.bf16.vlgmr.msra.gmra.mrb[4].mxu1 %v584_v61  ;;  %v587_v14 = vpack.c.bf16 %v577_v11, %v576_v10  ;;  %v589_v23 = vpack.c.bf16 %v581_v13, %v580_v12 }
 0x2a1   :  { %4165 = vmatpush3.bf16.xpose.msra.mxu0 %v590_v46  ;;  %4183 = vmatpush3.bf16.xpose.msra.mxu1 %v590_v46 }
 0x2a2   :  { %4166 = vmatprep.mubr.msk.bf16.mxu0 %vm4998_vm0, %v6476_v62  ;;  %4184 = vmatprep.mubr.msk.bf16.mxu1 %vm4998_vm0, %v6476_v62 }
 0x2a3   :  { %4176 = vmatprep.subr.bf16.mxu0 %v6476_v62  ;;  %4194 = vmatprep.subr.bf16.mxu1 %v6476_v62 }
 0x2a8   :  { %4167 = vmatmul.mubr.bf16.vlgmr.msra.gmra.mrb[12].mxu0 %v583_v1  ;;  %4185 = vmatmul.mubr.bf16.vlgmr.msra.gmra.mrb[8].mxu1 %v586_v2 }
 0x2a9   :  { %4177 = vmatpush3.bf16.xpose.msra.mxu0 %v590_v46  ;;  %4195 = vmatpush3.bf16.xpose.msra.mxu1 %v590_v46 }
 0x2aa   :  { %4178 = vmatprep.mubr.msk.bf16.mxu0 %vm4998_vm0, %v6476_v62  ;;  %4196 = vmatprep.mubr.msk.bf16.mxu1 %vm4998_vm0, %v6476_v62 }
 0x2ab   :  { %4188 = vmatprep.subr.bf16.mxu0 %v6476_v62  ;;  %4206 = vmatprep.subr.bf16.mxu1 %v6476_v62 }
 0x2b0   :  { %4179 = vmatmul.mubr.bf16.vlgmr.msra.gmra.mrb[16].mxu0 %v585_v5  ;;  %4197 = vmatmul.mubr.bf16.vlgmr.msra.gmra.mrb[12].mxu1 %v588_v9 }
 0x2b1   :  { %4189 = vmatpush3.bf16.xpose.msra.mxu0 %v590_v46  ;;  %4190 = vmatprep.mubr.msk.bf16.mxu0 %vm4998_vm0, %v6476_v62 }
 0x2b2   :  { %4200 = vmatprep.subr.bf16.mxu0 %v6476_v62  ;;  %4208 = vmatprep.mubr.msk.bf16.mxu1 %vm4998_vm0, %v6476_v62 }
 0x2b8   :  { %4191 = vmatmul.mubr.bf16.vlgmr.msra.gmra.mrb[20].mxu0 %v587_v14 }
 0x2b9   :  { %4201 = vmatpush3.bf16.xpose.msra.mxu0 %v590_v46  ;;  %4202 = vmatprep.mubr.msk.bf16.mxu0 %vm4998_vm0, %v6476_v62 }
 0x2ba   :  { %4254 = vmatprep.subr.bf16.mxu0 %v6476_v62 }
 0x2c0   :  { %4203 = vmatmul.mubr.bf16.vlgmr.msra.gmra.mrb[24].mxu0 %v589_v23 }
 0x2c1   :  { %4256 = vmatprep.mubr.msk.bf16.mxu0 %vm4998_vm0, %v6476_v62 }
 0x329   :  { %v444_v31 = vpop.f32.mrb[4].mxu0  ;;  %v4156_v32 = vpop.f32.mrb[0].mxu1 }
 0x32a   :  { %v445_v33 = vadd.f32 %v444_v31, %v5203_v19  ;;  %v5275_v34 = vadd.f32 %v4156_v32, %v268_v27  ;;  %v446_v35 = vpop.f32.mrb[5].mxu0  ;;  %v487_v36 = vpop.f32.mrb[1].mxu1 }
 0x32b   :  { %v447_v37 = vadd.f32 %v446_v35, %v5208_v20  ;;  %v5278_v38 = vadd.f32 %v487_v36, %v268_v27  ;;  %v448_v39 = vpop.f32.mrb[6].mxu0  ;;  %v4157_v40 = vpop.f32.mrb[2].mxu1 }
 0x32c   :  { %v449_v41 = vadd.f32 %v448_v39, %v5203_v19  ;;  %v5281_v42 = vadd.f32 %v4157_v40, %v268_v27  ;;  %v450_v43 = vpop.f32.mrb[7].mxu0  ;;  %v490_v17 = vpop.f32.mrb[3].mxu1  ;;  %v1494_v44 = vmul.f32 %v5210_v21, %v445_v33  ;;  %v1496_v45 = vmul.f32 %v5214_v24, %v445_v33 }
 0x32d   :  { %v451_v46 = vadd.f32 %v450_v43, %v5208_v20  ;;  %v5286_v47 = vadd.f32 %v490_v17, %v268_v27  ;;  %v591_v48 = vmul.f32 %v5210_v21, %v5278_v38  ;;  %v1498_v49 = vmul.f32 %v5212_v22, %v445_v33 }
 0x32e   :  { %v1495_v50 = vmul.f32 %v5210_v21, %v449_v41  ;;  %v1510_v19 = vmul.f32 0.25, %v1494_v44  ;;  %v1497_v51 = vmul.f32 %v5214_v24, %v449_v41  ;;  %v5293_v52 = vmul.f32 0.25, %v1496_v45 }
 0x32f   :  { %v5295_v53 = vpack.c.bf16 %v451_v46, %v447_v37  ;;  %v592_v55 = vmul.f32 %v5210_v21, %v5286_v47  ;;  %v1499_v20 = vmul.f32 %v5212_v22, %v449_v41  ;;  %v5300_v56 = vmul.f32 0.25, %v1498_v49 }
 0x330   :  { %v1511_v57 = vmul.f32 0.25, %v1495_v50  ;;  %v5302_v58 = vmul.f32 0.25, %v1497_v51  ;;  %v1500_v60 = vmul.f32 %v5219_v28, %v445_v33  ;;  %v1501_v61 = vmul.f32 %v5219_v28, %v449_v41 }
 0x331   :  { %4255 = vmatpush3.bf16.xpose.msra.mxu0 %v5295_v53  ;;  %v607_v63 = vpack.c.bf16 %v592_v55, %v591_v48  ;;  %v5307_v0 = vmul.f32 0.25, %v1499_v20  ;;  %v1502_v1 = vmul.f32 %v5216_v25, %v445_v33  ;;  %v1503_v2 = vmul.f32 %v5216_v25, %v449_v41 }
 0x332   :  { %v1526_v3 = vpack.c.bf16 %v1511_v57, %v1510_v19  ;;  %4260 = vmatprep.subr.bf16.mxu0 %v6476_v62  ;;  %v1527_v4 = vpack.c.bf16 %v5302_v58, %v5293_v52  ;;  %v5314_v5 = vmul.f32 0.25, %v1500_v60  ;;  %v5316_v6 = vmul.f32 0.25, %v1501_v61 }
 0x333   :  { %4207 = vmatpush3.bf16.msra.mxu1 %v607_v63  ;;  %v1528_v7 = vpack.c.bf16 %v5307_v0, %v5300_v56  ;;  %v5320_v8 = vmul.f32 0.25, %v1502_v1  ;;  %v5322_v9 = vmul.f32 0.25, %v1503_v2  ;;  %v1504_v10 = vmul.f32 %v5237_v54, %v445_v33 }
 0x334   :  { %v1529_v11 = vpack.c.bf16 %v5316_v6, %v5314_v5  ;;  %v1505_v12 = vmul.f32 %v5237_v54, %v449_v41  ;;  %v1506_v13 = vmul.f32 %v5221_v29, %v445_v33  ;;  %v1507_v14 = vmul.f32 %v5221_v29, %v449_v41  ;;  %4212 = vmatprep.subr.bf16.mxu1 %v6476_v62 }
 0x335   :  { %v1530_v23 = vpack.c.bf16 %v5322_v9, %v5320_v8  ;;  %v5333_v27 = vmul.f32 0.25, %v1504_v10  ;;  %v1508_v31 = vmul.f32 %v5240_v59, %v445_v33  ;;  %v1509_v32 = vmul.f32 %v5240_v59, %v449_v41 }
 0x336   :  { %v5337_v35 = vmul.f32 0.25, %v1505_v12  ;;  %v5339_v36 = vmul.f32 0.25, %v1506_v13  ;;  %v5341_v37 = vmul.f32 0.25, %v1507_v14  ;;  %v5345_v39 = vmul.f32 %v5214_v24, %v5278_v38 }
 0x337   :  { %v5347_v40 = vmul.f32 0.25, %v1508_v31  ;;  %v5349_v43 = vmul.f32 0.25, %v1509_v32  ;;  %v5353_v17 = vmul.f32 %v5214_v24, %v5286_v47  ;;  %v5357_v33 = vmul.f32 %v5212_v22, %v5278_v38 }
 0x338   :  { %4257 = vmatmul.mubr.bf16.vlgmr.msra.gmra.mrb[28].mxu0 %v1526_v3  ;;  %v1531_v41 = vpack.c.bf16 %v5337_v35, %v5333_v27  ;;  %v1532_v44 = vpack.c.bf16 %v5341_v37, %v5339_v36  ;;  %v5365_v45 = vmul.f32 %v5212_v22, %v5286_v47  ;;  %v5369_v46 = vmul.f32 %v5219_v28, %v5278_v38 }
 0x339   :  { %4261 = vmatpush3.bf16.xpose.msra.mxu0 %v5295_v53  ;;  %4262 = vmatprep.mubr.msk.bf16.mxu0 %vm4998_vm0, %v6476_v62  ;;  %v1533_v48 = vpack.c.bf16 %v5349_v43, %v5347_v40  ;;  %v5380_v50 = vmul.f32 %v5219_v28, %v5286_v47  ;;  %v5387_v51 = vmul.f32 %v5216_v25, %v5278_v38 }
 0x33a   :  { %4266 = vmatprep.subr.bf16.mxu0 %v6476_v62  ;;  %v5391_v52 = vmul.f32 %v5216_v25, %v5286_v47  ;;  %v5395_v55 = vmul.f32 %v5237_v54, %v5278_v38  ;;  %v5401_v57 = vmul.f32 %v5237_v54, %v5286_v47  ;;  %v5405_v58 = vmul.f32 %v5221_v29, %v5278_v38 }
 0x33b   :  { %v5409_v60 = vmul.f32 %v5221_v29, %v5286_v47  ;;  %v5415_v63 = vmul.f32 %v5240_v59, %v5278_v38  ;;  %v5419_v1 = vmul.f32 %v5240_v59, %v5286_v47  ;;  %v5423_v2 = vmul.f32 %v5210_v21, %v5275_v34 }
 0x33c   :  { %v5431_v12 = vmul.f32 %v5210_v21, %v5281_v42  ;;  %v5435_v38 = vmul.f32 %v5214_v24, %v5275_v34  ;;  %v5441_v13 = vmul.f32 %v5214_v24, %v5281_v42  ;;  %v5445_v14 = vmul.f32 %v5212_v22, %v5275_v34 }
 0x33d   :  { %v5449_v31 = vmul.f32 %v5212_v22, %v5281_v42  ;;  %v5455_v32 = vmul.f32 %v5219_v28, %v5275_v34  ;;  %v5459_v18 = vmul.f32 %v5219_v28, %v5281_v42  ;;  %v5463_v24 = vmul.f32 %v5216_v25, %v5275_v34 }
 0x33e   :  { %6498 = vst [vmem:[#allocation21_spill] sm:$0xff] %v5445_v14  ;;  %v5471_v16 = vmul.f32 %v5216_v25, %v5281_v42  ;;  %v5475_v30 = vmul.f32 %v5237_v54, %v5275_v34  ;;  %v5488_v25 = vmul.f32 %v5221_v29, %v5275_v34  ;;  %v5495_v22 = vmul.f32 %v5221_v29, %v5281_v42 }
 0x33f   :  { %6499 = vst [vmem:[#allocation22_spill] sm:$0xff] %v5455_v32  ;;  %6500 = vst [vmem:[#allocation23_spill] sm:$0xff] %v5459_v18  ;;  %v5499_v28 = vmul.f32 %v5240_v59, %v5275_v34 }
 0x340   :  { %6501 = vst [vmem:[#allocation24_spill] sm:$0xff] %v5463_v24  ;;  %4263 = vmatmul.mubr.bf16.vlgmr.msra.gmra.mrb[32].mxu0 %v1527_v4  ;;  %6502 = vst [vmem:[#allocation25_spill] sm:$0xff] %v5471_v16  ;;  %v5484_v4 = vmul.f32 %v5237_v54, %v5281_v42  ;;  %v5503_v54 = vmul.f32 %v5240_v59, %v5281_v42 }
 0x341   :  { %6503 = vst [vmem:[#allocation26_spill] sm:$0xff] %v5475_v30  ;;  %4267 = vmatpush3.bf16.xpose.msra.mxu0 %v5295_v53  ;;  %4268 = vmatprep.mubr.msk.bf16.mxu0 %vm4998_vm0, %v6476_v62  ;;  %6505 = vst [vmem:[#allocation28_spill] sm:$0xff] %v5488_v25 }
 0x342   :  { %6504 = vst [vmem:[#allocation27_spill] sm:$0xff] %v5484_v4  ;;  %4272 = vmatprep.subr.bf16.mxu0 %v6476_v62  ;;  %6506 = vst [vmem:[#allocation29_spill] sm:$0xff] %v5495_v22 }
 0x343   :  { %6507 = vst [vmem:[#allocation30_spill] sm:$0xff] %v5499_v28  ;;  %6508 = vst [vmem:[#allocation31_spill] sm:$0xff] %v5503_v54 }
 0x348   :  { %4269 = vmatmul.mubr.bf16.vlgmr.msra.gmra.mrb[36].mxu0 %v1528_v7 }
 0x349   :  { %4273 = vmatpush3.bf16.xpose.msra.mxu0 %v5295_v53  ;;  %4274 = vmatprep.mubr.msk.bf16.mxu0 %vm4998_vm0, %v6476_v62 }
 0x34a   :  { %4278 = vmatprep.subr.bf16.mxu0 %v6476_v62 }
 0x350   :  { %4275 = vmatmul.mubr.bf16.vlgmr.msra.gmra.mrb[40].mxu0 %v1529_v11 }
 0x351   :  { %4279 = vmatpush3.bf16.xpose.msra.mxu0 %v5295_v53  ;;  %4280 = vmatprep.mubr.msk.bf16.mxu0 %vm4998_vm0, %v6476_v62 }
 0x352   :  { %4284 = vmatprep.subr.bf16.mxu0 %v6476_v62 }
 0x358   :  { %4281 = vmatmul.mubr.bf16.vlgmr.msra.gmra.mrb[44].mxu0 %v1530_v23 }
 0x359   :  { %4285 = vmatpush3.bf16.xpose.msra.mxu0 %v5295_v53  ;;  %4286 = vmatprep.mubr.msk.bf16.mxu0 %vm4998_vm0, %v6476_v62 }
 0x35a   :  { %4290 = vmatprep.subr.bf16.mxu0 %v6476_v62 }
 0x360   :  { %4287 = vmatmul.mubr.bf16.vlgmr.msra.gmra.mrb[48].mxu0 %v1531_v41 }
 0x361   :  { %4291 = vmatpush3.bf16.xpose.msra.mxu0 %v5295_v53  ;;  %4292 = vmatprep.mubr.msk.bf16.mxu0 %vm4998_vm0, %v6476_v62 }
 0x362   :  { %4296 = vmatprep.subr.bf16.mxu0 %v6476_v62 }
 0x368   :  { %4293 = vmatmul.mubr.bf16.vlgmr.msra.gmra.mrb[52].mxu0 %v1532_v44 }
 0x369   :  { %4297 = vmatpush3.bf16.xpose.msra.mxu0 %v5295_v53  ;;  %4298 = vmatprep.mubr.msk.bf16.mxu0 %vm4998_vm0, %v6476_v62 }
 0x370   :  { %4299 = vmatmul.mubr.bf16.vlgmr.msra.gmra.mrb[56].mxu0 %v1533_v48 }
 0x373   :  { %v5548_v29 = vpop.f32.mrb[8].mxu0  ;;  %v5550_v59 = vpop.f32.mrb[4].mxu1 }
 0x374   :  { %v4162_v34 = vpop.f32.mrb[9].mxu0  ;;  %v4174_v42 = vpop.f32.mrb[5].mxu1  ;;  %v944_v56 = vsel %vm943_vm1, %v5548_v29, -inf  ;;  %v956_v41 = vsel %vm943_vm1, %v5550_v59, -inf }
 0x375   :  { %v5554_v0 = vpop.f32.mrb[6].mxu1  ;;  %945 = vmax.xlane.f32.xlu0 %v944_v56  ;;  %v5556_v53 = vpop.f32.mrb[10].mxu0 }
 0x376   :  { %v4163_v5 = vpop.f32.mrb[11].mxu0  ;;  %v4175_v6 = vpop.f32.mrb[7].mxu1  ;;  %v947_v7 = vsel %vm943_vm1, %v5556_v53, -inf  ;;  %v959_v44 = vsel %vm943_vm1, %v5554_v0, -inf }
 0x377   :  { %948 = vmax.xlane.f32.xlu1 %v947_v7 }
 0x37b   :  { %v5560_v8 = vpop.f32.mrb[12].mxu0  ;;  %v5562_v9 = vpop.f32.mrb[8].mxu1 }
 0x37c   :  { %v4168_v11 = vpop.f32.mrb[13].mxu0  ;;  %v4186_v23 = vpop.f32.mrb[9].mxu1  ;;  %v950_v27 = vsel %vm943_vm1, %v5560_v8, -inf }
 0x37d   :  { %v5566_v35 = vpop.f32.mrb[10].mxu1  ;;  %951 = vmax.xlane.f32.xlu0 %v950_v27  ;;  %v5568_v36 = vpop.f32.mrb[14].mxu0 }
 0x37e   :  { %v4169_v37 = vpop.f32.mrb[15].mxu0  ;;  %v4187_v40 = vpop.f32.mrb[11].mxu1  ;;  %v953_v43 = vsel %vm943_vm1, %v5568_v36, -inf }
 0x37f   :  { %954 = vmax.xlane.f32.xlu1 %v953_v43  ;;  %v968_v37 = vsel %vm943_vm1, %v5562_v9, -inf  ;;  %v971_v40 = vsel %vm943_vm1, %v5566_v35, -inf }
 0x381   :  { %957 = vmax.xlane.f32.xlu0 %v956_v41 }
 0x383   :  { %v5576_v48 = vpop.f32.mrb[12].mxu1  ;;  %960 = vmax.xlane.f32.xlu1 %v959_v44  ;;  %v5578_v34 = vpop.f32.mrb[16].mxu0 }
 0x384   :  { %v4180_v42 = vpop.f32.mrb[17].mxu0  ;;  %v4198_v56 = vpop.f32.mrb[13].mxu1  ;;  %v962_v5 = vsel %vm943_vm1, %v5578_v34, -inf }
 0x385   :  { %v5582_v6 = vpop.f32.mrb[14].mxu1  ;;  %963 = vmax.xlane.f32.xlu0 %v962_v5  ;;  %v5584_v7 = vpop.f32.mrb[18].mxu0 }
 0x386   :  { %v4181_v11 = vpop.f32.mrb[19].mxu0  ;;  %v4199_v23 = vpop.f32.mrb[15].mxu1  ;;  %v965_v27 = vsel %vm943_vm1, %v5584_v7, -inf }
 0x387   :  { %966 = vmax.xlane.f32.xlu1 %v965_v27  ;;  %v980_v11 = vsel %vm943_vm1, %v5576_v48, -inf  ;;  %v983_v23 = vsel %vm943_vm1, %v5582_v6, -inf }
 0x389   :  { %969 = vmax.xlane.f32.xlu0 %v968_v37 }
 0x38b   :  { %972 = vmax.xlane.f32.xlu1 %v971_v40  ;;  %v5592_v43 = vpop.f32.mrb[20].mxu0 }
 0x38c   :  { %v4192_v41 = vpop.f32.mrb[21].mxu0  ;;  %v974_v44 = vsel %vm943_vm1, %v5592_v43, -inf }
 0x38d   :  { %975 = vmax.xlane.f32.xlu0 %v974_v44  ;;  %v5596_v42 = vpop.f32.mrb[22].mxu0 }
 0x38e   :  { %v4193_v56 = vpop.f32.mrb[23].mxu0  ;;  %v977_v5 = vsel %vm943_vm1, %v5596_v42, -inf }
 0x38f   :  { %978 = vmax.xlane.f32.xlu1 %v977_v5 }
 0x391   :  { %981 = vmax.xlane.f32.xlu0 %v980_v11 }
 0x393   :  { %984 = vmax.xlane.f32.xlu1 %v983_v23  ;;  %v5604_v27 = vpop.f32.mrb[24].mxu0 }
 0x394   :  { %v4204_v37 = vpop.f32.mrb[25].mxu0  ;;  %v986_v40 = vsel %vm943_vm1, %v5604_v27, -inf }
 0x395   :  { %987 = vmax.xlane.f32.xlu0 %v986_v40  ;;  %v5608_v41 = vpop.f32.mrb[26].mxu0 }
 0x396   :  { %v4205_v44 = vpop.f32.mrb[27].mxu0  ;;  %v989_v56 = vsel %vm943_vm1, %v5608_v41, -inf }
 0x397   :  { %990 = vmax.xlane.f32.xlu1 %v989_v56 }
 0x402   :  { %v946_v5 = vpop.xlane.xlu0 %945 }
 0x403   :  { %v992_v11 = vsub.f32 %v5548_v29, %v946_v5 }
 0x404   :  { %v949_v26 = vpop.xlane.xlu1 %948 }
 0x405   :  { %v1008_v47 = vmul.f32 1.442695, %v992_v11  ;;  %v993_v23 = vsub.f32 %v5556_v53, %v949_v26 }
 0x407   :  { %4574 = vpow2.f32 %v1008_v47  ;;  %v1010_v37 = vmul.f32 1.442695, %v993_v23 }
 0x409   :  { %4576 = vpow2.f32 %v1010_v37 }
 0x40a   :  { %v952_v21 = vpop.xlane.xlu0 %951 }
 0x40b   :  { %v994_v40 = vsub.f32 %v5560_v8, %v952_v21  ;;  %v5615_v10 = vpop.f32.mrb[28].mxu0 }
 0x40c   :  { %v955_v44 = vpop.xlane.xlu1 %954  ;;  %v4258_v3 = vpop.f32.mrb[29].mxu0 }
 0x40d   :  { %v1012_v61 = vmul.f32 1.442695, %v994_v40  ;;  %v995_v56 = vsub.f32 %v5568_v36, %v955_v44  ;;  %v5618_v20 = vpop.f32.mrb[30].mxu0 }
 0x40e   :  { %v958_v29 = vpop.xlane.xlu0 %957  ;;  %v4259_v5 = vpop.f32.mrb[31].mxu0 }
 0x40f   :  { %4578 = vpow2.f32 %v1012_v61  ;;  %v1014_v11 = vmul.f32 1.442695, %v995_v56  ;;  %v996_v26 = vsub.f32 %v5550_v59, %v958_v29  ;;  %v1887_v5 = vsel %vm943_vm1, %v5615_v10, -inf }
 0x410   :  { %v961_v47 = vpop.xlane.xlu1 %960 }
 0x411   :  { %v5621_v53 = vpop.eup %4574  ;;  %4580 = vpow2.f32 %v1014_v11  ;;  %v1016_v21 = vmul.f32 1.442695, %v996_v26  ;;  %v997_v8 = vsub.f32 %v5554_v0, %v961_v47  ;;  %v1890_v26 = vsel %vm943_vm1, %v5618_v20, -inf }
 0x412   :  { %v964_v23 = vpop.xlane.xlu0 %963  ;;  %v1040_v3 = vsel %vm943_vm1, %v5621_v53, 0.0 }
 0x413   :  { %v5626_v36 = vpop.eup %4576  ;;  %v1018_v37 = vmul.f32 1.442695, %v997_v8  ;;  %1041 = vadd.xlane.f32.xlu0 %v1040_v3  ;;  %v5628_v40 = vpop.f32.mrb[32].mxu0  ;;  %4582 = vpow2.f32 %v1016_v21  ;;  %v998_v56 = vsub.f32 %v5578_v34, %v964_v23 }
 0x414   :  { %v967_v61 = vpop.xlane.xlu1 %966  ;;  %v4264_v44 = vpop.f32.mrb[33].mxu0  ;;  %v1043_v59 = vsel %vm943_vm1, %v5626_v36, 0.0 }
 0x415   :  { %1044 = vadd.xlane.f32.xlu1 %v1043_v59  ;;  %v5633_v0 = vpop.f32.mrb[34].mxu0  ;;  %4584 = vpow2.f32 %v1018_v37  ;;  %v999_v11 = vsub.f32 %v5584_v7, %v967_v61  ;;  %v1020_v8 = vmul.f32 1.442695, %v998_v56 }
 0x416   :  { %v4265_v29 = vpop.f32.mrb[35].mxu0  ;;  %v970_v21 = vpop.xlane.xlu0 %969 }
 0x417   :  { %1888 = vmax.xlane.f32.xlu0 %v1887_v5  ;;  %v1022_v3 = vmul.f32 1.442695, %v999_v11  ;;  %4586 = vpow2.f32 %v1020_v8  ;;  %v1000_v59 = vsub.f32 %v5562_v9, %v970_v21  ;;  %v1893_v5 = vsel %vm943_vm1, %v5628_v40, -inf }
 0x418   :  { %v973_v37 = vpop.xlane.xlu1 %972 }
 0x419   :  { %v5640_v47 = vpop.eup %4578  ;;  %1891 = vmax.xlane.f32.xlu1 %v1890_v26  ;;  %4588 = vpow2.f32 %v1022_v3  ;;  %v1001_v11 = vsub.f32 %v5566_v35, %v973_v37  ;;  %v1024_v8 = vmul.f32 1.442695, %v1000_v59 }
 0x41a   :  { %v1046_v34 = vsel %vm943_vm1, %v5640_v47, 0.0  ;;  %v976_v9 = vpop.xlane.xlu0 %975 }
 0x41b   :  { %v5644_v23 = vpop.eup %4580  ;;  %1047 = vadd.xlane.f32.xlu0 %v1046_v34  ;;  %v5646_v44 = vpop.f32.mrb[36].mxu0  ;;  %v1896_v34 = vsel %vm943_vm1, %v5633_v0, -inf  ;;  %4590 = vpow2.f32 %v1024_v8  ;;  %v1002_v37 = vsub.f32 %v5592_v43, %v976_v9 }
 0x41c   :  { %v4270_v7 = vpop.f32.mrb[37].mxu0  ;;  %v1049_v61 = vsel %vm943_vm1, %v5644_v23, 0.0  ;;  %v979_v19 = vpop.xlane.xlu1 %978 }
 0x41d   :  { %1050 = vadd.xlane.f32.xlu1 %v1049_v61  ;;  %v5651_v56 = vpop.f32.mrb[38].mxu0  ;;  %v5655_v26 = vpop.eup %4582  ;;  %v1026_v61 = vmul.f32 1.442695, %v1001_v11  ;;  %v1003_v11 = vsub.f32 %v5596_v42, %v979_v19  ;;  %v1028_v8 = vmul.f32 1.442695, %v1002_v37 }
 0x41e   :  { %v4271_v29 = vpop.f32.mrb[39].mxu0  ;;  %v1052_v21 = vsel %vm943_vm1, %v5655_v26, 0.0  ;;  %v982_v43 = vpop.xlane.xlu0 %981 }
 0x41f   :  { %1894 = vmax.xlane.f32.xlu0 %v1893_v5  ;;  %v5660_v7 = vpop.eup %4584  ;;  %4592 = vpow2.f32 %v1026_v61  ;;  %v1004_v42 = vsub.f32 %v5576_v48, %v982_v43 }
 0x420   :  { %v1055_v35 = vsel %vm943_vm1, %v5660_v7, 0.0  ;;  %v985_v49 = vpop.xlane.xlu1 %984  ;;  %4594 = vpow2.f32 %v1028_v8 }
 0x421   :  { %1897 = vmax.xlane.f32.xlu1 %v1896_v34  ;;  %v1899_v34 = vsel %vm943_vm1, %v5646_v44, -inf  ;;  %v5673_v62 = vpop.eup %4586  ;;  %v1032_v8 = vmul.f32 1.442695, %v1004_v42 }
 0x422   :  { %v1058_v9 = vsel %vm943_vm1, %v5673_v62, 0.0  ;;  %v988_v48 = vpop.xlane.xlu0 %987 }
 0x423   :  { %1053 = vadd.xlane.f32.xlu0 %v1052_v21  ;;  %v5664_v29 = vpop.f32.mrb[40].mxu0  ;;  %v1902_v21 = vsel %vm943_vm1, %v5651_v56, -inf }
 0x424   :  { %v4276_v3 = vpop.f32.mrb[41].mxu0  ;;  %v991_v28 = vpop.xlane.xlu1 %990 }
 0x425   :  { %1056 = vadd.xlane.f32.xlu1 %v1055_v35  ;;  %v5669_v5 = vpop.f32.mrb[42].mxu0  ;;  %v5678_v3 = vpop.eup %4588  ;;  %v1030_v35 = vmul.f32 1.442695, %v1003_v11  ;;  %v1005_v11 = vsub.f32 %v5582_v6, %v985_v49  ;;  %v1006_v6 = vsub.f32 %v5604_v27, %v988_v48 }
 0x426   :  { %v4277_v59 = vpop.f32.mrb[43].mxu0  ;;  %v1061_v19 = vsel %vm943_vm1, %v5678_v3, 0.0  ;;  %v5691_v15 = vpop.eup %4590 }
 0x427   :  { %1900 = vmax.xlane.f32.xlu0 %v1899_v34  ;;  %4596 = vpow2.f32 %v1030_v35  ;;  %v1064_v43 = vsel %vm943_vm1, %v5691_v15, 0.0 }
 0x428   :  { %4598 = vpow2.f32 %v1032_v8  ;;  %v1036_v8 = vmul.f32 1.442695, %v1006_v6 }
 0x429   :  { %1903 = vmax.xlane.f32.xlu1 %v1902_v21  ;;  %v1905_v21 = vsel %vm943_vm1, %v5664_v29, -inf }
 0x42b   :  { %1059 = vadd.xlane.f32.xlu0 %v1058_v9  ;;  %v5682_v59 = vpop.f32.mrb[44].mxu0  ;;  %v1908_v9 = vsel %vm943_vm1, %v5669_v5, -inf }
 0x42c   :  { %v4282_v61 = vpop.f32.mrb[45].mxu0 }
 0x42d   :  { %1062 = vadd.xlane.f32.xlu1 %v1061_v19  ;;  %v5687_v34 = vpop.f32.mrb[46].mxu0  ;;  %v5696_v61 = vpop.eup %4592  ;;  %v1034_v19 = vmul.f32 1.442695, %v1005_v11  ;;  %v1007_v11 = vsub.f32 %v5608_v41, %v991_v28 }
 0x42e   :  { %v4283_v37 = vpop.f32.mrb[47].mxu0  ;;  %v1067_v49 = vsel %vm943_vm1, %v5696_v61, 0.0  ;;  %v5709_v54 = vpop.eup %4594 }
 0x42f   :  { %1906 = vmax.xlane.f32.xlu0 %v1905_v21  ;;  %4600 = vpow2.f32 %v1034_v19  ;;  %v1070_v27 = vsel %vm943_vm1, %v5709_v54, 0.0  ;;  %v1038_v48 = vmul.f32 1.442695, %v1007_v11 }
 0x430   :  { %4602 = vpow2.f32 %v1036_v8 }
 0x431   :  { %1909 = vmax.xlane.f32.xlu1 %v1908_v9  ;;  %v1911_v9 = vsel %vm943_vm1, %v5682_v59, -inf  ;;  %4604 = vpow2.f32 %v1038_v48 }
 0x433   :  { %1065 = vadd.xlane.f32.xlu0 %v1064_v43  ;;  %v5700_v37 = vpop.f32.mrb[48].mxu0  ;;  %v1914_v43 = vsel %vm943_vm1, %v5687_v34, -inf }
 0x434   :  { %v4288_v35 = vpop.f32.mrb[49].mxu0  ;;  %v1917_v6 = vsel %vm943_vm1, %v5700_v37, -inf }
 0x435   :  { %1068 = vadd.xlane.f32.xlu1 %v1067_v49  ;;  %v5705_v21 = vpop.f32.mrb[50].mxu0  ;;  %v5714_v35 = vpop.eup %4596 }
 0x436   :  { %v4289_v42 = vpop.f32.mrb[51].mxu0  ;;  %v1073_v19 = vsel %vm943_vm1, %v5714_v35, 0.0  ;;  %v1920_v11 = vsel %vm943_vm1, %v5705_v21, -inf }
 0x437   :  { %1912 = vmax.xlane.f32.xlu0 %v1911_v9  ;;  %v5726_v9 = vpop.eup %4598 }
 0x438   :  { %v1076_v8 = vsel %vm943_vm1, %v5726_v9, 0.0 }
 0x439   :  { %1915 = vmax.xlane.f32.xlu1 %v1914_v43  ;;  %v5730_v43 = vpop.eup %4600 }
 0x43a   :  { %v5742_v25 = vpop.eup %4602 }
 0x43b   :  { %1071 = vadd.xlane.f32.xlu0 %v1070_v27  ;;  %v5718_v49 = vpop.f32.mrb[52].mxu0 }
 0x43c   :  { %v4294_v42 = vpop.f32.mrb[53].mxu0 }
 0x43d   :  { %1074 = vadd.xlane.f32.xlu1 %v1073_v19  ;;  %v5722_v28 = vpop.f32.mrb[54].mxu0  ;;  %v1079_v19 = vsel %vm943_vm1, %v5730_v43, 0.0 }
 0x43e   :  { %v4295_v41 = vpop.f32.mrb[55].mxu0 }
 0x43f   :  { %1918 = vmax.xlane.f32.xlu0 %v1917_v6  ;;  %v1923_v6 = vsel %vm943_vm1, %v5718_v49, -inf }
 0x441   :  { %1921 = vmax.xlane.f32.xlu1 %v1920_v11  ;;  %v1926_v11 = vsel %vm943_vm1, %v5722_v28, -inf }
 0x443   :  { %1077 = vadd.xlane.f32.xlu0 %v1076_v8  ;;  %v5734_v27 = vpop.f32.mrb[56].mxu0  ;;  %v5746_v8 = vpop.eup %4604 }
 0x444   :  { %v4300_v42 = vpop.f32.mrb[57].mxu0 }
 0x445   :  { %1080 = vadd.xlane.f32.xlu1 %v1079_v19  ;;  %v5738_v41 = vpop.f32.mrb[58].mxu0  ;;  %v1082_v42 = vsel %vm943_vm1, %v5742_v25, 0.0  ;;  %v1085_v19 = vsel %vm943_vm1, %v5746_v8, 0.0 }
 0x446   :  { %v4301_v48 = vpop.f32.mrb[59].mxu0 }
 0x447   :  { %1924 = vmax.xlane.f32.xlu0 %v1923_v6  ;;  %v1929_v48 = vsel %vm943_vm1, %v5734_v27, -inf  ;;  %v1932_v6 = vsel %vm943_vm1, %v5738_v41, -inf }
 0x449   :  { %1927 = vmax.xlane.f32.xlu1 %v1926_v11 }
 0x44b   :  { %1083 = vadd.xlane.f32.xlu0 %v1082_v42 }
 0x44d   :  { %1086 = vadd.xlane.f32.xlu1 %v1085_v19 }
 0x44f   :  { %1930 = vmax.xlane.f32.xlu0 %v1929_v48 }
 0x451   :  { %1933 = vmax.xlane.f32.xlu1 %v1932_v6 }
 0x4a0   :  { %v1042_v22 = vpop.xlane.xlu0 %1041 }
 0x4a1   :  { %4606 = vrcp.f32 %v1042_v22 }
 0x4a2   :  { %v1045_v30 = vpop.xlane.xlu1 %1044 }
 0x4a3   :  { %4608 = vrcp.f32 %v1045_v30 }
 0x4a4   :  { %v1889_v11 = vpop.xlane.xlu0 %1888 }
 0x4a5   :  { %v1935_v4 = vsub.f32 %v5615_v10, %v1889_v11 }
 0x4a6   :  { %v1892_v42 = vpop.xlane.xlu1 %1891 }
 0x4a7   :  { %v1951_v24 = vmul.f32 1.442695, %v1935_v4  ;;  %v1936_v16 = vsub.f32 %v5618_v20, %v1892_v42 }
 0x4a8   :  { %v1048_v19 = vpop.xlane.xlu0 %1047 }
 0x4a9   :  { %4610 = vpow2.f32 %v1951_v24  ;;  %v1953_v32 = vmul.f32 1.442695, %v1936_v16 }
 0x4aa   :  { %v1051_v18 = vpop.xlane.xlu1 %1050 }
 0x4ab   :  { %v4607_v48 = vpop.eup %4606  ;;  %4612 = vpow2.f32 %v1953_v32 }
 0x4ac   :  { %4614 = vrcp.f32 %v1051_v18  ;;  %v1895_v14 = vpop.xlane.xlu0 %1894  ;;  %v1104_v30 = vmul.f32 %v4607_v48, %v5621_v53  ;;  %v6510_v53 = vmov 0.0  }
 0x4ad   :  { %v4609_v6 = vpop.eup %4608  ;;  %4616 = vrcp.f32 %v1048_v19  ;;  %v1937_v22 = vsub.f32 %v5628_v40, %v1895_v14  ;;  %v6509_v14 = vpack.c.bf16 %v5353_v17, %v5345_v39 }
 0x4ae   :  { %v1105_v10 = vmul.f32 %v4609_v6, %v5626_v36  ;;  %v1898_v11 = vpop.xlane.xlu1 %1897 }
 0x4af   :  { %v1955_v4 = vmul.f32 1.442695, %v1937_v22  ;;  %v1938_v20 = vsub.f32 %v5633_v0, %v1898_v11 }
 0x4b0   :  { %v1054_v42 = vpop.xlane.xlu0 %1053  ;;  %v1120_v24 = vpack.c.bf16 %v1105_v10, %v1104_v30 }
 0x4b1   :  { %4618 = vpow2.f32 %v1955_v4  ;;  %v1957_v16 = vmul.f32 1.442695, %v1938_v20 }
 0x4b2   :  { %4209 = vmatmul.mubr.msk.bf16.vlgmr.msra.gmra.mrb[16].mxu1 %vm943_vm1, %v1120_v24  ;;  %v1057_v18 = vpop.xlane.xlu1 %1056 }
 0x4b3   :  { %v5763_v32 = vpop.eup %4610  ;;  %4620 = vpow2.f32 %v1957_v16  ;;  %4213 = vmatpush3.bf16.msra.mxu1 %v6509_v14  ;;  %4214 = vmatprep.mubr.msk.bf16.mxu1 %vm4998_vm0, %v6510_v53 }
 0x4b4   :  { %v1901_v36 = vpop.xlane.xlu0 %1900  ;;  %v1983_v40 = vsel %vm943_vm1, %v5763_v32, 0.0  ;;  %4218 = vmatprep.subr.bf16.mxu1 %v6510_v53  ;;  %4622 = vrcp.f32 %v1057_v18 }
 0x4b5   :  { %v5773_v0 = vpop.eup %4612  ;;  %v1939_v19 = vsub.f32 %v5646_v44, %v1901_v36  ;;  %1984 = vadd.xlane.f32.xlu0 %v1983_v40  ;;  %4624 = vrcp.f32 %v1054_v42  ;;  %v6511_v40 = vpack.c.bf16 %v5365_v45, %v5357_v33 }
 0x4b6   :  { %v4615_v48 = vpop.eup %4614  ;;  %v1904_v6 = vpop.xlane.xlu1 %1903  ;;  %v1986_v39 = vsel %vm943_vm1, %v5773_v0, 0.0 }
 0x4b7   :  { %v4617_v17 = vpop.eup %4616  ;;  %v1959_v22 = vmul.f32 1.442695, %v1939_v19  ;;  %v1940_v30 = vsub.f32 %v5651_v56, %v1904_v6  ;;  %1987 = vadd.xlane.f32.xlu1 %v1986_v39  ;;  %v1107_v10 = vmul.f32 %v4615_v48, %v5644_v23 }
 0x4b8   :  { %v1060_v11 = vpop.xlane.xlu0 %1059  ;;  %v1106_v44 = vmul.f32 %v4617_v17, %v5640_v47 }
 0x4b9   :  { %4626 = vpow2.f32 %v1959_v22  ;;  %v1961_v4 = vmul.f32 1.442695, %v1940_v30 }
 0x4ba   :  { %v1063_v20 = vpop.xlane.xlu1 %1062  ;;  %v1121_v14 = vpack.c.bf16 %v1107_v10, %v1106_v44 }
 0x4bb   :  { %v5781_v24 = vpop.eup %4618  ;;  %4628 = vpow2.f32 %v1961_v4 }
 0x4bc   :  { %v1907_v16 = vpop.xlane.xlu0 %1906  ;;  %v1989_v18 = vsel %vm943_vm1, %v5781_v24, 0.0 }
 0x4bd   :  { %v5785_v36 = vpop.eup %4620  ;;  %v1941_v56 = vsub.f32 %v5664_v29, %v1907_v16  ;;  %1990 = vadd.xlane.f32.xlu0 %v1989_v18 }
 0x4be   :  { %4215 = vmatmul.mubr.msk.bf16.vlgmr.msra.gmra.mrb[16].mxu1 %vm943_vm1, %v1121_v14  ;;  %v1910_v23 = vpop.xlane.xlu1 %1909  ;;  %v1992_v47 = vsel %vm943_vm1, %v5785_v36, 0.0  ;;  %v4623_v29 = vpop.eup %4622 }
 0x4bf   :  { %v1963_v42 = vmul.f32 1.442695, %v1941_v56  ;;  %4219 = vmatpush3.bf16.msra.mxu1 %v6511_v40  ;;  %v1942_v19 = vsub.f32 %v5669_v5, %v1910_v23  ;;  %1993 = vadd.xlane.f32.xlu1 %v1992_v47  ;;  %v4625_v39 = vpop.eup %4624  ;;  %v1109_v33 = vmul.f32 %v4623_v29, %v5660_v7 }
 0x4c0   :  { %v1066_v48 = vpop.xlane.xlu0 %1065  ;;  %4220 = vmatprep.mubr.msk.bf16.mxu1 %vm4998_vm0, %v6510_v53  ;;  %4224 = vmatprep.subr.bf16.mxu1 %v6510_v53  ;;  %v1108_v4 = vmul.f32 %v4625_v39, %v5655_v26  ;;  %v6512_v26 = vpack.c.bf16 %v5380_v50, %v5369_v46 }
 0x4c1   :  { %4630 = vpow2.f32 %v1963_v42  ;;  %v1965_v6 = vmul.f32 1.442695, %v1942_v19 }
 0x4c2   :  { %4632 = vrcp.f32 %v1063_v20  ;;  %v1069_v17 = vpop.xlane.xlu1 %1068  ;;  %v1122_v14 = vpack.c.bf16 %v1109_v33, %v1108_v4 }
 0x4c3   :  { %v5798_v22 = vpop.eup %4626  ;;  %4634 = vpow2.f32 %v1965_v6 }
 0x4c4   :  { %v1913_v45 = vpop.xlane.xlu0 %1912  ;;  %v1995_v5 = vsel %vm943_vm1, %v5798_v22, 0.0  ;;  %4636 = vrcp.f32 %v1060_v11 }
 0x4c5   :  { %v5803_v30 = vpop.eup %4628  ;;  %v1943_v10 = vsub.f32 %v5682_v59, %v1913_v45  ;;  %1996 = vadd.xlane.f32.xlu0 %v1995_v5 }
 0x4c6   :  { %v1916_v44 = vpop.xlane.xlu1 %1915  ;;  %v1998_v20 = vsel %vm943_vm1, %v5803_v30, 0.0 }
 0x4c7   :  { %v1967_v16 = vmul.f32 1.442695, %v1943_v10  ;;  %v1944_v18 = vsub.f32 %v5687_v34, %v1916_v44  ;;  %1999 = vadd.xlane.f32.xlu1 %v1998_v20 }
 0x4c8   :  { %v1072_v7 = vpop.xlane.xlu0 %1071 }
 0x4c9   :  { %4638 = vpow2.f32 %v1967_v16  ;;  %v1969_v56 = vmul.f32 1.442695, %v1944_v18  ;;  %v6513_v16 = vpack.c.bf16 %v5391_v52, %v5387_v51 }
 0x4ca   :  { %4221 = vmatmul.mubr.msk.bf16.vlgmr.msra.gmra.mrb[16].mxu1 %vm943_vm1, %v1122_v14  ;;  %v1075_v11 = vpop.xlane.xlu1 %1074 }
 0x4cb   :  { %v5811_v23 = vpop.eup %4630  ;;  %4640 = vpow2.f32 %v1969_v56  ;;  %4225 = vmatpush3.bf16.msra.mxu1 %v6512_v26  ;;  %4226 = vmatprep.mubr.msk.bf16.mxu1 %vm4998_vm0, %v6510_v53 }
 0x4cc   :  { %v4633_v59 = vpop.eup %4632  ;;  %v1919_v34 = vpop.xlane.xlu0 %1918  ;;  %v2001_v47 = vsel %vm943_vm1, %v5811_v23, 0.0  ;;  %4230 = vmatprep.subr.bf16.mxu1 %v6510_v53  ;;  %4642 = vrcp.f32 %v1069_v17 }
 0x4cd   :  { %v5821_v42 = vpop.eup %4634  ;;  %v1945_v40 = vsub.f32 %v5700_v37, %v1919_v34  ;;  %2002 = vadd.xlane.f32.xlu0 %v2001_v47  ;;  %v1111_v39 = vmul.f32 %v4633_v59, %v5678_v3  ;;  %4644 = vrcp.f32 %v1066_v48 }
 0x4ce   :  { %v1922_v19 = vpop.xlane.xlu1 %1921  ;;  %v2004_v46 = vsel %vm943_vm1, %v5821_v42, 0.0  ;;  %v4637_v50 = vpop.eup %4636 }
 0x4cf   :  { %v1971_v29 = vmul.f32 1.442695, %v1945_v40  ;;  %v1946_v6 = vsub.f32 %v5705_v21, %v1922_v19  ;;  %2005 = vadd.xlane.f32.xlu1 %v2004_v46  ;;  %v1110_v5 = vmul.f32 %v4637_v50, %v5673_v62 }
 0x4d0   :  { %v1078_v33 = vpop.xlane.xlu0 %1077 }
 0x4d1   :  { %4646 = vpow2.f32 %v1971_v29  ;;  %v1973_v45 = vmul.f32 1.442695, %v1946_v6  ;;  %v1123_v44 = vpack.c.bf16 %v1111_v39, %v1110_v5 }
 0x4d2   :  { %v1081_v37 = vpop.xlane.xlu1 %1080 }
 0x4d3   :  { %v5829_v10 = vpop.eup %4638  ;;  %4648 = vpow2.f32 %v1973_v45 }
 0x4d4   :  { %v1925_v4 = vpop.xlane.xlu0 %1924  ;;  %v2007_v17 = vsel %vm943_vm1, %v5829_v10, 0.0 }
 0x4d5   :  { %v5833_v20 = vpop.eup %4640  ;;  %v1947_v21 = vsub.f32 %v5718_v49, %v1925_v4  ;;  %2008 = vadd.xlane.f32.xlu0 %v2007_v17 }
 0x4d6   :  { %4227 = vmatmul.mubr.msk.bf16.vlgmr.msra.gmra.mrb[16].mxu1 %vm943_vm1, %v1123_v44  ;;  %v1928_v3 = vpop.xlane.xlu1 %1927  ;;  %v2010_v62 = vsel %vm943_vm1, %v5833_v20, 0.0  ;;  %v4643_v49 = vpop.eup %4642 }
 0x4d7   :  { %v1975_v48 = vmul.f32 1.442695, %v1947_v21  ;;  %4231 = vmatpush3.bf16.msra.mxu1 %v6513_v16  ;;  %v1948_v18 = vsub.f32 %v5722_v28, %v1928_v3  ;;  %2011 = vadd.xlane.f32.xlu1 %v2010_v62  ;;  %v4645_v26 = vpop.eup %4644  ;;  %v1113_v51 = vmul.f32 %v4643_v49, %v5696_v61 }
 0x4d8   :  { %v1084_v14 = vpop.xlane.xlu0 %1083  ;;  %4232 = vmatprep.mubr.msk.bf16.mxu1 %vm4998_vm0, %v6510_v53  ;;  %4236 = vmatprep.subr.bf16.mxu1 %v6510_v53  ;;  %v1112_v19 = vmul.f32 %v4645_v26, %v5691_v15 }
 0x4d9   :  { %4650 = vpow2.f32 %v1975_v48  ;;  %v1977_v56 = vmul.f32 1.442695, %v1948_v18 }
 0x4da   :  { %4652 = vrcp.f32 %v1075_v11  ;;  %v1087_v59 = vpop.xlane.xlu1 %1086  ;;  %v1124_v61 = vpack.c.bf16 %v1113_v51, %v1112_v19 }
 0x4db   :  { %v5846_v34 = vpop.eup %4646  ;;  %4654 = vpow2.f32 %v1977_v56 }
 0x4dc   :  { %v1931_v52 = vpop.xlane.xlu0 %1930  ;;  %v2013_v28 = vsel %vm943_vm1, %v5846_v34, 0.0  ;;  %4656 = vrcp.f32 %v1072_v7 }
 0x4dd   :  { %v5851_v47 = vpop.eup %4648  ;;  %v1949_v40 = vsub.f32 %v5734_v27, %v1931_v52  ;;  %2014 = vadd.xlane.f32.xlu0 %v2013_v28  ;;  %v6514_v27 = vpack.c.bf16 %v5401_v57, %v5395_v55 }
 0x4de   :  { %v1934_v46 = vpop.xlane.xlu1 %1933  ;;  %v2016_v11 = vsel %vm943_vm1, %v5851_v47, 0.0 }
 0x4df   :  { %v1979_v50 = vmul.f32 1.442695, %v1949_v40  ;;  %v1950_v29 = vsub.f32 %v5738_v41, %v1934_v46  ;;  %2017 = vadd.xlane.f32.xlu1 %v2016_v11  ;;  %v4478_v46 = vld [vmem:[#allocation10] sm:$0xff]   ;;  %v4479_v11 = vld [vmem:[#allocation10 + $0x8] sm:$0xff]  }
 0x4e0   :  { %4350 = vmatprep.subr.bf16.mxu0 %v4478_v46 }
 0x4e1   :  { %4658 = vpow2.f32 %v1979_v50  ;;  %v1981_v6 = vmul.f32 1.442695, %v1950_v29  ;;  %4351 = vmatpush3.bf16.msra.mxu0 %v4478_v46 }
 0x4e2   :  { %4233 = vmatmul.mubr.msk.bf16.vlgmr.msra.gmra.mrb[16].mxu1 %vm943_vm1, %v1124_v61  ;;  %4352 = vmatprep.subr.bf16.mxu0 %v4479_v11 }
 0x4e3   :  { %v5859_v39 = vpop.eup %4650  ;;  %4660 = vpow2.f32 %v1981_v6  ;;  %4237 = vmatpush3.bf16.msra.mxu1 %v6514_v27  ;;  %4238 = vmatprep.mubr.msk.bf16.mxu1 %vm4998_vm0, %v6510_v53 }
 0x4e4   :  { %v4653_v15 = vpop.eup %4652  ;;  %v2019_v41 = vsel %vm943_vm1, %v5859_v39, 0.0  ;;  %4242 = vmatprep.subr.bf16.mxu1 %v6510_v53  ;;  %4662 = vrcp.f32 %v1081_v37 }
 0x4e5   :  { %v5869_v7 = vpop.eup %4654  ;;  %2020 = vadd.xlane.f32.xlu0 %v2019_v41  ;;  %v1115_v55 = vmul.f32 %v4653_v15, %v5714_v35  ;;  %4664 = vrcp.f32 %v1078_v33  ;;  %v6515_v35 = vpack.c.bf16 %v5409_v60, %v5405_v58  ;;  %v6516_v58 = vpack.c.bf16 %v5419_v1, %v5415_v63  ;;  %4353 = vmatpush3.bf16.msra.mxu0 %v4479_v11  ;;  %v4482_v41 = vld [vmem:[#allocation10 + $0x20] sm:$0xff]  }
 0x4e6   :  { %v2022_v45 = vsel %vm943_vm1, %v5869_v7, 0.0  ;;  %v4657_v5 = vpop.eup %4656  ;;  %4666 = vrcp.f32 %v1087_v59  ;;  %v6518_v59 = vpack.c.bf16 %v5441_v13, %v5435_v38  ;;  %v6519_v38 = vld [vmem:[#allocation21_spill] sm:$0xff] }
 0x4e7   :  { %2023 = vadd.xlane.f32.xlu1 %v2022_v45  ;;  %v1114_v57 = vmul.f32 %v4657_v5, %v5709_v54  ;;  %4668 = vrcp.f32 %v1084_v14  ;;  %v6520_v13 = vpack.c.bf16 %v5449_v31, %v6519_v38  ;;  %v4481_v31 = vld [vmem:[#allocation10 + $0x18] sm:$0xff]   ;;  %v6522_v5 = vld [vmem:[#allocation22_spill] sm:$0xff] }
 0x4e8   :  { %v6521_v45 = vld [vmem:[#allocation23_spill] sm:$0xff] }
 0x4e9   :  { %v1125_v44 = vpack.c.bf16 %v1115_v55, %v1114_v57  ;;  %v6523_v55 = vpack.c.bf16 %v6521_v45, %v6522_v5 }
 0x4eb   :  { %v5875_v4 = vpop.eup %4658 }
 0x4ec   :  { %v2025_v17 = vsel %vm943_vm1, %v5875_v4, 0.0 }
 0x4ed   :  { %v5879_v21 = vpop.eup %4660  ;;  %2026 = vadd.xlane.f32.xlu0 %v2025_v17 }
 0x4ee   :  { %4239 = vmatmul.mubr.msk.bf16.vlgmr.msra.gmra.mrb[16].mxu1 %vm943_vm1, %v1125_v44  ;;  %v2028_v37 = vsel %vm943_vm1, %v5879_v21, 0.0  ;;  %v4663_v54 = vpop.eup %4662 }
 0x4ef   :  { %4243 = vmatpush3.bf16.msra.mxu1 %v6515_v35  ;;  %2029 = vadd.xlane.f32.xlu1 %v2028_v37  ;;  %v4665_v33 = vpop.eup %4664  ;;  %v1117_v3 = vmul.f32 %v4663_v54, %v5730_v43  ;;  %v4484_v35 = vld [vmem:[#allocation10 + $0x30] sm:$0xff]  }
 0x4f0   :  { %4244 = vmatprep.mubr.msk.bf16.mxu1 %vm4998_vm0, %v6510_v53  ;;  %4248 = vmatprep.subr.bf16.mxu1 %v6510_v53  ;;  %v1116_v62 = vmul.f32 %v4665_v33, %v5726_v9  ;;  %v4667_v60 = vpop.eup %4666  ;;  %v6517_v9 = vpack.c.bf16 %v5431_v12, %v5423_v2 }
 0x4f1   :  { %v4669_v16 = vpop.eup %4668  ;;  %v1119_v18 = vmul.f32 %v4667_v60, %v5746_v8 }
 0x4f2   :  { %v1126_v48 = vpack.c.bf16 %v1117_v3, %v1116_v62  ;;  %v1118_v43 = vmul.f32 %v4669_v16, %v5742_v25  ;;  %v6524_v3 = vld [vmem:[#allocation25_spill] sm:$0xff]  ;;  %v6525_v62 = vld [vmem:[#allocation24_spill] sm:$0xff] }
 0x4f4   :  { %v1127_v14 = vpack.c.bf16 %v1119_v18, %v1118_v43 }
 0x4fa   :  { %4245 = vmatmul.mubr.msk.bf16.vlgmr.msra.gmra.mrb[16].mxu1 %vm943_vm1, %v1126_v48  ;;  %v6526_v48 = vpack.c.bf16 %v6524_v3, %v6525_v62 }
 0x4fb   :  { %4249 = vmatpush3.bf16.msra.mxu1 %v6516_v58  ;;  %4250 = vmatprep.mubr.msk.bf16.mxu1 %vm4998_vm0, %v6510_v53 }
 0x4fc   :  { %4302 = vmatprep.subr.bf16.mxu1 %v6510_v53 }
 0x506   :  { %4251 = vmatmul.mubr.msk.bf16.vlgmr.msra.gmra.mrb[16].mxu1 %vm943_vm1, %v1127_v14  ;;  %v6527_v14 = vld [vmem:[#allocation27_spill] sm:$0xff] }
 0x507   :  { %4303 = vmatpush3.bf16.msra.mxu1 %v6517_v9  ;;  %4304 = vmatprep.mubr.msk.bf16.mxu1 %vm4998_vm0, %v6510_v53  ;;  %v6528_v9 = vld [vmem:[#allocation26_spill] sm:$0xff] }
 0x508   :  { %4308 = vmatprep.subr.bf16.mxu1 %v6510_v53 }
 0x542   :  { %v1985_v63 = vpop.xlane.xlu0 %1984 }
 0x543   :  { %4670 = vrcp.f32 %v1985_v63  ;;  %v6529_v63 = vpack.c.bf16 %v6527_v14, %v6528_v9 }
 0x544   :  { %v1988_v1 = vpop.xlane.xlu1 %1987 }
 0x545   :  { %4672 = vrcp.f32 %v1988_v1 }
 0x54a   :  { %v1991_v49 = vpop.xlane.xlu0 %1990 }
 0x54c   :  { %v1994_v8 = vpop.xlane.xlu1 %1993 }
 0x54d   :  { %v4671_v56 = vpop.eup %4670  ;;  %4674 = vrcp.f32 %v1994_v8 }
 0x54e   :  { %4676 = vrcp.f32 %v1991_v49  ;;  %v2047_v26 = vmul.f32 %v4671_v56, %v5763_v32 }
 0x54f   :  { %v4673_v25 = vpop.eup %4672 }
 0x550   :  { %v2048_v2 = vmul.f32 %v4673_v25, %v5773_v0 }
 0x552   :  { %v2063_v12 = vpack.c.bf16 %v2048_v2, %v2047_v26  ;;  %v1997_v28 = vpop.xlane.xlu0 %1996  ;;  %v6530_v26 = vld [vmem:[#allocation29_spill] sm:$0xff]  ;;  %v6531_v2 = vld [vmem:[#allocation28_spill] sm:$0xff] }
 0x554   :  { %4305 = vmatmul.mubr.msk.bf16.vlgmr.msra.gmra.mrb[20].mxu1 %vm943_vm1, %v2063_v12  ;;  %v2000_v51 = vpop.xlane.xlu1 %1999  ;;  %v6532_v12 = vpack.c.bf16 %v6530_v26, %v6531_v2 }
 0x555   :  { %4309 = vmatpush3.bf16.msra.mxu1 %v6518_v59  ;;  %4310 = vmatprep.mubr.msk.bf16.mxu1 %vm4998_vm0, %v6510_v53  ;;  %4678 = vrcp.f32 %v2000_v51 }
 0x556   :  { %4314 = vmatprep.subr.bf16.mxu1 %v6510_v53  ;;  %4680 = vrcp.f32 %v1997_v28 }
 0x557   :  { %v4675_v52 = vpop.eup %4674 }
 0x558   :  { %v4677_v40 = vpop.eup %4676  ;;  %v2050_v32 = vmul.f32 %v4675_v52, %v5785_v36 }
 0x559   :  { %v2049_v0 = vmul.f32 %v4677_v40, %v5781_v24  ;;  %v4480_v24 = vld [vmem:[#allocation10 + $0x10] sm:$0xff]  }
 0x55a   :  { %v2003_v29 = vpop.xlane.xlu0 %2002  ;;  %4354 = vmatprep.subr.bf16.mxu0 %v4480_v24 }
 0x55b   :  { %v2064_v19 = vpack.c.bf16 %v2050_v32, %v2049_v0  ;;  %4355 = vmatpush3.bf16.msra.mxu0 %v4480_v24  ;;  %v6533_v32 = vld [vmem:[#allocation31_spill] sm:$0xff]  ;;  %v6534_v0 = vld [vmem:[#allocation30_spill] sm:$0xff] }
 0x55c   :  { %v2006_v50 = vpop.xlane.xlu1 %2005  ;;  %4356 = vmatprep.subr.bf16.mxu0 %v4481_v31 }
 0x55d   :  { %4682 = vrcp.f32 %v2006_v50 }
 0x55e   :  { %4684 = vrcp.f32 %v2003_v29 }
 0x55f   :  { %v4679_v36 = vpop.eup %4678  ;;  %4357 = vmatpush3.bf16.msra.mxu0 %v4481_v31 }
 0x560   :  { %4311 = vmatmul.mubr.msk.bf16.vlgmr.msra.gmra.mrb[20].mxu1 %vm943_vm1, %v2064_v19  ;;  %v4681_v61 = vpop.eup %4680  ;;  %v2052_v6 = vmul.f32 %v4679_v36, %v5803_v30  ;;  %4358 = vmatprep.subr.bf16.mxu0 %v4482_v41  ;;  %v6535_v19 = vpack.c.bf16 %v6533_v32, %v6534_v0 }
 0x561   :  { %4315 = vmatpush3.bf16.msra.mxu1 %v6520_v13  ;;  %4316 = vmatprep.mubr.msk.bf16.mxu1 %vm4998_vm0, %v6510_v53  ;;  %v2051_v27 = vmul.f32 %v4681_v61, %v5798_v22  ;;  %v4483_v22 = vld [vmem:[#allocation10 + $0x28] sm:$0xff]  }
 0x562   :  { %4320 = vmatprep.subr.bf16.mxu1 %v6510_v53  ;;  %v2009_v17 = vpop.xlane.xlu0 %2008 }
 0x563   :  { %v2065_v15 = vpack.c.bf16 %v2052_v6, %v2051_v27  ;;  %4359 = vmatpush3.bf16.msra.mxu0 %v4482_v41  ;;  %v4485_v6 = vld [vmem:[#allocation10 + $0x38] sm:$0xff]  }
 0x564   :  { %v2012_v30 = vpop.xlane.xlu1 %2011  ;;  %4360 = vmatprep.subr.bf16.mxu0 %v4483_v22 }
 0x565   :  { %4686 = vrcp.f32 %v2012_v30 }
 0x566   :  { %4688 = vrcp.f32 %v2009_v17 }
 0x567   :  { %v4683_v57 = vpop.eup %4682  ;;  %4361 = vmatpush3.bf16.msra.mxu0 %v4483_v22 }
 0x568   :  { %v4685_v44 = vpop.eup %4684  ;;  %v2054_v37 = vmul.f32 %v4683_v57, %v5821_v42  ;;  %4362 = vmatprep.subr.bf16.mxu0 %v4484_v35 }
 0x569   :  { %v2053_v54 = vmul.f32 %v4685_v44, %v5811_v23 }
 0x56a   :  { %v2015_v60 = vpop.xlane.xlu0 %2014 }
 0x56b   :  { %v2066_v33 = vpack.c.bf16 %v2054_v37, %v2053_v54  ;;  %4363 = vmatpush3.bf16.msra.mxu0 %v4484_v35 }
 0x56c   :  { %4317 = vmatmul.mubr.msk.bf16.vlgmr.msra.gmra.mrb[20].mxu1 %vm943_vm1, %v2065_v15  ;;  %v2018_v58 = vpop.xlane.xlu1 %2017  ;;  %4364 = vmatprep.subr.bf16.mxu0 %v4485_v6 }
 0x56d   :  { %4321 = vmatpush3.bf16.msra.mxu1 %v6523_v55  ;;  %4322 = vmatprep.mubr.msk.bf16.mxu1 %vm4998_vm0, %v6510_v53  ;;  %4690 = vrcp.f32 %v2018_v58 }
 0x56e   :  { %4326 = vmatprep.subr.bf16.mxu1 %v6510_v53  ;;  %4692 = vrcp.f32 %v2015_v60 }
 0x56f   :  { %v4687_v42 = vpop.eup %4686  ;;  %4365 = vmatpush3.bf16.msra.mxu0 %v4485_v6 }
 0x570   :  { %v4689_v16 = vpop.eup %4688  ;;  %v2056_v23 = vmul.f32 %v4687_v42, %v5833_v20 }
 0x571   :  { %v2055_v18 = vmul.f32 %v4689_v16, %v5829_v10 }
 0x572   :  { %v2021_v8 = vpop.xlane.xlu0 %2020 }
 0x573   :  { %v2067_v43 = vpack.c.bf16 %v2056_v23, %v2055_v18 }
 0x574   :  { %v2024_v1 = vpop.xlane.xlu1 %2023 }
 0x575   :  { %4694 = vrcp.f32 %v2024_v1 }
 0x576   :  { %4696 = vrcp.f32 %v2021_v8 }
 0x577   :  { %v4691_v49 = vpop.eup %4690 }
 0x578   :  { %4323 = vmatmul.mubr.msk.bf16.vlgmr.msra.gmra.mrb[20].mxu1 %vm943_vm1, %v2066_v33  ;;  %v4693_v56 = vpop.eup %4692  ;;  %v2058_v20 = vmul.f32 %v4691_v49, %v5851_v47 }
 0x579   :  { %4327 = vmatpush3.bf16.msra.mxu1 %v6526_v48  ;;  %4328 = vmatprep.mubr.msk.bf16.mxu1 %vm4998_vm0, %v6510_v53  ;;  %v2057_v10 = vmul.f32 %v4693_v56, %v5846_v34 }
 0x57a   :  { %4332 = vmatprep.subr.bf16.mxu1 %v6510_v53  ;;  %v2027_v52 = vpop.xlane.xlu0 %2026 }
 0x57b   :  { %v2068_v25 = vpack.c.bf16 %v2058_v20, %v2057_v10 }
 0x57c   :  { %v2030_v59 = vpop.xlane.xlu1 %2029 }
 0x57d   :  { %4698 = vrcp.f32 %v2030_v59 }
 0x57e   :  { %4700 = vrcp.f32 %v2027_v52 }
 0x57f   :  { %v4695_v51 = vpop.eup %4694 }
 0x580   :  { %v4697_v28 = vpop.eup %4696  ;;  %v2060_v47 = vmul.f32 %v4695_v51, %v5869_v7 }
 0x581   :  { %v2059_v34 = vmul.f32 %v4697_v28, %v5859_v39  ;;  %v6536_v39 = vmov 0  }
 0x583   :  { %v2069_v40 = vpack.c.bf16 %v2060_v47, %v2059_v34 }
 0x584   :  { %4329 = vmatmul.mubr.msk.bf16.vlgmr.msra.gmra.mrb[20].mxu1 %vm943_vm1, %v2067_v43 }
 0x585   :  { %4333 = vmatpush3.bf16.msra.mxu1 %v6529_v63  ;;  %4334 = vmatprep.mubr.msk.bf16.mxu1 %vm4998_vm0, %v6510_v53 }
 0x586   :  { %4338 = vmatprep.subr.bf16.mxu1 %v6510_v53 }
 0x587   :  { %v4699_v46 = vpop.eup %4698 }
 0x588   :  { %v4701_v11 = vpop.eup %4700  ;;  %v2062_v38 = vmul.f32 %v4699_v46, %v5879_v21 }
 0x589   :  { %v2061_v13 = vmul.f32 %v4701_v11, %v5875_v4  ;;  %v3922_v4 = vld [vmem:[%s6463_s7] ss:$0 sm:$0xff] }
 0x58b   :  { %v2070_v7 = vpack.c.bf16 %v2062_v38, %v2061_v13 }
 0x590   :  { %4335 = vmatmul.mubr.msk.bf16.vlgmr.msra.gmra.mrb[20].mxu1 %vm943_vm1, %v2068_v25 }
 0x591   :  { %4339 = vmatpush3.bf16.msra.mxu1 %v6532_v12  ;;  %4340 = vmatprep.mubr.msk.bf16.mxu1 %vm4998_vm0, %v6510_v53 }
 0x592   :  { %4344 = vmatprep.subr.bf16.mxu1 %v6510_v53 }
 0x59c   :  { %4341 = vmatmul.mubr.msk.bf16.vlgmr.msra.gmra.mrb[20].mxu1 %vm943_vm1, %v2069_v40 }
 0x59d   :  { %4345 = vmatpush3.bf16.msra.mxu1 %v6535_v19  ;;  %4346 = vmatprep.mubr.msk.bf16.mxu1 %vm4998_vm0, %v6510_v53 }
 0x5a8   :  { %4347 = vmatmul.mubr.msk.bf16.vlgmr.msra.gmra.mrb[20].mxu1 %vm943_vm1, %v2070_v7 }
 0x5a9   :  { %3034 = vmatprep.mubr.bf16.mxu1 %v6536_v39 }
 0x5d9   :  { %v1473_v50 = vpop.f32.mrb[16].mxu1 }
 0x5da   :  { %v4252_v36 = vpop.f32.mrb[17].mxu1 }
 0x5db   :  { %v1476_v24 = vpop.f32.mrb[18].mxu1 }
 0x5dc   :  { %v2437_v29 = vpack.c.bf16 %v1476_v24, %v1473_v50  ;;  %v4253_v61 = vpop.f32.mrb[19].mxu1 }
 0x5de   :  { %4366 = vmatprep.mubr.bf16.mxu0 %v2437_v29 }
 0x67b   :  { %v2416_v53 = vpop.f32.mrb[20].mxu1 }
 0x67c   :  { %v4348_v31 = vpop.f32.mrb[21].mxu1 }
 0x67d   :  { %v2419_v27 = vpop.f32.mrb[22].mxu1 }
 0x67e   :  { %v2438_v21 = vpack.c.bf16 %v2419_v27, %v2416_v53  ;;  %v4349_v15 = vpop.f32.mrb[23].mxu1 }
 0x680   :  { %4367 = vmatmul.mubr.bf16.vlgmr.msra.gmra.mrb[60].mxu0 %v2438_v21 }
 0x681   :  { %2981 = vmatprep.mubr.bf16.mxu0 %v6536_v39 }
 0x753   :  { %v4368_v41 = vpop.f32.mrb[60].mxu0 }
 0x754   :  { %v5978_v45 = vadd.f32 %v4368_v41, %v3922_v4  ;;  %v2544_v5 = vpop.f32.mrb[61].mxu0 }
 0x755   :  { %v5980_v55 = vadd.f32 %v3922_v4, %v2544_v5  ;;  %v4369_v30 = vpop.f32.mrb[62].mxu0 }
 0x756   :  { %v5983_v57 = vmul.f32 0.70710677, %v5978_v45  ;;  %v5985_v22 = vadd.f32 %v4369_v30, %v3922_v4  ;;  %v2547_v17 = vpop.f32.mrb[63].mxu0 }
 0x757   :  { %v5988_v44 = vmul.f32 0.70710677, %v5980_v55  ;;  %v5990_v37 = vadd.f32 %v3922_v4, %v2547_v17 }
 0x758   :  { %v2569_v35 = vand.u32 2147483647, %v5983_v57  ;;  %v5994_v54 = vmul.f32 0.70710677, %v5985_v22  ;;  %vm2645_vm2 = vcmp.ge.f32.partialorder %v5983_v57, 0.0 }
 0x759   :  { %v2567_v33 = vand.u32 2147483647, %v5988_v44  ;;  %v5998_v3 = vmul.f32 0.70710677, %v5990_v37  ;;  %vm2643_vm3 = vcmp.ge.f32.partialorder %v5988_v44, 0.0 }
 0x75a   :  { %v2573_v62 = vmul.f32 0.3275911, %v2569_v35  ;;  %v2570_v48 = vand.u32 2147483647, %v5994_v54  ;;  %v2621_v9 = vsub.f32 0.0, %v2569_v35  ;;  %vm2646_vm4 = vcmp.ge.f32.partialorder %v5994_v54, 0.0 }
 0x75b   :  { %v2571_v58 = vmul.f32 0.3275911, %v2567_v33  ;;  %v2568_v42 = vand.u32 2147483647, %v5998_v3  ;;  %v2619_v63 = vsub.f32 0.0, %v2567_v33  ;;  %vm2644_vm5 = vcmp.ge.f32.partialorder %v5998_v3, 0.0 }
 0x75c   :  { %v2577_v60 = vadd.f32 1.0, %v2573_v62  ;;  %v2574_v16 = vmul.f32 0.3275911, %v2570_v48  ;;  %v2625_v49 = vmul.f32 %v2621_v9, %v2569_v35  ;;  %v2622_v8 = vsub.f32 0.0, %v2570_v48 }
 0x75d   :  { %v2575_v23 = vadd.f32 1.0, %v2571_v58  ;;  %v2572_v18 = vmul.f32 0.3275911, %v2568_v42  ;;  %v2623_v10 = vmul.f32 %v2619_v63, %v2567_v33  ;;  %v2620_v26 = vsub.f32 0.0, %v2568_v42 }
 0x75e   :  { %4702 = vrcp.f32 %v2577_v60  ;;  %v2578_v43 = vadd.f32 1.0, %v2574_v16  ;;  %v2631_v59 = vmul.f32 1.442695, %v2625_v49  ;;  %v2626_v52 = vmul.f32 %v2622_v8, %v2570_v48 }
 0x75f   :  { %4704 = vrcp.f32 %v2575_v23  ;;  %v2576_v14 = vadd.f32 1.0, %v2572_v18  ;;  %v2627_v47 = vmul.f32 1.442695, %v2623_v10  ;;  %v2624_v0 = vmul.f32 %v2620_v26, %v2568_v42 }
 0x760   :  { %4706 = vrcp.f32 %v2578_v43  ;;  %v2633_v13 = vmul.f32 1.442695, %v2626_v52  ;;  %v2562_v54 = vmul.f32 0.5, %v5985_v22  ;;  %v4489_v22 = vld [vmem:[#allocation11 + $0x8] ss:$16 sps:$4 sm:$0xff]  }
 0x761   :  { %4708 = vrcp.f32 %v2576_v14  ;;  %v2629_v29 = vmul.f32 1.442695, %v2624_v0 }
 0x762   :  { %4710 = vpow2.f32 %v2631_v59  ;;  %v2559_v59 = vmul.f32 0.5, %v5980_v55 }
 0x763   :  { %4712 = vpow2.f32 %v2627_v47 }
 0x764   :  { %4714 = vpow2.f32 %v2633_v13 }
 0x765   :  { %4716 = vpow2.f32 %v2629_v29 }
 0x768   :  { %v4703_v1 = vpop.eup %4702 }
 0x769   :  { %v4705_v56 = vpop.eup %4704  ;;  %v2585_v20 = vmul.f32 1.0614054, %v4703_v1 }
 0x76a   :  { %v2583_v25 = vmul.f32 1.0614054, %v4705_v56  ;;  %v4707_v12 = vpop.eup %4706 }
 0x76b   :  { %v2589_v2 = vadd.f32 -1.4531521, %v2585_v20  ;;  %v2586_v34 = vmul.f32 1.0614054, %v4707_v12  ;;  %v4709_v40 = vpop.eup %4708 }
 0x76c   :  { %v2587_v51 = vadd.f32 -1.4531521, %v2583_v25  ;;  %v2584_v11 = vmul.f32 1.0614054, %v4709_v40  ;;  %v4711_v48 = vpop.eup %4710 }
 0x76d   :  { %v2593_v28 = vmul.f32 %v4703_v1, %v2589_v2  ;;  %v2590_v46 = vadd.f32 -1.4531521, %v2586_v34  ;;  %v4713_v42 = vpop.eup %4712  ;;  %v2561_v34 = vmul.f32 0.5, %v5978_v45  ;;  %v4791_v45 = vld [vmem:[#allocation2 + $0x10] sm:$0xff] }
 0x76e   :  { %v2591_v32 = vmul.f32 %v4705_v56, %v2587_v51  ;;  %v2588_v36 = vadd.f32 -1.4531521, %v2584_v11  ;;  %v4715_v63 = vpop.eup %4714  ;;  %v2560_v11 = vmul.f32 0.5, %v5990_v37  ;;  %v4486_v37 = vld [vmem:[#allocation11] ss:$16 sps:$4 sm:$0xff]  }
 0x76f   :  { %v2597_v19 = vadd.f32 1.4214138, %v2593_v28  ;;  %v2594_v50 = vmul.f32 %v4707_v12, %v2590_v46  ;;  %v4717_v25 = vpop.eup %4716 }
 0x770   :  { %v2595_v38 = vadd.f32 1.4214138, %v2591_v32  ;;  %v2592_v53 = vmul.f32 %v4709_v40, %v2588_v36  ;;  %v4792_v36 = vld [vmem:[#allocation2 + $0x8] sm:$0xff] }
 0x771   :  { %v2601_v7 = vmul.f32 %v4703_v1, %v2597_v19  ;;  %v2598_v6 = vadd.f32 1.4214138, %v2594_v50  ;;  %v4790_v19 = vld [vmem:[#allocation2] sm:$0xff] }
 0x772   :  { %v2599_v24 = vmul.f32 %v4705_v56, %v2595_v38  ;;  %v2596_v15 = vadd.f32 1.4214138, %v2592_v53  ;;  %v4494_v53 = vld [vmem:[#allocation11 + $0x24] ss:$16 sps:$4 sm:$0xff]  }
 0x773   :  { %v2605_v61 = vadd.f32 -0.28449672, %v2601_v7  ;;  %v2602_v21 = vmul.f32 %v4707_v12, %v2598_v6  ;;  %v4491_v6 = vld [vmem:[#allocation11 + $0xc] ss:$16 sps:$4 sm:$0xff]  }
 0x774   :  { %v2603_v31 = vadd.f32 -0.28449672, %v2599_v24  ;;  %v2600_v30 = vmul.f32 %v4709_v40, %v2596_v15  ;;  %v4793_v24 = vld [vmem:[#allocation2 + $0x18] sm:$0xff]  ;;  %3002 = vmatprep.subr.bf16.mxu1 %v4491_v6  ;;  %v3931_v6 = vld [vmem:[%s6464_s8] ss:$0 sm:$0xff] }
 0x775   :  { %v2609_v27 = vmul.f32 %v4703_v1, %v2605_v61  ;;  %v2606_v5 = vadd.f32 -0.28449672, %v2602_v21  ;;  %v4488_v61 = vld [vmem:[#allocation11 + $0x4] ss:$16 sps:$4 sm:$0xff]   ;;  %3003 = vmatpush1.bf16.msra.mxu1 %v4489_v22  ;;  %v4495_v21 = vld [vmem:[#allocation11 + $0x28] ss:$16 sps:$4 sm:$0xff]  }
 0x776   :  { %v2607_v4 = vmul.f32 %v4705_v56, %v2603_v31  ;;  %v2604_v62 = vadd.f32 -0.28449672, %v2600_v30  ;;  %2949 = vmatprep.subr.bf16.mxu0 %v4488_v61  ;;  %v4497_v31 = vld [vmem:[#allocation11 + $0x2c] ss:$16 sps:$4 sm:$0xff]  }
 0x777   :  { %v2613_v41 = vadd.f32 0.2548296, %v2609_v27  ;;  %v2610_v33 = vmul.f32 %v4707_v12, %v2606_v5  ;;  %2950 = vmatpush1.bf16.msra.mxu0 %v4486_v37  ;;  %v4492_v27 = vld [vmem:[#allocation11 + $0x20] ss:$16 sps:$4 sm:$0xff]   ;;  %3004 = vmatprep.subr.bf16.mxu1 %v4497_v31 }
 0x778   :  { %v2611_v17 = vadd.f32 0.2548296, %v2607_v4  ;;  %v2608_v23 = vmul.f32 %v4709_v40, %v2604_v62  ;;  %2951 = vmatprep.subr.bf16.mxu0 %v4494_v53 }
 0x779   :  { %v2617_v35 = vmul.f32 %v4703_v1, %v2613_v41  ;;  %v2614_v16 = vadd.f32 0.2548296, %v2610_v33  ;;  %3005 = vmatpush1.bf16.msra.mxu1 %v4495_v21 }
 0x77a   :  { %v2615_v58 = vmul.f32 %v4705_v56, %v2611_v17  ;;  %v2612_v9 = vadd.f32 0.2548296, %v2608_v23 }
 0x77b   :  { %v2637_v60 = vmul.f32 %v4711_v48, %v2617_v35  ;;  %v2618_v14 = vmul.f32 %v4707_v12, %v2614_v16  ;;  %2952 = vmatpush1.bf16.msra.mxu0 %v4492_v27 }
 0x77c   :  { %v2635_v18 = vmul.f32 %v4713_v42, %v2615_v58  ;;  %v2616_v10 = vmul.f32 %v4709_v40, %v2612_v9  ;;  %v4501_v9 = vld [vmem:[#allocation11 + $0x48] ss:$16 sps:$4 sm:$0xff]  }
 0x77d   :  { %v2641_v43 = vsub.f32 1.0, %v2637_v60  ;;  %v2638_v20 = vmul.f32 %v4715_v63, %v2618_v14  ;;  %v4500_v14 = vld [vmem:[#allocation11 + $0x44] ss:$16 sps:$4 sm:$0xff]   ;;  %v4503_v63 = vld [vmem:[#allocation11 + $0x4c] ss:$16 sps:$4 sm:$0xff]  }
 0x77e   :  { %v2639_v49 = vsub.f32 1.0, %v2635_v18  ;;  %v2636_v2 = vmul.f32 %v4717_v25, %v2616_v10  ;;  %2953 = vmatprep.subr.bf16.mxu0 %v4500_v14  ;;  %3006 = vmatprep.subr.bf16.mxu1 %v4503_v63  ;;  %v4509_v10 = vld [vmem:[#allocation11 + $0x6c] ss:$16 sps:$4 sm:$0xff]   ;;  %v4512_v25 = vld [vmem:[#allocation11 + $0x84] ss:$16 sps:$4 sm:$0xff]  }
 0x77f   :  { %v2649_v8 = vsub.f32 0.0, %v2641_v43  ;;  %v2642_v56 = vsub.f32 1.0, %v2638_v20  ;;  %3007 = vmatpush1.bf16.msra.mxu1 %v4501_v9  ;;  %v4507_v20 = vld [vmem:[#allocation11 + $0x68] ss:$16 sps:$4 sm:$0xff]   ;;  %v4536_v14 = vld [vmem:[#allocation13] sm:$0xff]  }
 0x780   :  { %v2647_v1 = vsub.f32 0.0, %v2639_v49  ;;  %v2640_v47 = vsub.f32 1.0, %v2636_v2  ;;  %3008 = vmatprep.subr.bf16.mxu1 %v4509_v10  ;;  %v4518_v2 = vld [vmem:[#allocation11 + $0xa4] ss:$16 sps:$4 sm:$0xff]   ;;  %v4539_v9 = vld [vmem:[#allocation13 + $0xc8] sm:$0xff]  }
 0x781   :  { %v2653_v26 = vsel %vm2645_vm2, %v2641_v43, %v2649_v8  ;;  %v2650_v28 = vsub.f32 0.0, %v2642_v56  ;;  %v4498_v43 = vld [vmem:[#allocation11 + $0x40] ss:$16 sps:$4 sm:$0xff]   ;;  %v4506_v8 = vld [vmem:[#allocation11 + $0x64] ss:$16 sps:$4 sm:$0xff]   ;;  %v4540_v63 = vld [vmem:[#allocation13 + $0x8] sm:$0xff]  }
 0x782   :  { %v2651_v51 = vsel %vm2643_vm3, %v2639_v49, %v2647_v1  ;;  %v2657_v52 = vadd.f32 1.0, %v2653_v26  ;;  %v2648_v57 = vsub.f32 0.0, %v2640_v47  ;;  %2954 = vmatpush1.bf16.msra.mxu0 %v4498_v43  ;;  %v4504_v49 = vld [vmem:[#allocation11 + $0x60] ss:$16 sps:$4 sm:$0xff]   ;;  %v4515_v1 = vld [vmem:[#allocation11 + $0x8c] ss:$16 sps:$4 sm:$0xff]  }
 0x783   :  { %v2655_v12 = vadd.f32 1.0, %v2651_v51  ;;  %v2654_v32 = vsel %vm2646_vm4, %v2642_v56, %v2650_v28  ;;  %2955 = vmatprep.subr.bf16.mxu0 %v4506_v8  ;;  %v4510_v26 = vld [vmem:[#allocation11 + $0x80] ss:$16 sps:$4 sm:$0xff]   ;;  %3009 = vmatpush1.bf16.msra.mxu1 %v4507_v20  ;;  %v4513_v56 = vld [vmem:[#allocation11 + $0x88] ss:$16 sps:$4 sm:$0xff]  }
 0x784   :  { %v2661_v0 = vmul.f32 %v2657_v52, %v2561_v34  ;;  %v2652_v44 = vsel %vm2644_vm5, %v2640_v47, %v2648_v57  ;;  %v2658_v55 = vadd.f32 1.0, %v2654_v32  ;;  %3010 = vmatprep.subr.bf16.mxu1 %v4515_v1  ;;  %v4516_v51 = vld [vmem:[#allocation11 + $0xa0] ss:$16 sps:$4 sm:$0xff]   ;;  %v4519_v52 = vld [vmem:[#allocation11 + $0xa8] ss:$16 sps:$4 sm:$0xff]  }
 0x785   :  { %v2659_v40 = vmul.f32 %v2655_v12, %v2559_v59  ;;  %v2656_v38 = vadd.f32 1.0, %v2652_v44  ;;  %v4521_v59 = vld [vmem:[#allocation11 + $0xac] ss:$16 sps:$4 sm:$0xff]   ;;  %v4524_v12 = vld [vmem:[#allocation11 + $0xc4] ss:$16 sps:$4 sm:$0xff]  }
 0x786   :  { %v6013_v7 = vadd.f32 %v4791_v45, %v2661_v0  ;;  %v2662_v50 = vmul.f32 %v2658_v55, %v2562_v54  ;;  %2956 = vmatpush1.bf16.msra.mxu0 %v4504_v49  ;;  %v4527_v28 = vld [vmem:[#allocation11 + $0xcc] ss:$16 sps:$4 sm:$0xff]   ;;  %v4522_v47 = vld [vmem:[#allocation11 + $0xc0] ss:$16 sps:$4 sm:$0xff]   ;;  %v4525_v34 = vld [vmem:[#allocation11 + $0xc8] ss:$16 sps:$4 sm:$0xff]  }
 0x787   :  { %v6008_v46 = vadd.f32 %v4790_v19, %v2659_v40  ;;  %v2660_v13 = vmul.f32 %v2656_v38, %v2560_v11  ;;  %2957 = vmatprep.subr.bf16.mxu0 %v4512_v25  ;;  %3011 = vmatpush1.bf16.msra.mxu1 %v4513_v56  ;;  %v4530_v40 = vld [vmem:[#allocation11 + $0xe4] ss:$16 sps:$4 sm:$0xff]   ;;  %v4533_v32 = vld [vmem:[#allocation11 + $0xec] ss:$16 sps:$4 sm:$0xff]   ;;  %v4528_v57 = vld [vmem:[#allocation11 + $0xe0] ss:$16 sps:$4 sm:$0xff]  }
 0x788   :  { %6538 = vst [vmem:[#allocation23_spill] sm:$0xff] %v6013_v7  ;;  %v6019_v29 = vadd.f32 %v4793_v24, %v2662_v50  ;;  %3012 = vmatprep.subr.bf16.mxu1 %v4521_v59  ;;  %v4531_v0 = vld [vmem:[#allocation11 + $0xe8] ss:$16 sps:$4 sm:$0xff]   ;;  %v4535_v43 = vld [vmem:[#allocation13 + $0xc0] sm:$0xff]   ;;  %v4543_v8 = vld [vmem:[#allocation13 + $0xd0] sm:$0xff]  }
 0x789   :  { %6537 = vst [vmem:[#allocation21_spill] sm:$0xff] %v6008_v46  ;;  %2669 = vadd.xlane.f32.xlu0 %v6008_v46  ;;  %v6015_v3 = vadd.f32 %v4792_v36, %v2660_v13  ;;  %v4541_v49 = vld [vmem:[#allocation13 + $0x88] sm:$0xff]   ;;  %v4544_v20 = vld [vmem:[#allocation13 + $0x10] sm:$0xff]   ;;  %v4546_v25 = vld [vmem:[#allocation13 + $0x58] sm:$0xff]  }
 0x78a   :  { %6540 = vst [vmem:[#allocation25_spill] sm:$0xff] %v6019_v29  ;;  %2958 = vmatpush1.bf16.msra.mxu0 %v4510_v26  ;;  %v4545_v10 = vld [vmem:[#allocation13 + $0x90] sm:$0xff]   ;;  %v4547_v1 = vld [vmem:[#allocation13 + $0xd8] sm:$0xff]   ;;  %v4551_v59 = vld [vmem:[#allocation13 + $0xe0] sm:$0xff]  }
 0x78b   :  { %6539 = vst [vmem:[#allocation22_spill] sm:$0xff] %v6015_v3  ;;  %2671 = vadd.xlane.f32.xlu1 %v6015_v3  ;;  %2959 = vmatprep.subr.bf16.mxu0 %v4518_v2  ;;  %v4548_v26 = vld [vmem:[#allocation13 + $0x18] sm:$0xff]   ;;  %v4550_v2 = vld [vmem:[#allocation13 + $0x60] sm:$0xff]  }
 0x78c   :  { %3013 = vmatpush1.bf16.msra.mxu1 %v4519_v52  ;;  %v4549_v56 = vld [vmem:[#allocation13 + $0x98] sm:$0xff]   ;;  %v4553_v52 = vld [vmem:[#allocation13 + $0xa0] sm:$0xff]  }
 0x78d   :  { %2673 = vadd.xlane.f32.xlu0 %v6013_v7  ;;  %3014 = vmatprep.subr.bf16.mxu1 %v4527_v28  ;;  %v4555_v28 = vld [vmem:[#allocation13 + $0xe8] sm:$0xff]  }
 0x78e   :  { %2960 = vmatpush1.bf16.msra.mxu0 %v4516_v51  ;;  %v4552_v51 = vld [vmem:[#allocation13 + $0x20] sm:$0xff]  }
 0x78f   :  { %2675 = vadd.xlane.f32.xlu1 %v6019_v29  ;;  %2961 = vmatprep.subr.bf16.mxu0 %v4524_v12  ;;  %v4554_v12 = vld [vmem:[#allocation13 + $0x68] sm:$0xff]  }
 0x790   :  { %3015 = vmatpush1.bf16.msra.mxu1 %v4525_v34  ;;  %v4557_v34 = vld [vmem:[#allocation13 + $0xa8] sm:$0xff]  }
 0x791   :  { %3016 = vmatprep.subr.bf16.mxu1 %v4533_v32  ;;  %v4559_v32 = vld [vmem:[#allocation13 + $0xf0] sm:$0xff]  }
 0x792   :  { %2962 = vmatpush1.bf16.msra.mxu0 %v4522_v47  ;;  %v4556_v47 = vld [vmem:[#allocation13 + $0x28] sm:$0xff]  }
 0x793   :  { %2963 = vmatprep.subr.bf16.mxu0 %v4530_v40  ;;  %v4558_v40 = vld [vmem:[#allocation13 + $0x70] sm:$0xff]  }
 0x794   :  { %3017 = vmatpush1.bf16.msra.mxu1 %v4531_v0  ;;  %v4561_v0 = vld [vmem:[#allocation13 + $0xb0] sm:$0xff]  }
 0x795   :  { %4110 = vmatprep.subr.bf16.mxu1 %v4535_v43 }
 0x796   :  { %2964 = vmatpush1.bf16.msra.mxu0 %v4528_v57  ;;  %v4560_v57 = vld [vmem:[#allocation13 + $0x30] sm:$0xff]  }
 0x816   :  { %v2670_v15 = vpop.xlane.xlu0 %2669 }
 0x817   :  { %v2677_v4 = vmul.f32 0.0078125, %v2670_v15  ;;  %v3932_v15 = vld [vmem:[%s6465_s9] ss:$0 sm:$0xff] }
 0x818   :  { %v2672_v30 = vpop.xlane.xlu1 %2671 }
 0x819   :  { %v6023_v41 = vsub.f32 %v6008_v46, %v2677_v4  ;;  %v2678_v33 = vmul.f32 0.0078125, %v2672_v30 }
 0x81a   :  { %v2674_v5 = vpop.xlane.xlu0 %2673 }
 0x81b   :  { %v2679_v17 = vmul.f32 0.0078125, %v2674_v5  ;;  %v2685_v35 = vmul.f32 %v6023_v41, %v6023_v41  ;;  %v6031_v48 = vsub.f32 %v6015_v3, %v2678_v33 }
 0x81c   :  { %v2676_v58 = vpop.xlane.xlu1 %2675 }
 0x81d   :  { %v6028_v62 = vsub.f32 %v6013_v7, %v2679_v17  ;;  %2689 = vadd.xlane.f32.xlu0 %v2685_v35  ;;  %v2680_v60 = vmul.f32 0.0078125, %v2676_v58  ;;  %v2686_v16 = vmul.f32 %v6031_v48, %v6031_v48 }
 0x81f   :  { %v2687_v42 = vmul.f32 %v6028_v62, %v6028_v62  ;;  %v6038_v23 = vsub.f32 %v6019_v29, %v2680_v60  ;;  %2691 = vadd.xlane.f32.xlu1 %v2686_v16 }
 0x821   :  { %2693 = vadd.xlane.f32.xlu0 %v2687_v42  ;;  %v2688_v18 = vmul.f32 %v6038_v23, %v6038_v23 }
 0x823   :  { %2695 = vadd.xlane.f32.xlu1 %v2688_v18  ;;  %v4534_v18 = vld [vmem:[#allocation13 + $0x40] sm:$0xff]  }
 0x824   :  { %4082 = vmatprep.subr.bf16.mxu0 %v4534_v18 }
 0x8aa   :  { %v2690_v44 = vpop.xlane.xlu0 %2689 }
 0x8ab   :  { %v2697_v19 = vmul.f32 0.0078125, %v2690_v44  ;;  %v4562_v44 = vld [vmem:[#allocation13 + $0x78] sm:$0xff]  }
 0x8ac   :  { %v2692_v38 = vpop.xlane.xlu1 %2691 }
 0x8ad   :  { %v2701_v55 = vadd.f32 1e-05, %v2697_v19  ;;  %v2698_v13 = vmul.f32 0.0078125, %v2692_v38  ;;  %v4563_v19 = vld [vmem:[#allocation13 + $0xf8] sm:$0xff]  }
 0x8ae   :  { %v2694_v11 = vpop.xlane.xlu0 %2693  ;;  %v2767_v38 = vld [vmem:[%s6467_s11] sm:$0xf] }
 0x8af   :  { %4718 = vrsqrt.f32 %v2701_v55  ;;  %v2699_v54 = vmul.f32 0.0078125, %v2694_v11  ;;  %v2702_v45 = vadd.f32 1e-05, %v2698_v13  ;;  %v4564_v55 = vld [vmem:[#allocation13 + $0x38] sm:$0xff]  }
 0x8b0   :  { %v2696_v36 = vpop.xlane.xlu1 %2695  ;;  %v4565_v11 = vld [vmem:[#allocation13 + $0xb8] sm:$0xff]  }
 0x8b1   :  { %v2703_v50 = vadd.f32 1e-05, %v2699_v54  ;;  %4720 = vrsqrt.f32 %v2702_v45  ;;  %v2700_v24 = vmul.f32 0.0078125, %v2696_v36  ;;  %v6541_v54 = vld [vmem:[#allocation20_spill] sm:$0xff] }
 0x8b2   :  { %v2783_v13 = vsub.s32 3, %v6541_v54  ;;  %v6542_v45 = vsub.s32 0, %v6541_v54  ;;  %v6543_v36 = vsub.s32 2, %v6541_v54 }
 0x8b3   :  { %4722 = vrsqrt.f32 %v2703_v50  ;;  %v2704_v37 = vadd.f32 1e-05, %v2700_v24 }
 0x8b4   :  { %v6060_v50 = vrot.slane %v2767_v38, %v6542_v45  ;;  %v6064_v24 = vrot.slane %v2767_v38, %v6543_v36 }
 0x8b5   :  { %4724 = vrsqrt.f32 %v2704_v37  ;;  %v6544_v37 = vsub.s32 1, %v6541_v54 }
 0x8b9   :  { %v4719_v61 = vpop.eup %4718 }
 0x8ba   :  { %v2709_v22 = vmul.f32 %v4719_v61, %v6023_v41  ;;  %v6068_v61 = vrot.slane %v2767_v38, %v6544_v37 }
 0x8bb   :  { %v4721_v53 = vpop.eup %4720 }
 0x8bc   :  { %v2710_v31 = vmul.f32 %v4721_v53, %v6031_v48  ;;  %v2719_v27 = vmul.f32 %v3931_v6, %v2709_v22  ;;  %v6070_v22 = vrot.slane %v2767_v38, %v2783_v13 }
 0x8bd   :  { %v4723_v21 = vpop.eup %4722 }
 0x8be   :  { %v2720_v4 = vmul.f32 %v3931_v6, %v2710_v31  ;;  %v2729_v30 = vadd.f32 %v3932_v15, %v2719_v27  ;;  %v2711_v35 = vmul.f32 %v4723_v21, %v6028_v62  ;;  %v4537_v62 = vld [vmem:[#allocation13 + $0x80] sm:$0xff]  }
 0x8bf   :  { %v4725_v5 = vpop.eup %4724 }
 0x8c0   :  { %v2730_v17 = vadd.f32 %v3932_v15, %v2720_v4  ;;  %v2712_v41 = vmul.f32 %v4725_v5, %v6038_v23  ;;  %v2721_v42 = vmul.f32 %v3931_v6, %v2711_v35  ;;  %v4538_v23 = vld [vmem:[#allocation13 + $0x48] sm:$0xff]  }
 0x8c2   :  { %v2733_v33 = vpack.c.bf16 %v2730_v17, %v2729_v30  ;;  %v2722_v58 = vmul.f32 %v3931_v6, %v2712_v41  ;;  %v2731_v60 = vadd.f32 %v3932_v15, %v2721_v42 }
 0x8c4   :  { %2982 = vmatmul.mubr.bf16.vlgmr.msra.gmra.mrb[64].mxu0 %v2733_v33  ;;  %3035 = vmatmul.mubr.bf16.vlgmr.msra.gmra.mrb[24].mxu1 %v2733_v33  ;;  %v2732_v48 = vadd.f32 %v3932_v15, %v2722_v58 }
 0x8c5   :  { %2991 = vmatprep.mubr.bf16.mxu0 %v6536_v39  ;;  %3044 = vmatprep.mubr.bf16.mxu1 %v6536_v39  ;;  %v4542_v39 = vld [vmem:[#allocation13 + $0x50] sm:$0xff]  }
 0x8c6   :  { %v2734_v16 = vpack.c.bf16 %v2732_v48, %v2731_v60  ;;  %4083 = vmatpush3.bf16.msra.mxu0 %v4536_v14  ;;  %4111 = vmatpush3.bf16.msra.mxu1 %v4537_v62 }
 0x8c7   :  { %4084 = vmatprep.subr.bf16.mxu0 %v4538_v23  ;;  %4112 = vmatprep.subr.bf16.mxu1 %v4539_v9 }
 0x8ca   :  { %4085 = vmatpush3.bf16.msra.mxu0 %v4540_v63  ;;  %4113 = vmatpush3.bf16.msra.mxu1 %v4541_v49 }
 0x8cb   :  { %4086 = vmatprep.subr.bf16.mxu0 %v4542_v39  ;;  %4114 = vmatprep.subr.bf16.mxu1 %v4543_v8 }
 0x8cc   :  { %2992 = vmatmul.mubr.bf16.gmra.mrb[68].mxu0 %v2734_v16  ;;  %3045 = vmatmul.mubr.bf16.gmra.mrb[28].mxu1 %v2734_v16 }
 0x8ce   :  { %4087 = vmatpush3.bf16.msra.mxu0 %v4544_v20  ;;  %4115 = vmatpush3.bf16.msra.mxu1 %v4545_v10 }
 0x8cf   :  { %4088 = vmatprep.subr.bf16.mxu0 %v4546_v25  ;;  %4116 = vmatprep.subr.bf16.mxu1 %v4547_v1 }
 0x8d2   :  { %4089 = vmatpush3.bf16.msra.mxu0 %v4548_v26  ;;  %4117 = vmatpush3.bf16.msra.mxu1 %v4549_v56 }
 0x8d3   :  { %4090 = vmatprep.subr.bf16.mxu0 %v4550_v2  ;;  %4118 = vmatprep.subr.bf16.mxu1 %v4551_v59 }
 0x8d6   :  { %4091 = vmatpush3.bf16.msra.mxu0 %v4552_v51  ;;  %4119 = vmatpush3.bf16.msra.mxu1 %v4553_v52 }
 0x8d7   :  { %4092 = vmatprep.subr.bf16.mxu0 %v4554_v12  ;;  %4120 = vmatprep.subr.bf16.mxu1 %v4555_v28 }
 0x8da   :  { %4093 = vmatpush3.bf16.msra.mxu0 %v4556_v47  ;;  %4121 = vmatpush3.bf16.msra.mxu1 %v4557_v34 }
 0x8db   :  { %4094 = vmatprep.subr.bf16.mxu0 %v4558_v40  ;;  %4122 = vmatprep.subr.bf16.mxu1 %v4559_v32 }
 0x8de   :  { %4095 = vmatpush3.bf16.msra.mxu0 %v4560_v57  ;;  %4123 = vmatpush3.bf16.msra.mxu1 %v4561_v0 }
 0x8df   :  { %4096 = vmatprep.subr.bf16.mxu0 %v4562_v44  ;;  %4124 = vmatprep.subr.bf16.mxu1 %v4563_v19 }
 0x8e2   :  { %4097 = vmatpush3.bf16.msra.mxu0 %v4564_v55  ;;  %4125 = vmatpush3.bf16.msra.mxu1 %v4565_v11 }
 0x997   :  { %v2983_v6 = vpop.f32.mrb[64].mxu0  ;;  %v3036_v53 = vpop.f32.mrb[24].mxu1 }
 0x998   :  { %v6073_v31 = vadd.f32 %v2983_v6, %v6060_v50  ;;  %v6076_v27 = vadd.f32 %v3036_v53, %v6064_v24  ;;  %v2985_v21 = vpop.f32.mrb[65].mxu0  ;;  %v3038_v15 = vpop.f32.mrb[25].mxu1 }
 0x999   :  { %v6079_v4 = vadd.f32 %v2985_v21, %v6068_v61  ;;  %v6082_v5 = vadd.f32 %v3038_v15, %v6070_v22  ;;  %v2987_v30 = vpop.f32.mrb[66].mxu0  ;;  %v3040_v17 = vpop.f32.mrb[26].mxu1 }
 0x99a   :  { %v6085_v35 = vmul.f32 0.70710677, %v6073_v31  ;;  %v6088_v41 = vmul.f32 0.70710677, %v6076_v27  ;;  %v2989_v63 = vpop.f32.mrb[67].mxu0  ;;  %v3042_v49 = vpop.f32.mrb[27].mxu1  ;;  %v6109_v10 = vadd.f32 %v2987_v30, %v6060_v50  ;;  %v6116_v26 = vadd.f32 %v3040_v17, %v6064_v24 }
 0x99b   :  { %v6091_v33 = vmul.f32 0.70710677, %v6079_v4  ;;  %v6094_v58 = vmul.f32 0.70710677, %v6082_v5  ;;  %v6126_v52 = vadd.f32 %v2989_v63, %v6068_v61  ;;  %v6137_v32 = vadd.f32 %v3042_v49, %v6070_v22 }
 0x99c   :  { %v3087_v42 = vand.u32 2147483647, %v6085_v35  ;;  %v3089_v48 = vand.u32 2147483647, %v6088_v41  ;;  %v6123_v51 = vmul.f32 0.70710677, %v6109_v10 }
 0x99d   :  { %v6099_v60 = vand.u32 2147483647, %v6091_v33  ;;  %v6102_v16 = vand.u32 2147483647, %v6094_v58  ;;  %v6133_v34 = vmul.f32 0.70710677, %v6116_v26 }
 0x99e   :  { %v3103_v18 = vmul.f32 0.3275911, %v3087_v42  ;;  %v3105_v43 = vmul.f32 0.3275911, %v3089_v48  ;;  %v3295_v47 = vsub.f32 0.0, %v3087_v42  ;;  %v3297_v57 = vsub.f32 0.0, %v3089_v48 }
 0x99f   :  { %v3104_v14 = vmul.f32 0.3275911, %v6099_v60  ;;  %v3106_v9 = vmul.f32 0.3275911, %v6102_v16  ;;  %v2993_v39 = vpop.f32.mrb[68].mxu0  ;;  %v6106_v8 = vpop.f32.mrb[28].mxu1 }
 0x9a0   :  { %v3119_v62 = vadd.f32 1.0, %v3103_v18  ;;  %v3121_v23 = vadd.f32 1.0, %v3105_v43  ;;  %v6111_v25 = vpop.f32.mrb[69].mxu0  ;;  %v6113_v1 = vpop.f32.mrb[29].mxu1  ;;  %v3091_v40 = vand.u32 2147483647, %v6123_v51  ;;  %v3311_v55 = vmul.f32 %v3295_v47, %v3087_v42 }
 0x9a1   :  { %v3120_v20 = vadd.f32 1.0, %v3104_v14  ;;  %v6118_v56 = vpop.f32.mrb[70].mxu0  ;;  %v6120_v2 = vpop.f32.mrb[30].mxu1  ;;  %v3122_v59 = vadd.f32 1.0, %v3106_v9  ;;  %v3093_v0 = vand.u32 2147483647, %v6133_v34  ;;  %v3313_v45 = vmul.f32 %v3297_v57, %v3089_v48 }
 0x9a2   :  { %4726 = vrcp.f32 %v3119_v62  ;;  %v6128_v12 = vpop.f32.mrb[71].mxu0  ;;  %v6130_v28 = vpop.f32.mrb[31].mxu1  ;;  %v6141_v44 = vmul.f32 0.70710677, %v6126_v52  ;;  %v3107_v19 = vmul.f32 0.3275911, %v3091_v40  ;;  %v6161_v9 = vadd.f32 %v2993_v39, %v6060_v50 }
 0x9a3   :  { %4728 = vrcp.f32 %v3121_v23  ;;  %v3109_v11 = vmul.f32 0.3275911, %v3093_v0  ;;  %v6145_v13 = vmul.f32 0.70710677, %v6137_v32  ;;  %v3299_v53 = vsub.f32 0.0, %v3091_v40 }
 0x9a4   :  { %4730 = vrcp.f32 %v3120_v20  ;;  %v3092_v38 = vand.u32 2147483647, %v6141_v44  ;;  %v3123_v54 = vadd.f32 1.0, %v3107_v19  ;;  %v3327_v17 = vmul.f32 1.442695, %v3311_v55  ;;  %6545 = vst [vmem:[#allocation24_spill] sm:$0xff] %v6161_v9 }
 0x9a5   :  { %4732 = vrcp.f32 %v3122_v59  ;;  %v3125_v36 = vadd.f32 1.0, %v3109_v11  ;;  %v6150_v21 = vand.u32 2147483647, %v6145_v13  ;;  %v3301_v43 = vsub.f32 0.0, %v3093_v0 }
 0x9a6   :  { %v3108_v37 = vmul.f32 0.3275911, %v3092_v38  ;;  %4734 = vrcp.f32 %v3123_v54  ;;  %v6158_v14 = vmul.f32 0.5, %v6073_v31  ;;  %v3331_v23 = vmul.f32 1.442695, %v3313_v45 }
 0x9a7   :  { %4736 = vrcp.f32 %v3125_v36  ;;  %v3110_v48 = vmul.f32 0.3275911, %v6150_v21  ;;  %v3315_v20 = vmul.f32 %v3299_v53, %v3091_v40  ;;  %v6167_v57 = vmul.f32 0.5, %v6076_v27 }
 0x9a8   :  { %v3124_v42 = vadd.f32 1.0, %v3108_v37  ;;  %v3296_v31 = vsub.f32 0.0, %v6099_v60  ;;  %v3317_v11 = vmul.f32 %v3301_v43, %v3093_v0  ;;  %v6175_v54 = vmul.f32 0.70710677, %v6161_v9 }
 0x9a9   :  { %v3126_v59 = vadd.f32 1.0, %v3110_v48  ;;  %v3335_v37 = vmul.f32 1.442695, %v3315_v20  ;;  %v3300_v53 = vsub.f32 0.0, %v3092_v38  ;;  %vm3391_vm6 = vcmp.ge.f32.partialorder %v6085_v35, 0.0 }
 0x9aa   :  { %4738 = vrcp.f32 %v3124_v42  ;;  %6546 = vst [vmem:[#allocation27_spill] sm:$0xff] %v6175_v54  ;;  %v3312_v48 = vmul.f32 %v3296_v31, %v6099_v60  ;;  %v3302_v60 = vsub.f32 0.0, %v6150_v21  ;;  %vm3393_vm7 = vcmp.ge.f32.partialorder %v6088_v41, 0.0 }
 0x9ab   :  { %4740 = vpow2.f32 %v3327_v17  ;;  %vm3395_vm8 = vcmp.ge.f32.partialorder %v6123_v51, 0.0  ;;  %vm3397_vm9 = vcmp.ge.f32.partialorder %v6133_v34, 0.0  ;;  %v6248_v51 = vadd.f32 %v6111_v25, %v6068_v61 }
 0x9ac   :  { %v6147_v6 = vpop.eup %4726  ;;  %4742 = vrcp.f32 %v3126_v59  ;;  %vm3396_vm10 = vcmp.ge.f32.partialorder %v6141_v44, 0.0  ;;  %vm3392_vm11 = vcmp.ge.f32.partialorder %v6091_v33, 0.0  ;;  %vm3394_vm12 = vcmp.ge.f32.partialorder %v6094_v58, 0.0 }
 0x9ad   :  { %v6152_v15 = vpop.eup %4728  ;;  %v3151_v30 = vmul.f32 1.0614054, %v6147_v6  ;;  %4744 = vpow2.f32 %v3331_v23  ;;  %vm3398_vm13 = vcmp.ge.f32.partialorder %v6145_v13, 0.0 }
 0x9ae   :  { %v3153_v18 = vmul.f32 1.0614054, %v6152_v15  ;;  %v6163_v63 = vpop.eup %4730  ;;  %4746 = vpow2.f32 %v3335_v37 }
 0x9af   :  { %v3167_v62 = vadd.f32 -1.4531521, %v3151_v30  ;;  %v3152_v19 = vmul.f32 1.0614054, %v6163_v63  ;;  %v6171_v55 = vpop.eup %4732 }
 0x9b0   :  { %v3169_v49 = vadd.f32 -1.4531521, %v3153_v18  ;;  %v3154_v36 = vmul.f32 1.0614054, %v6171_v55  ;;  %v6181_v18 = vand.u32 2147483647, %v6175_v54  ;;  %v6183_v0 = vpop.eup %4734 }
 0x9b1   :  { %v3183_v47 = vmul.f32 %v6147_v6, %v3167_v62  ;;  %v3168_v45 = vadd.f32 -1.4531521, %v3152_v19  ;;  %v3298_v62 = vsub.f32 0.0, %v6102_v16  ;;  %v6188_v23 = vpop.eup %4736  ;;  %v3155_v19 = vmul.f32 1.0614054, %v6183_v0 }
 0x9b2   :  { %v3185_v39 = vmul.f32 %v6152_v15, %v3169_v49  ;;  %v3170_v17 = vadd.f32 -1.4531521, %v3154_v36  ;;  %v3339_v49 = vmul.f32 1.442695, %v3317_v11  ;;  %v3111_v31 = vmul.f32 0.3275911, %v6181_v18 }
 0x9b3   :  { %v3199_v40 = vadd.f32 1.4214138, %v3183_v47  ;;  %v3184_v42 = vmul.f32 %v6163_v63, %v3168_v45  ;;  %v3316_v45 = vmul.f32 %v3300_v53, %v3092_v38 }
 0x9b4   :  { %v3201_v27 = vadd.f32 1.4214138, %v3185_v39  ;;  %v3186_v47 = vmul.f32 %v6171_v55, %v3170_v17  ;;  %v6196_v11 = vpop.eup %4738  ;;  %4748 = vpow2.f32 %v3339_v49  ;;  %v3127_v49 = vadd.f32 1.0, %v3111_v31 }
 0x9b5   :  { %v3215_v30 = vmul.f32 %v6147_v6, %v3199_v40  ;;  %v3200_v59 = vadd.f32 1.4214138, %v3184_v42  ;;  %v3157_v40 = vmul.f32 1.0614054, %v6188_v23  ;;  %v3314_v42 = vmul.f32 %v3298_v62, %v6102_v16  ;;  %v4741_v53 = vpop.eup %4740 }
 0x9b6   :  { %v3217_v43 = vmul.f32 %v6152_v15, %v3201_v27  ;;  %v3171_v27 = vadd.f32 -1.4531521, %v3155_v19  ;;  %v3202_v29 = vadd.f32 1.4214138, %v3186_v47  ;;  %v3156_v7 = vmul.f32 1.0614054, %v6196_v11  ;;  %v6204_v46 = vpop.eup %4742 }
 0x9b7   :  { %v3231_v20 = vadd.f32 -0.28449672, %v3215_v30  ;;  %v3173_v17 = vadd.f32 -1.4531521, %v3157_v40  ;;  %v3216_v37 = vmul.f32 %v6163_v63, %v3200_v59  ;;  %v3337_v3 = vmul.f32 1.442695, %v3316_v45  ;;  %v4745_v40 = vpop.eup %4744 }
 0x9b8   :  { %v3233_v39 = vadd.f32 -0.28449672, %v3217_v43  ;;  %v3187_v38 = vmul.f32 %v6183_v0, %v3171_v27  ;;  %v3318_v62 = vmul.f32 %v3302_v60, %v6150_v21  ;;  %v3158_v27 = vmul.f32 1.0614054, %v6204_v46 }
 0x9b9   :  { %v3247_v36 = vmul.f32 %v6147_v6, %v3231_v20  ;;  %v3189_v19 = vmul.f32 %v6188_v23, %v3173_v17  ;;  %v3232_v17 = vadd.f32 -0.28449672, %v3216_v37  ;;  %v3218_v54 = vmul.f32 %v6171_v55, %v3202_v29 }
 0x9ba   :  { %v3249_v30 = vmul.f32 %v6152_v15, %v3233_v39  ;;  %v3203_v16 = vadd.f32 1.4214138, %v3187_v38  ;;  %v3174_v21 = vadd.f32 -1.4531521, %v3158_v27  ;;  %v3329_v60 = vmul.f32 1.442695, %v3312_v48  ;;  %v4747_v38 = vpop.eup %4746 }
 0x9bb   :  { %v3263_v43 = vadd.f32 0.2548296, %v3247_v36  ;;  %v3205_v47 = vadd.f32 1.4214138, %v3189_v19  ;;  %v3172_v36 = vadd.f32 -1.4531521, %v3156_v7  ;;  %4750 = vpow2.f32 %v3337_v3 }
 0x9bc   :  { %v3265_v20 = vadd.f32 0.2548296, %v3249_v30  ;;  %v3219_v45 = vmul.f32 %v6183_v0, %v3203_v16  ;;  %4752 = vrcp.f32 %v3127_v49  ;;  %v3248_v19 = vmul.f32 %v6163_v63, %v3232_v17 }
 0x9bd   :  { %v3279_v39 = vmul.f32 %v6147_v6, %v3263_v43  ;;  %v3221_v6 = vmul.f32 %v6188_v23, %v3205_v47  ;;  %v3188_v43 = vmul.f32 %v6196_v11, %v3172_v36  ;;  %4754 = vpow2.f32 %v3329_v60 }
 0x9be   :  { %v3281_v59 = vmul.f32 %v6152_v15, %v3265_v20  ;;  %v3235_v31 = vadd.f32 -0.28449672, %v3219_v45  ;;  %v3341_v15 = vmul.f32 1.442695, %v3318_v62  ;;  %v4749_v16 = vpop.eup %4748  ;;  %v3333_v62 = vmul.f32 1.442695, %v3314_v42 }
 0x9bf   :  { %v3359_v30 = vmul.f32 %v4741_v53, %v3279_v39  ;;  %v3237_v7 = vadd.f32 -0.28449672, %v3221_v6  ;;  %v3204_v20 = vadd.f32 1.4214138, %v3188_v43  ;;  %v3190_v53 = vmul.f32 %v6204_v46, %v3174_v21 }
 0x9c0   :  { %v3361_v9 = vmul.f32 %v4745_v40, %v3281_v59  ;;  %v3251_v39 = vmul.f32 %v6183_v0, %v3235_v31  ;;  %v3234_v40 = vadd.f32 -0.28449672, %v3218_v54  ;;  %4756 = vpow2.f32 %v3341_v15 }
 0x9c1   :  { %v3375_v37 = vsub.f32 1.0, %v3359_v30  ;;  %v3253_v59 = vmul.f32 %v6188_v23, %v3237_v7  ;;  %v3220_v48 = vmul.f32 %v6196_v11, %v3204_v20  ;;  %v3206_v3 = vadd.f32 1.4214138, %v3190_v53 }
 0x9c2   :  { %v3377_v29 = vsub.f32 1.0, %v3361_v9  ;;  %v3267_v47 = vadd.f32 0.2548296, %v3251_v39  ;;  %v3264_v30 = vadd.f32 0.2548296, %v3248_v19  ;;  %v3250_v17 = vmul.f32 %v6171_v55, %v3234_v40 }
 0x9c3   :  { %v3269_v49 = vadd.f32 0.2548296, %v3253_v59  ;;  %v3236_v9 = vadd.f32 -0.28449672, %v3220_v48  ;;  %v3407_v36 = vsub.f32 0.0, %v3375_v37  ;;  %v3222_v43 = vmul.f32 %v6204_v46, %v3206_v3 }
 0x9c4   :  { %v3409_v27 = vsub.f32 0.0, %v3377_v29  ;;  %v3283_v54 = vmul.f32 %v6183_v0, %v3267_v47  ;;  %4758 = vpow2.f32 %v3333_v62  ;;  %v3059_v42 = vmul.f32 0.5, %v6109_v10 }
 0x9c5   :  { %v3285_v45 = vmul.f32 %v6188_v23, %v3269_v49  ;;  %v3252_v6 = vmul.f32 %v6196_v11, %v3236_v9  ;;  %v6229_v60 = vadd.f32 %v6106_v8, %v6064_v24  ;;  %v3061_v31 = vmul.f32 0.5, %v6116_v26  ;;  %v4751_v20 = vpop.eup %4750 }
 0x9c6   :  { %v3363_v21 = vmul.f32 %v4747_v38, %v3283_v54  ;;  %v3238_v7 = vadd.f32 -0.28449672, %v3222_v43  ;;  %v3423_v23 = vsel %vm3391_vm6, %v3375_v37, %v3407_v36  ;;  %v3425_v53 = vsel %vm3393_vm7, %v3377_v29, %v3409_v27  ;;  %v6237_v10 = vpop.eup %4752 }
 0x9c7   :  { %v3365_v15 = vmul.f32 %v4749_v16, %v3285_v45  ;;  %v3268_v0 = vadd.f32 0.2548296, %v3252_v6  ;;  %v3280_v8 = vmul.f32 %v6163_v63, %v3264_v30  ;;  %v3266_v38 = vadd.f32 0.2548296, %v3250_v17  ;;  %v4755_v63 = vpop.eup %4754 }
 0x9c8   :  { %v3379_v19 = vsub.f32 1.0, %v3363_v21  ;;  %v3254_v35 = vmul.f32 %v6204_v46, %v3238_v7  ;;  %v6244_v37 = vmul.f32 0.70710677, %v6229_v60  ;;  %v3439_v41 = vadd.f32 1.0, %v3423_v23 }
 0x9c9   :  { %v3381_v39 = vsub.f32 1.0, %v3365_v15  ;;  %v3284_v26 = vmul.f32 %v6196_v11, %v3268_v0  ;;  %v3441_v29 = vadd.f32 1.0, %v3425_v53  ;;  %v3360_v47 = vmul.f32 %v4755_v63, %v3280_v8 }
 0x9ca   :  { %v3411_v16 = vsub.f32 0.0, %v3379_v19  ;;  %v3270_v3 = vadd.f32 0.2548296, %v3254_v35  ;;  %v6251_v11 = vand.u32 2147483647, %v6244_v37  ;;  %v4757_v62 = vpop.eup %4756  ;;  %v3282_v49 = vmul.f32 %v6171_v55, %v3266_v38 }
 0x9cb   :  { %v3413_v40 = vsub.f32 0.0, %v3381_v39  ;;  %v3364_v48 = vmul.f32 %v4751_v20, %v3284_v26  ;;  %v3159_v25 = vmul.f32 1.0614054, %v6237_v10  ;;  %v6260_v17 = vmul.f32 %v3439_v41, %v6158_v14 }
 0x9cc   :  { %v3427_v59 = vsel %vm3395_vm8, %v3379_v19, %v3411_v16  ;;  %v3286_v30 = vmul.f32 %v6204_v46, %v3270_v3  ;;  %v3113_v54 = vmul.f32 0.3275911, %v6251_v11  ;;  %v6263_v45 = vmul.f32 %v3441_v29, %v6167_v57 }
 0x9cd   :  { %v3443_v9 = vadd.f32 1.0, %v3427_v59  ;;  %v3429_v36 = vsel %vm3397_vm9, %v3381_v39, %v3413_v40  ;;  %v6268_v55 = vmul.f32 0.70710677, %v6248_v51  ;;  %v3380_v21 = vsub.f32 1.0, %v3364_v48 }
 0x9ce   :  { %v3445_v27 = vadd.f32 1.0, %v3429_v36  ;;  %v4759_v34 = vpop.eup %4758  ;;  %v3366_v46 = vmul.f32 %v4757_v62, %v3286_v30  ;;  %v3129_v15 = vadd.f32 1.0, %v3113_v54  ;;  %v3376_v57 = vsub.f32 1.0, %v3360_v47 }
 0x9cf   :  { %v6265_v6 = vmul.f32 %v3443_v9, %v3059_v42  ;;  %v3362_v0 = vmul.f32 %v4759_v34, %v3282_v49  ;;  %v6275_v14 = vand.u32 2147483647, %v6268_v55  ;;  %v3175_v20 = vadd.f32 -1.4531521, %v3159_v25 }
 0x9d0   :  { %v6270_v43 = vmul.f32 %v3445_v27, %v3061_v31  ;;  %4760 = vrcp.f32 %v3129_v15  ;;  %v3412_v31 = vsub.f32 0.0, %v3380_v21  ;;  %v3382_v53 = vsub.f32 1.0, %v3366_v46 }
 0x9d1   :  { %v3471_v7 = vpack.c.bf16 %v6265_v6, %v6260_v17  ;;  %v3112_v23 = vmul.f32 0.3275911, %v6275_v14  ;;  %v3378_v19 = vsub.f32 1.0, %v3362_v0  ;;  %v6282_v38 = vadd.f32 %v6113_v1, %v6070_v22 }
 0x9d2   :  { %v3473_v42 = vpack.c.bf16 %v6270_v43, %v6263_v45  ;;  %v3408_v39 = vsub.f32 0.0, %v3376_v57  ;;  %v3191_v26 = vmul.f32 %v6237_v10, %v3175_v20  ;;  %v6287_v16 = vadd.f32 %v6118_v56, %v6060_v50 }
 0x9d3   :  { %v3128_v8 = vadd.f32 1.0, %v3112_v23  ;;  %v6291_v35 = vadd.f32 %v6120_v2, %v6064_v24  ;;  %v3056_v41 = vmul.f32 0.5, %v6079_v4  ;;  %v3058_v29 = vmul.f32 0.5, %v6082_v5 }
 0x9d4   :  { %v3428_v1 = vsel %vm3396_vm10, %v3380_v21, %v3412_v31  ;;  %v3414_v40 = vsub.f32 0.0, %v3382_v53  ;;  %v6297_v63 = vmul.f32 0.70710677, %v6282_v38  ;;  %v6300_v59 = vmul.f32 0.70710677, %v6287_v16 }
 0x9d5   :  { %4762 = vrcp.f32 %v3128_v8  ;;  %v3410_v50 = vsub.f32 0.0, %v3378_v19  ;;  %v3303_v24 = vsub.f32 0.0, %v6181_v18  ;;  %v6305_v4 = vmul.f32 0.70710677, %v6291_v35 }
 0x9d6   :  { %v3424_v5 = vsel %vm3392_vm11, %v3376_v57, %v3408_v39  ;;  %v3207_v56 = vadd.f32 1.4214138, %v3191_v26  ;;  %v6308_v2 = vand.u32 2147483647, %v6297_v63  ;;  %v6311_v44 = vand.u32 2147483647, %v6300_v59 }
 0x9d7   :  { %v3444_v48 = vadd.f32 1.0, %v3428_v1  ;;  %v6316_v33 = vand.u32 2147483647, %v6305_v4  ;;  %v3060_v3 = vmul.f32 0.5, %v6126_v52  ;;  %v3430_v62 = vsel %vm3398_vm13, %v3382_v53, %v3414_v40 }
 0x9d8   :  { %v3114_v47 = vmul.f32 0.3275911, %v6308_v2  ;;  %v3115_v49 = vmul.f32 0.3275911, %v6311_v44  ;;  %v3440_v36 = vadd.f32 1.0, %v3424_v5  ;;  %v3426_v27 = vsel %vm3394_vm12, %v3378_v19, %v3410_v50 }
 0x9d9   :  { %v3319_v30 = vmul.f32 %v3303_v24, %v6181_v18  ;;  %v3117_v58 = vmul.f32 0.3275911, %v6316_v33  ;;  %v3223_v13 = vmul.f32 %v6237_v10, %v3207_v56  ;;  %v6329_v52 = vadd.f32 %v6128_v12, %v6068_v61 }
 0x9da   :  { %v6321_v9 = vpop.eup %4760  ;;  %v3130_v54 = vadd.f32 1.0, %v3114_v47  ;;  %v3460_v34 = vmul.f32 %v3444_v48, %v3060_v3  ;;  %v3446_v21 = vadd.f32 1.0, %v3430_v62  ;;  %v3305_v46 = vsub.f32 0.0, %v6251_v11 }
 0x9db   :  { %v3161_v25 = vmul.f32 1.0614054, %v6321_v9  ;;  %v3131_v15 = vadd.f32 1.0, %v3115_v49  ;;  %v3062_v0 = vmul.f32 0.5, %v6137_v32  ;;  %v3133_v18 = vadd.f32 1.0, %v3117_v58 }
 0x9dc   :  { %4764 = vrcp.f32 %v3130_v54  ;;  %v3456_v23 = vmul.f32 %v3440_v36, %v3056_v41  ;;  %v3442_v31 = vadd.f32 1.0, %v3426_v27  ;;  %v3343_v53 = vmul.f32 1.442695, %v3319_v30 }
 0x9dd   :  { %v3177_v57 = vadd.f32 -1.4531521, %v3161_v25  ;;  %4766 = vrcp.f32 %v3131_v15  ;;  %v3239_v19 = vadd.f32 -0.28449672, %v3223_v13  ;;  %v6338_v8 = vmul.f32 0.70710677, %v6329_v52 }
 0x9de   :  { %v3462_v39 = vmul.f32 %v3446_v21, %v3062_v0  ;;  %v3321_v32 = vmul.f32 %v3305_v46, %v6251_v11  ;;  %v6343_v26 = vadd.f32 %v6130_v28, %v6070_v22  ;;  %v3472_v1 = vpack.c.bf16 %v3460_v34, %v3456_v23 }
 0x9df   :  { %v6333_v20 = vpop.eup %4762  ;;  %v3193_v61 = vmul.f32 %v6321_v9, %v3177_v57  ;;  %4768 = vrcp.f32 %v3133_v18  ;;  %v6346_v50 = vand.u32 2147483647, %v6338_v8  ;;  %v3458_v24 = vmul.f32 %v3442_v31, %v3058_v29 }
 0x9e0   :  { %v3160_v12 = vmul.f32 1.0614054, %v6333_v20  ;;  %4770 = vpow2.f32 %v3343_v53  ;;  %v3304_v5 = vsub.f32 0.0, %v6275_v14  ;;  %v6350_v56 = vmul.f32 0.70710677, %v6343_v26  ;;  %3767 = vmatprep.mubr.bf16.mxu0 %v3472_v1 }
 0x9e1   :  { %v3209_v41 = vadd.f32 1.4214138, %v3193_v61  ;;  %v3255_v11 = vmul.f32 %v6237_v10, %v3239_v19  ;;  %v3116_v48 = vmul.f32 0.3275911, %v6346_v50  ;;  %3768 = vmatmul.mubr.bf16.vlgmr.msra.gmra.mrb[72].mxu0 %v3471_v7  ;;  %v3347_v29 = vmul.f32 1.442695, %v3321_v32 }
 0x9e2   :  { %v3176_v40 = vadd.f32 -1.4531521, %v3160_v12  ;;  %v3307_v3 = vsub.f32 0.0, %v6311_v44  ;;  %v6361_v62 = vand.u32 2147483647, %v6350_v56  ;;  %v3474_v47 = vpack.c.bf16 %v3462_v39, %v3458_v24 }
 0x9e3   :  { %v3225_v22 = vmul.f32 %v6321_v9, %v3209_v41  ;;  %v3132_v27 = vadd.f32 1.0, %v3116_v48  ;;  %v3320_v30 = vmul.f32 %v3304_v5, %v6275_v14  ;;  %v3306_v58 = vsub.f32 0.0, %v6308_v2 }
 0x9e4   :  { %v3192_v28 = vmul.f32 %v6333_v20, %v3176_v40  ;;  %v3118_v13 = vmul.f32 0.3275911, %v6361_v62  ;;  %3816 = vmatprep.mubr.bf16.mxu1 %v3474_v47  ;;  %v3271_v17 = vadd.f32 0.2548296, %v3255_v11  ;;  %v3309_v7 = vsub.f32 0.0, %v6316_v33 }
 0x9e5   :  { %v3241_v49 = vadd.f32 -0.28449672, %v3225_v22  ;;  %4772 = vrcp.f32 %v3132_v27  ;;  %3817 = vmatmul.mubr.bf16.vlgmr.msra.gmra.mrb[32].mxu1 %v3473_v42  ;;  %v3323_v21 = vmul.f32 %v3307_v3, %v6311_v44  ;;  %v3345_v57 = vmul.f32 1.442695, %v3320_v30 }
 0x9e6   :  { %v3208_v36 = vadd.f32 1.4214138, %v3192_v28  ;;  %v6366_v25 = vpop.eup %4764  ;;  %v3134_v46 = vadd.f32 1.0, %v3118_v13  ;;  %4774 = vpow2.f32 %v3347_v29  ;;  %v3322_v23 = vmul.f32 %v3306_v58, %v6308_v2 }
 0x9e7   :  { %v6373_v54 = vpop.eup %4766  ;;  %v3257_v14 = vmul.f32 %v6321_v9, %v3241_v49  ;;  %v3162_v34 = vmul.f32 1.0614054, %v6366_v25  ;;  %v3287_v43 = vmul.f32 %v6237_v10, %v3271_v17  ;;  %v3325_v31 = vmul.f32 %v3309_v7, %v6316_v33 }
 0x9e8   :  { %v3224_v6 = vmul.f32 %v6333_v20, %v3208_v36  ;;  %v3163_v0 = vmul.f32 1.0614054, %v6373_v54  ;;  %4776 = vrcp.f32 %v3134_v46  ;;  %v3351_v61 = vmul.f32 1.442695, %v3323_v21 }
 0x9e9   :  { %v3178_v18 = vadd.f32 -1.4531521, %v3162_v34  ;;  %v6380_v45 = vpop.eup %4768  ;;  %v3273_v19 = vadd.f32 0.2548296, %v3257_v14  ;;  %v3308_v2 = vsub.f32 0.0, %v6346_v50  ;;  %4778 = vpow2.f32 %v3345_v57 }
 0x9ea   :  { %v3240_v15 = vadd.f32 -0.28449672, %v3224_v6  ;;  %v3179_v42 = vadd.f32 -1.4531521, %v3163_v0  ;;  %v4771_v53 = vpop.eup %4770  ;;  %v3165_v12 = vmul.f32 1.0614054, %v6380_v45  ;;  %4780 = vpow2.f32 %v3351_v61 }
 0x9eb   :  { %v3194_v44 = vmul.f32 %v6366_v25, %v3178_v18  ;;  %v3349_v41 = vmul.f32 1.442695, %v3322_v23  ;;  %v3367_v40 = vmul.f32 %v4771_v53, %v3287_v43  ;;  %v3355_v33 = vmul.f32 1.442695, %v3325_v31 }
 0x9ec   :  { %v3256_v39 = vmul.f32 %v6333_v20, %v3240_v15  ;;  %v3195_v32 = vmul.f32 %v6373_v54, %v3179_v42  ;;  %v3181_v10 = vadd.f32 -1.4531521, %v3165_v12  ;;  %v3310_v5 = vsub.f32 0.0, %v6361_v62 }
 0x9ed   :  { %v3210_v1 = vadd.f32 1.4214138, %v3194_v44  ;;  %v3289_v11 = vmul.f32 %v6321_v9, %v3273_v19  ;;  %v3324_v47 = vmul.f32 %v3308_v2, %v6346_v50  ;;  %4782 = vpow2.f32 %v3349_v41  ;;  %v6547_v41 = vld [vmem:[#allocation24_spill] sm:$0xff] }
 0x9ee   :  { %v3211_v24 = vadd.f32 1.4214138, %v3195_v32  ;;  %v3197_v28 = vmul.f32 %v6380_v45, %v3181_v10  ;;  %v3272_v29 = vadd.f32 0.2548296, %v3256_v39  ;;  %v3383_v58 = vsub.f32 1.0, %v3367_v40  ;;  %v6548_v40 = vld [vmem:[#allocation27_spill] sm:$0xff] }
 0x9ef   :  { %v3226_v22 = vmul.f32 %v6366_v25, %v3210_v1  ;;  %v6393_v48 = vpop.eup %4772  ;;  %4784 = vpow2.f32 %v3355_v33  ;;  %v3326_v13 = vmul.f32 %v3310_v5, %v6361_v62  ;;  %v3353_v21 = vmul.f32 1.442695, %v3324_v47 }
 0x9f0   :  { %v3227_v3 = vmul.f32 %v6373_v54, %v3211_v24  ;;  %v3213_v36 = vadd.f32 1.4214138, %v3197_v28  ;;  %v3164_v27 = vmul.f32 1.0614054, %v6393_v48  ;;  %v4775_v30 = vpop.eup %4774  ;;  %v3288_v15 = vmul.f32 %v6333_v20, %v3272_v29 }
 0x9f1   :  { %v3242_v49 = vadd.f32 -0.28449672, %v3226_v22  ;;  %v3369_v6 = vmul.f32 %v4775_v30, %v3289_v11  ;;  %v3415_v62 = vsub.f32 0.0, %v3383_v58  ;;  %v3357_v44 = vmul.f32 1.442695, %v3326_v13 }
 0x9f2   :  { %v3243_v9 = vadd.f32 -0.28449672, %v3227_v3  ;;  %v6399_v17 = vpop.eup %4776  ;;  %v3229_v14 = vmul.f32 %v6380_v45, %v3213_v36  ;;  %v3180_v34 = vadd.f32 -1.4531521, %v3164_v27  ;;  %4786 = vpow2.f32 %v3353_v21 }
 0x9f3   :  { %v3258_v7 = vmul.f32 %v6366_v25, %v3242_v49  ;;  %v3166_v46 = vmul.f32 1.0614054, %v6399_v17  ;;  %v4779_v42 = vpop.eup %4778  ;;  %v3385_v31 = vsub.f32 1.0, %v3369_v6  ;;  %v3063_v10 = vmul.f32 0.5, %v6547_v41 }
 0x9f4   :  { %v3259_v50 = vmul.f32 %v6373_v54, %v3243_v9  ;;  %v3245_v57 = vadd.f32 -0.28449672, %v3229_v14  ;;  %v3196_v18 = vmul.f32 %v6393_v48, %v3180_v34  ;;  %v4781_v39 = vpop.eup %4780  ;;  %v3368_v32 = vmul.f32 %v4779_v42, %v3288_v15 }
 0x9f5   :  { %v3274_v0 = vadd.f32 0.2548296, %v3258_v7  ;;  %v3182_v43 = vadd.f32 -1.4531521, %v3166_v46  ;;  %vm3399_vm14 = vcmp.ge.f32.partialorder %v6548_v40, 0.0  ;;  %v3417_v11 = vsub.f32 0.0, %v3385_v31 }
 0x9f6   :  { %v3275_v23 = vadd.f32 0.2548296, %v3259_v50  ;;  %v3261_v53 = vmul.f32 %v6380_v45, %v3245_v57  ;;  %v3212_v19 = vadd.f32 1.4214138, %v3196_v18  ;;  %4788 = vpow2.f32 %v3357_v44 }
 0x9f7   :  { %v3290_v61 = vmul.f32 %v6366_v25, %v3274_v0  ;;  %v3198_v20 = vmul.f32 %v6399_v17, %v3182_v43  ;;  %v4783_v5 = vpop.eup %4782  ;;  %v3431_v28 = vsel %vm3399_vm14, %v3383_v58, %v3415_v62  ;;  %v3065_v49 = vmul.f32 0.5, %v6229_v60 }
 0x9f8   :  { %v3291_v12 = vmul.f32 %v6373_v54, %v3275_v23  ;;  %v3277_v2 = vadd.f32 0.2548296, %v3261_v53  ;;  %v3228_v1 = vmul.f32 %v6393_v48, %v3212_v19  ;;  %v3384_v36 = vsub.f32 1.0, %v3368_v32 }
 0x9f9   :  { %v3214_v33 = vadd.f32 1.4214138, %v3198_v20  ;;  %v4785_v54 = vpop.eup %4784  ;;  %v3370_v29 = vmul.f32 %v4783_v5, %v3290_v61  ;;  %vm3401_vm15 = vcmp.ge.f32.partialorder %v6244_v37, 0.0  ;;  %vm3403_vm0 = vcmp.ge.f32.partialorder %v6300_v59, 0.0 }
 0x9fa   :  { %v3371_v24 = vmul.f32 %v4781_v39, %v3291_v12  ;;  %v3293_v25 = vmul.f32 %v6380_v45, %v3277_v2  ;;  %v3244_v22 = vadd.f32 -0.28449672, %v3228_v1  ;;  %v3447_v13 = vadd.f32 1.0, %v3431_v28 }
 0x9fb   :  { %v3230_v47 = vmul.f32 %v6399_v17, %v3214_v33  ;;  %v3433_v6 = vsel %vm3401_vm15, %v3385_v31, %v3417_v11  ;;  %v3386_v14 = vsub.f32 1.0, %v3370_v29  ;;  %v3067_v34 = vmul.f32 0.5, %v6287_v16 }
 0x9fc   :  { %v3387_v3 = vsub.f32 1.0, %v3371_v24  ;;  %v3373_v27 = vmul.f32 %v4785_v54, %v3293_v25  ;;  %v3260_v30 = vmul.f32 %v6393_v48, %v3244_v22  ;;  %v3416_v21 = vsub.f32 0.0, %v3384_v36  ;;  %v4787_v37 = vpop.eup %4786 }
 0x9fd   :  { %v3246_v45 = vadd.f32 -0.28449672, %v3230_v47  ;;  %v3449_v57 = vadd.f32 1.0, %v3433_v6  ;;  %vm3400_vm1 = vcmp.ge.f32.partialorder %v6268_v55, 0.0  ;;  %vm3405_vm2 = vcmp.ge.f32.partialorder %v6305_v4, 0.0  ;;  %v6549_v6 = vld [vmem:[#allocation21_spill] sm:$0xff] }
 0x9fe   :  { %v3419_v9 = vsub.f32 0.0, %v3387_v3  ;;  %v3389_v7 = vsub.f32 1.0, %v3373_v27  ;;  %v3276_v58 = vadd.f32 0.2548296, %v3260_v30  ;;  %v3463_v18 = vmul.f32 %v3447_v13, %v3063_v10  ;;  %v3997_v13 = vld [vmem:[%s6469_s13] ss:$0 sm:$0xff] }
 0x9ff   :  { %v3262_v60 = vmul.f32 %v6399_v17, %v3246_v45  ;;  %v3418_v16 = vsub.f32 0.0, %v3386_v14  ;;  %v3069_v42 = vmul.f32 0.5, %v6291_v35  ;;  %v3432_v44 = vsel %vm3400_vm1, %v3384_v36, %v3416_v21  ;;  %s4999_s13 = smov [#allocation14]  }
 0xa00   :  { %v3435_v50 = vsel %vm3403_vm0, %v3387_v3, %v3419_v9  ;;  %v3421_v15 = vsub.f32 0.0, %v3389_v7  ;;  %v3292_v0 = vmul.f32 %v6393_v48, %v3276_v58  ;;  %v4789_v19 = vpop.eup %4788  ;;  %v3465_v12 = vmul.f32 %v3449_v57, %v3065_v49  ;;  %s3857_s25 = sshll.u32 %s4999_s13, 4  ;;  %s3858_s25 = int_to_ptr.vmem [resolvable:$true] %s3857_s25 }
 0xa01   :  { %v3451_v46 = vadd.f32 1.0, %v3435_v50  ;;  %v3278_v59 = vadd.f32 0.2548296, %v3262_v60  ;;  %vm3402_vm3 = vcmp.ge.f32.partialorder %v6297_v63, 0.0  ;;  %vm3404_vm4 = vcmp.ge.f32.partialorder %v6338_v8, 0.0  ;;  %s4948_s27 = scalar_lea.vmem %s3858_s25, 512  ;;  %p4953_p1 = scmp.lt.s32.totalorder %s3858_s25, %s3858_s25 }
 0xa02   :  { %v3437_v23 = vsel %vm3405_vm2, %v3389_v7, %v3421_v15  ;;  %v3372_v43 = vmul.f32 %v4787_v37, %v3292_v0  ;;  %v3448_v39 = vadd.f32 1.0, %v3432_v44  ;;  %v3434_v32 = vsel %vm3402_vm3, %v3386_v14, %v3418_v16  ;;  %p4949_p0 = scmp.ne.s32.totalorder %s3858_s25, %s4948_s27  ;;  %p4954_p2 = scmp.lt.s32.totalorder %s4948_s27, %s4948_s27 }
 0xa03   :  { %v3467_v62 = vmul.f32 %v3451_v46, %v3067_v34  ;;  %v3453_v31 = vadd.f32 1.0, %v3437_v23  ;;  %v3294_v53 = vmul.f32 %v6399_v17, %v3278_v59  ;;  %v3064_v41 = vmul.f32 0.5, %v6248_v51  ;;  %v6550_v34 = vld [vmem:[#allocation22_spill] sm:$0xff] }
 0xa04   :  { %v3388_v48 = vsub.f32 1.0, %v3372_v43  ;;  %v3068_v17 = vmul.f32 0.5, %v6329_v52  ;;  %v3450_v24 = vadd.f32 1.0, %v3434_v32  ;;  %vm3406_vm5 = vcmp.ge.f32.partialorder %v6350_v56, 0.0  ;;  %p4955_p3 = por %p4954_p2, %p4953_p1 }
 0xa05   :  { %v3475_v61 = vpack.c.bf16 %v3467_v62, %v3463_v18  ;;  %v3469_v20 = vmul.f32 %v3453_v31, %v3069_v42  ;;  %v3374_v55 = vmul.f32 %v4789_v19, %v3294_v53  ;;  %v3464_v33 = vmul.f32 %v3448_v39, %v3064_v41  ;;  %v6551_v31 = vld [vmem:[#allocation23_spill] sm:$0xff] }
 0xa06   :  { %v3420_v4 = vsub.f32 0.0, %v3388_v48  ;;  %v3066_v8 = vmul.f32 0.5, %v6282_v38  ;;  %v3070_v11 = vmul.f32 0.5, %v6343_v26  ;;  %p4956_p4 = pnand %p4955_p3, %p4949_p0 }
 0xa07   :  { %v3390_v2 = vsub.f32 1.0, %v3374_v55  ;;  %v3477_v1 = vpack.c.bf16 %v3469_v20, %v3465_v12 }
 0xa08   :  { %v3436_v35 = vsel %vm3404_vm4, %v3388_v48, %v3420_v4  ;;  %v3466_v54 = vmul.f32 %v3450_v24, %v3066_v8  ;;  %v6552_v48 = vld [vmem:[#allocation25_spill] sm:$0xff] }
 0xa09   :  { %v3452_v10 = vadd.f32 1.0, %v3436_v35  ;;  %v3422_v40 = vsub.f32 0.0, %v3390_v2 }
 0xa0b   :  { %v3468_v5 = vmul.f32 %v3452_v10, %v3068_v17  ;;  %v3438_v63 = vsel %vm3406_vm5, %v3390_v2, %v3422_v40 }
 0xa0c   :  { %v3454_v25 = vadd.f32 1.0, %v3438_v63 }
 0xa0d   :  { %v3476_v22 = vpack.c.bf16 %v3468_v5, %v3464_v33 }
 0xa0e   :  { %v3470_v28 = vmul.f32 %v3454_v25, %v3070_v11 }
 0xa0f   :  { %3775 = vmatprep.mubr.bf16.mxu0 %v3476_v22 }
 0xa10   :  { %v3478_v51 = vpack.c.bf16 %v3470_v28, %v3466_v54  ;;  %3776 = vmatmul.mubr.bf16.gmra.mrb[76].mxu0 %v3475_v61 }
 0xa12   :  { %3824 = vmatprep.mubr.bf16.mxu1 %v3478_v51 }
 0xa13   :  { %3825 = vmatmul.mubr.bf16.gmra.mrb[36].mxu1 %v3477_v1 }
 0xab4   :  { %v4098_v52 = vpop.f32.mrb[72].mxu0 }
 0xab5   :  { %v4099_v29 = vpop.f32.mrb[73].mxu0 }
 0xab6   :  { %v4100_v3 = vadd.f32 %v4099_v29, %v4098_v52  ;;  %v4101_v56 = vpop.f32.mrb[74].mxu0 }
 0xab7   :  { %v4102_v47 = vpop.f32.mrb[75].mxu0 }
 0xab8   :  { %v4126_v49 = vpop.f32.mrb[32].mxu1  ;;  %v4103_v36 = vadd.f32 %v4102_v47, %v4101_v56 }
 0xab9   :  { %v4127_v27 = vpop.f32.mrb[33].mxu1 }
 0xaba   :  { %v4128_v38 = vadd.f32 %v4127_v27, %v4126_v49  ;;  %v4129_v30 = vpop.f32.mrb[34].mxu1 }
 0xabb   :  { %v4130_v26 = vpop.f32.mrb[35].mxu1 }
 0xabc   :  { %v3819_v9 = vadd.f32 %v4128_v38, %v4100_v3  ;;  %v4131_v45 = vadd.f32 %v4130_v26, %v4129_v30 }
 0xabe   :  { %v3833_v7 = vadd.f32 %v3819_v9, %v6549_v6  ;;  %v3822_v58 = vadd.f32 %v4131_v45, %v4103_v36 }
 0xac0   :  { %v3844_v14 = vadd.f32 %v3997_v13, %v3833_v7  ;;  %v3834_v50 = vadd.f32 %v3822_v58, %v6550_v34 }
 0xac2   :  { %3848 = vst [vmem:[#allocation14] sm:$0xff] %v3844_v14  ;;  %v3845_v60 = vadd.f32 %v3997_v13, %v3834_v50 }
 0xac4   :  { %3849 = vst [vmem:[#allocation14 + $0x8] sm:$0xff] %v3845_v60 }
 0xae3   :  { %v4104_v21 = vpop.f32.mrb[76].mxu0 }
 0xae4   :  { %v4105_v46 = vpop.f32.mrb[77].mxu0 }
 0xae5   :  { %v4106_v15 = vadd.f32 %v4105_v46, %v4104_v21  ;;  %v4107_v0 = vpop.f32.mrb[78].mxu0 }
 0xae6   :  { %v4132_v37 = vpop.f32.mrb[36].mxu1  ;;  %v4108_v57 = vpop.f32.mrb[79].mxu0 }
 0xae7   :  { %v4133_v59 = vpop.f32.mrb[37].mxu1  ;;  %v4109_v18 = vadd.f32 %v4108_v57, %v4107_v0 }
 0xae8   :  { %v4134_v62 = vadd.f32 %v4133_v59, %v4132_v37  ;;  %v4135_v23 = vpop.f32.mrb[38].mxu1 }
 0xae9   :  { %v4136_v43 = vpop.f32.mrb[39].mxu1 }
 0xaea   :  { %v3827_v16 = vadd.f32 %v4134_v62, %v4106_v15  ;;  %v4137_v42 = vadd.f32 %v4136_v43, %v4135_v23 }
 0xaec   :  { %v3835_v53 = vadd.f32 %v3827_v16, %v6551_v31  ;;  %v3830_v19 = vadd.f32 %v4137_v42, %v4109_v18 }
 0xaee   :  { %v3846_v44 = vadd.f32 %v3997_v13, %v3835_v53  ;;  %v3836_v61 = vadd.f32 %v3830_v19, %v6552_v48 }
 0xaf0   :  { %3850 = vst [vmem:[#allocation14 + $0x10] sm:$0xff] %v3846_v44  ;;  %v3847_v12 = vadd.f32 %v3997_v13, %v3836_v61 }
 0xaf2   :  { %3851 = vst [vmem:[#allocation14 + $0x18] sm:$0xff] %v3847_v12 }
 0xaf3   :  { %4959 = shalt.err (!%p4956_p4)
}
 0xaf4   :  { %s4960_s29 = scalar_lea.hbm %s6470_s14, 512 }
 0xaf5   :  { %p4961_p5 = scmp.ne.s32.totalorder %s6470_s14, %s4960_s29  ;;  %p4964_p6 = scmp.lt.u32.totalorder %s4960_s29, %s6470_s14 }
 0xaf7   :  { %p4966_p7 = pnand %p4964_p6, %p4961_p5 }
 0xaf9   :  { %4969 = shalt.err (!%p4966_p7)
}
 0xafa   :  { %3863 = dma.vmem_to_hbm [thread:$0]  %s3858_s25, 512, %s6470_s14, [#allocation4], %s4989_s10, %s4989_s10, %s4990_s23  }
 0xafb   :  { %4978 = dma.done.wait [#allocation4], 512  }
 0xafc   :  { %4979 = vsyncadd [#allocation4], 4294966784 }
 0xafd   :  { %3867 = vsyncpa [#allocation3], 1 }
 0xafe   :  { %3868 = vsyncpa [#allocation6], 1 }
 0xaff   :  { %3869 = vsyncpa [#allocation9], 1 }
 0xb00   :  { %3870 = vsyncpa [#allocation12], 1 }
 0xb01   :  { %3871 = vsyncpa [#allocation4], 1 }

</bundles_post_ra>
